<compile_context>
chip_gen: v7x
topology: tpu7x:2x2x1
jax: 0.10.0
libtpu: 0.0.40
codegen_flags: <defaults>
</compile_context>

<pallas_src>
import functools

import jax
import jax.numpy as jnp
from jax import lax
from jax.experimental import pallas as pl
from jax.experimental.pallas import tpu as pltpu


def _round_up(x, m):
    return (x + m - 1) // m * m


def _pick_batch_tile(N, H, W, target_rows=512):
    """Fold batch elements per grid step so the matmul M depth (bt*H*W) is reasonably
    deep, but keep >= 2 grid steps (megacore) whenever N >= 2."""
    best = 1
    for bt in range(1, N + 1):
        if N % bt:
            continue
        if N >= 2 and (N // bt) < 2:
            break
        best = bt
        if bt * H * W >= target_rows:
            break
    return best


# ------------------------------ fused VGGBlock kernel ------------------------------
def _vgg_block_kernel(x_ref, w_ref, b_ref, o_ref, a_ref, acc_ref, *,
                      H, W, C, cin, num_convs, bt):
    # x_ref   : (bt, H, W, cin)        input batch-tile (compute dtype)
    # w_ref   : (num_convs, 9, C, C)   zero-padded weight slab, tap t = ky*3 + kx
    # b_ref   : (num_convs, 1, C)      zero-padded biases (f32)
    # o_ref   : (bt, H+1, W+1, C)      pooled output (f32)
    # a_ref   : (bt, H+2, W+2, C)      padded activation scratch, resident across layers
    # acc_ref : (bt*H*W, C)            f32 conv accumulator
    cdtype = a_ref.dtype
    M = bt * H * W

    # Zero only the 1-px spatial border (cheap strips, not the whole scratch).
    a_ref[:, 0:1, :, :] = jnp.zeros((bt, 1, W + 2, C), cdtype)
    a_ref[:, H + 1:H + 2, :, :] = jnp.zeros((bt, 1, W + 2, C), cdtype)
    a_ref[:, :, 0:1, :] = jnp.zeros((bt, H + 2, 1, C), cdtype)
    a_ref[:, :, W + 1:W + 2, :] = jnp.zeros((bt, H + 2, 1, C), cdtype)

    # Layer-0 input: real channels into the interior, interior channel-pad zeroed.
    # (Layers 1.. overwrite the full C-wide interior, and their padded weight columns
    #  are zero, so the channel pad stays zero automatically afterwards.)
    a_ref[:, 1:H + 1, 1:W + 1, :cin] = x_ref[...].astype(cdtype)
    if cin < C:
        a_ref[:, 1:H + 1, 1:W + 1, cin:] = jnp.zeros((bt, H, W, C - cin), cdtype)

    for l in range(num_convs):                       # static unroll over conv layers
        # 9 accumulating K=C matmuls (no im2col patch scratch); each tap slices the
        # Ref directly so only a (bt,H,W,C) window is loaded per tap.
        for t in range(9):
            ky, kx = t // 3, t % 3
            tap = a_ref[:, ky:ky + H, kx:kx + W, :]
            contrib = jnp.dot(tap.reshape(M, C), w_ref[l, t],
                              preferred_element_type=jnp.float32)
            if t == 0:
                acc_ref[...] = contrib + b_ref[l]    # fused bias init (broadcast over M)
            else:
                acc_ref[...] += contrib
        res = jnp.maximum(acc_ref[...], 0.0)         # fused ReLU, f32
        # Write back into the interior -> input of the next layer.
        a_ref[:, 1:H + 1, 1:W + 1, :] = res.reshape(bt, H, W, C).astype(cdtype)

    # MaxPool2d(kernel_size=2, stride=1, padding=1): (H, W) -> (H+1, W+1).
    # Zero border == -inf padding here because activations are post-ReLU (>= 0).
    m = jnp.maximum(
        jnp.maximum(a_ref[:, 0:H + 1, 0:W + 1, :], a_ref[:, 0:H + 1, 1:W + 2, :]),
        jnp.maximum(a_ref[:, 1:H + 2, 0:W + 1, :], a_ref[:, 1:H + 2, 1:W + 2, :]))
    o_ref[...] = m.astype(o_ref.dtype)


# --------------------------------- parameter packing --------------------------------
def _pack_params(weights, biases, C, compute_dtype):
    """Zero-pad each (3,3,ci,co) weight into a (num_convs, 9, C, C) lane-dense slab
    (tap index t = ky*3 + kx); biases -> (num_convs, 1, C) f32."""
    num_convs = len(weights)
    w_slab = jnp.zeros((num_convs, 9, C, C), jnp.float32)
    b_slab = jnp.zeros((num_convs, 1, C), jnp.float32)
    for l, (w, b) in enumerate(zip(weights, biases)):
        _, _, ci, co = w.shape
        w_slab = w_slab.at[l, :, :ci, :co].set(
            w.reshape(9, ci, co).astype(jnp.float32))
        b_slab = b_slab.at[l, 0, :co].set(b.astype(jnp.float32))
    return w_slab.astype(compute_dtype), b_slab


# ---------------------------------- public wrappers ---------------------------------
def vgg_block_forward_nhwc(x_nhwc, weights, biases, *,
                           compute_dtype=jnp.bfloat16, batch_tile=None):
    """Core NHWC entry point: (N, H, W, Cin) -> (N, H+1, W+1, C) f32, C lane-padded.
    Consecutive VGG blocks can chain on this directly (no transposes / channel slices).
    compute_dtype: bf16 default (v6e/v7x MXU-native); pass jnp.float32 for f32 operands
    (e.g. v5e elementwise path)."""
    N, H, W, cin = x_nhwc.shape
    cout = weights[-1].shape[-1]
    num_convs = len(weights)
    C = _round_up(max(cin, cout), 128)               # lane-dense channel padding

    bt = batch_tile if batch_tile is not None else _pick_batch_tile(N, H, W)
    assert N % bt == 0, (N, bt)

    x = x_nhwc.astype(compute_dtype)                 # halve per-step input DMA in bf16
    w_slab, b_slab = _pack_params(weights, biases, C, compute_dtype)

    # Explicit VMEM budget: double-buffered in/out blocks + resident scratches.
    cd = jnp.dtype(compute_dtype).itemsize
    est = (2 * bt * H * W * cin * cd
           + 2 * num_convs * 9 * C * C * cd
           + 2 * num_convs * C * 4
           + 2 * bt * (H + 1) * (W + 1) * C * 4
           + bt * (H + 2) * (W + 2) * C * cd
           + bt * H * W * C * 4)
    vmem_limit = int(min(64 * 2**20, max(32 * 2**20, 2 * est)))

    kernel = functools.partial(_vgg_block_kernel, H=H, W=W, C=C, cin=cin,
                               num_convs=num_convs, bt=bt)
    out = pl.pallas_call(
        kernel,
        out_shape=jax.ShapeDtypeStruct((N, H + 1, W + 1, C), jnp.float32),
        grid_spec=pltpu.PrefetchScalarGridSpec(
            num_scalar_prefetch=0,
            grid=(N // bt,),
            in_specs=[
                pl.BlockSpec((bt, H, W, cin), lambda n: (n, 0, 0, 0)),
                # Constant index maps -> weight/bias slabs DMA'd once, reused per step.
                pl.BlockSpec((num_convs, 9, C, C), lambda n: (0, 0, 0, 0)),
                pl.BlockSpec((num_convs, 1, C), lambda n: (0, 0, 0)),
            ],
            out_specs=pl.BlockSpec((bt, H + 1, W + 1, C), lambda n: (n, 0, 0, 0)),
            scratch_shapes=[
                pltpu.VMEM((bt, H + 2, W + 2, C), compute_dtype),  # padded activation
                pltpu.VMEM((bt * H * W, C), jnp.float32),          # f32 conv accumulator
            ],
        ),
        compiler_params=pltpu.CompilerParams(
            dimension_semantics=("parallel",),
            vmem_limit_bytes=vmem_limit),
    )(x, w_slab, b_slab)
    return out                                        # (N, H+1, W+1, C) padded NHWC


def vgg_block_forward(x_nchw, weights, biases, *,
                      compute_dtype=jnp.bfloat16, batch_tile=None):
    """PyTorch-convention wrapper: (N, Cin, H, W) -> (N, Cout, H+1, W+1) f32.
    Layout conversion / channel un-padding happens only at this model boundary."""
    cout = weights[-1].shape[-1]
    x_nhwc = jnp.transpose(x_nchw, (0, 2, 3, 1))
    out = vgg_block_forward_nhwc(x_nhwc, weights, biases,
                                 compute_dtype=compute_dtype, batch_tile=batch_tile)
    out = out[..., :cout]
    return jnp.transpose(out, (0, 3, 1, 2))


# ---------------------------------- JAX reference ------------------------------------
def vgg_block_reference(x_nchw, weights, biases):
    x = x_nchw
    for w, b in zip(weights, biases):
        w_oihw = jnp.transpose(w, (3, 2, 0, 1))       # (3,3,Cin,Cout) -> (Cout,Cin,3,3)
        x = lax.conv_general_dilated(
            x, w_oihw, window_strides=(1, 1), padding="SAME",
            dimension_numbers=("NCHW", "OIHW", "NCHW"))
        x = jnp.maximum(x + b.reshape(1, -1, 1, 1), 0.0)
    x = lax.reduce_window(
        x, -jnp.inf, lax.max,
        window_dimensions=(1, 1, 2, 2), window_strides=(1, 1, 1, 1),
        padding=((0, 0), (0, 0), (1, 1), (1, 1)))
    return x


if __name__ == "__main__":
    # VGGBlock(in_channels=4, out_channels=8, num_convs=2)
    N, Cin, H, W = 2, 4, 16, 16
    Cout, num_convs = 8, 2

    key = jax.random.PRNGKey(0)
    kx, *kws = jax.random.split(key, 1 + 2 * num_convs)
    x = jax.random.normal(kx, (N, Cin, H, W), dtype=jnp.float32)

    weights, biases = [], []
    c_in = Cin
    for i in range(num_convs):
        kw, kb = kws[2 * i], kws[2 * i + 1]
        weights.append(0.1 * jax.random.normal(kw, (3, 3, c_in, Cout), dtype=jnp.float32))
        biases.append(0.1 * jax.random.normal(kb, (Cout,), dtype=jnp.float32))
        c_in = Cout

    ref = jax.block_until_ready(vgg_block_reference(x, weights, biases))

    # f32 operand path (f32 accumulation; different contraction order than lax.conv,
    # so a small numerical tolerance is expected).
    out_f32 = jax.block_until_ready(
        vgg_block_forward(x, weights, biases, compute_dtype=jnp.float32))
    assert out_f32.shape == (N, Cout, H + 1, W + 1), out_f32.shape
    assert jnp.allclose(out_f32, ref, atol=1e-4, rtol=1e-4), "f32 mismatch vs reference"

    # bf16 operand path (default; f32 accumulation): looser tolerance — the inter-layer
    # activation is stored in bf16, so error compounds with num_convs.
    out_bf16 = jax.block_until_ready(
        vgg_block_forward(x, weights, biases, compute_dtype=jnp.bfloat16))
    assert out_bf16.shape == (N, Cout, H + 1, W + 1), out_bf16.shape
    assert jnp.allclose(out_bf16, ref, atol=3e-2, rtol=3e-2), "bf16 mismatch vs reference"

    print("KERNEL_OK")
</pallas_src>

<mosaic_0001>
module attributes {stable_mosaic.version = 11 : i64} {
  func.func @_vgg_block_kernel(%arg0: i32, %arg1: memref<1x16x16x4xf32, #tpu.memory_space<vmem>>, %arg2: memref<2x9x128x128xf32, #tpu.memory_space<vmem>>, %arg3: memref<2x1x128xf32, #tpu.memory_space<vmem>>, %arg4: memref<1x17x17x128xf32, #tpu.memory_space<vmem>>, %arg5: memref<1x18x18x128xf32, #tpu.memory_space<vmem>>, %arg6: memref<256x128xf32, #tpu.memory_space<vmem>>) attributes {dimension_semantics = [#tpu.dimension_semantics<parallel>], iteration_bounds = array<i64: 2>, scalar_prefetch = 0 : i64, scratch_operands = 2 : i64, tpu.core_type = #tpu.core_type<tc>, window_params = [{transform_indices = @transform_0, window_bounds = array<i64: 1, 16, 16, 4>}, {pipeline_mode = #tpu.pipeline_mode<synchronous>, transform_indices = @transform_1, window_bounds = array<i64: 2, 9, 128, 128>}, {pipeline_mode = #tpu.pipeline_mode<synchronous>, transform_indices = @transform_2, window_bounds = array<i64: 2, 1, 128>}, {transform_indices = @transform_3, window_bounds = array<i64: 1, 17, 17, 128>}]} {
    %cst = arith.constant 0.000000e+00 : f32
    %0 = vector.broadcast %cst : f32 to vector<1x1x18x128xf32>
    %c0 = arith.constant 0 : index
    %c0_0 = arith.constant 0 : index
    %c0_1 = arith.constant 0 : index
    %c0_2 = arith.constant 0 : index
    %1 = vector.load %arg5[%c0, %c0_0, %c0_1, %c0_2] : memref<1x18x18x128xf32, #tpu.memory_space<vmem>>, vector<1x1x18x128xf32>
    tpu.vector_store %arg5[%c0, %c0_0, %c0_1, %c0_2], %0 {strides = array<i32>} : memref<1x18x18x128xf32, #tpu.memory_space<vmem>>, vector<1x1x18x128xf32>,
    %cst_3 = arith.constant 0.000000e+00 : f32
    %2 = vector.broadcast %cst_3 : f32 to vector<1x1x18x128xf32>
    %c0_4 = arith.constant 0 : index
    %c17 = arith.constant 17 : index
    %c0_5 = arith.constant 0 : index
    %c0_6 = arith.constant 0 : index
    %3 = vector.load %arg5[%c0_4, %c17, %c0_5, %c0_6] : memref<1x18x18x128xf32, #tpu.memory_space<vmem>>, vector<1x1x18x128xf32>
    tpu.vector_store %arg5[%c0_4, %c17, %c0_5, %c0_6], %2 {strides = array<i32>} : memref<1x18x18x128xf32, #tpu.memory_space<vmem>>, vector<1x1x18x128xf32>,
    %cst_7 = arith.constant 0.000000e+00 : f32
    %4 = vector.broadcast %cst_7 : f32 to vector<1x18x1x128xf32>
    %c0_8 = arith.constant 0 : index
    %c0_9 = arith.constant 0 : index
    %c0_10 = arith.constant 0 : index
    %c0_11 = arith.constant 0 : index
    %5 = vector.load %arg5[%c0_8, %c0_9, %c0_10, %c0_11] : memref<1x18x18x128xf32, #tpu.memory_space<vmem>>, vector<1x18x1x128xf32>
    tpu.vector_store %arg5[%c0_8, %c0_9, %c0_10, %c0_11], %4 {strides = array<i32>} : memref<1x18x18x128xf32, #tpu.memory_space<vmem>>, vector<1x18x1x128xf32>,
    %cst_12 = arith.constant 0.000000e+00 : f32
    %6 = vector.broadcast %cst_12 : f32 to vector<1x18x1x128xf32>
    %c0_13 = arith.constant 0 : index
    %c0_14 = arith.constant 0 : index
    %c17_15 = arith.constant 17 : index
    %c0_16 = arith.constant 0 : index
    %7 = vector.load %arg5[%c0_13, %c0_14, %c17_15, %c0_16] : memref<1x18x18x128xf32, #tpu.memory_space<vmem>>, vector<1x18x1x128xf32>
    tpu.vector_store %arg5[%c0_13, %c0_14, %c17_15, %c0_16], %6 {strides = array<i32>} : memref<1x18x18x128xf32, #tpu.memory_space<vmem>>, vector<1x18x1x128xf32>,
    %c0_17 = arith.constant 0 : index
    %c0_18 = arith.constant 0 : index
    %c0_19 = arith.constant 0 : index
    %c0_20 = arith.constant 0 : index
    %8 = vector.load %arg1[%c0_17, %c0_18, %c0_19, %c0_20] : memref<1x16x16x4xf32, #tpu.memory_space<vmem>>, vector<1x16x16x4xf32>
    %c0_21 = arith.constant 0 : index
    %c1 = arith.constant 1 : index
    %c1_22 = arith.constant 1 : index
    %c0_23 = arith.constant 0 : index
    %9 = vector.load %arg5[%c0_21, %c1, %c1_22, %c0_23] : memref<1x18x18x128xf32, #tpu.memory_space<vmem>>, vector<1x16x16x4xf32>
    tpu.vector_store %arg5[%c0_21, %c1, %c1_22, %c0_23], %8 {strides = array<i32>} : memref<1x18x18x128xf32, #tpu.memory_space<vmem>>, vector<1x16x16x4xf32>,
    %cst_24 = arith.constant 0.000000e+00 : f32
    %10 = vector.broadcast %cst_24 : f32 to vector<1x16x16x124xf32>
    %c0_25 = arith.constant 0 : index
    %c1_26 = arith.constant 1 : index
    %c1_27 = arith.constant 1 : index
    %c4 = arith.constant 4 : index
    %11 = vector.load %arg5[%c0_25, %c1_26, %c1_27, %c4] : memref<1x18x18x128xf32, #tpu.memory_space<vmem>>, vector<1x16x16x124xf32>
    tpu.vector_store %arg5[%c0_25, %c1_26, %c1_27, %c4], %10 {strides = array<i32>} : memref<1x18x18x128xf32, #tpu.memory_space<vmem>>, vector<1x16x16x124xf32>,
    %c0_28 = arith.constant 0 : index
    %c0_29 = arith.constant 0 : index
    %c0_30 = arith.constant 0 : index
    %c0_31 = arith.constant 0 : index
    %12 = vector.load %arg5[%c0_28, %c0_29, %c0_30, %c0_31] : memref<1x18x18x128xf32, #tpu.memory_space<vmem>>, vector<1x16x16x128xf32>
    %13 = vector.shape_cast %12 : vector<1x16x16x128xf32> to vector<256x128xf32>
    %c0_32 = arith.constant 0 : index
    %c0_33 = arith.constant 0 : index
    %c0_34 = arith.constant 0 : index
    %c0_35 = arith.constant 0 : index
    %14 = vector.load %arg2[%c0_32, %c0_33, %c0_34, %c0_35] : memref<2x9x128x128xf32, #tpu.memory_space<vmem>>, vector<1x1x128x128xf32>
    %15 = vector.shape_cast %14 : vector<1x1x128x128xf32> to vector<128x128xf32>
    %cst_36 = arith.constant dense<0.000000e+00> : vector<256x128xf32>
    %16 = tpu.matmul %13, %15, %cst_36 {dimension_numbers = #tpu.dot_dimension_numbers<[1], [0], [0], [1], [0, 0, 1, 1], [], []>} : vector<256x128xf32>, vector<128x128xf32>, vector<256x128xf32> -> vector<256x128xf32>
    %c0_37 = arith.constant 0 : index
    %c0_38 = arith.constant 0 : index
    %c0_39 = arith.constant 0 : index
    %17 = vector.load %arg3[%c0_37, %c0_38, %c0_39] : memref<2x1x128xf32, #tpu.memory_space<vmem>>, vector<1x1x128xf32>
    %18 = vector.shape_cast %17 : vector<1x1x128xf32> to vector<1x128xf32>
    %19 = vector.broadcast %18 : vector<1x128xf32> to vector<256x128xf32>
    %20 = arith.addf %16, %19 : vector<256x128xf32>
    %c0_40 = arith.constant 0 : index
    %c0_41 = arith.constant 0 : index
    %21 = vector.load %arg6[%c0_40, %c0_41] : memref<256x128xf32, #tpu.memory_space<vmem>>, vector<256x128xf32>
    tpu.vector_store %arg6[%c0_40, %c0_41], %20 {strides = array<i32>} : memref<256x128xf32, #tpu.memory_space<vmem>>, vector<256x128xf32>,
    %c0_42 = arith.constant 0 : index
    %c0_43 = arith.constant 0 : index
    %c1_44 = arith.constant 1 : index
    %c0_45 = arith.constant 0 : index
    %22 = vector.load %arg5[%c0_42, %c0_43, %c1_44, %c0_45] : memref<1x18x18x128xf32, #tpu.memory_space<vmem>>, vector<1x16x16x128xf32>
    %23 = vector.shape_cast %22 : vector<1x16x16x128xf32> to vector<256x128xf32>
    %c0_46 = arith.constant 0 : index
    %c1_47 = arith.constant 1 : index
    %c0_48 = arith.constant 0 : index
    %c0_49 = arith.constant 0 : index
    %24 = vector.load %arg2[%c0_46, %c1_47, %c0_48, %c0_49] : memref<2x9x128x128xf32, #tpu.memory_space<vmem>>, vector<1x1x128x128xf32>
    %25 = vector.shape_cast %24 : vector<1x1x128x128xf32> to vector<128x128xf32>
    %cst_50 = arith.constant dense<0.000000e+00> : vector<256x128xf32>
    %26 = tpu.matmul %23, %25, %cst_50 {dimension_numbers = #tpu.dot_dimension_numbers<[1], [0], [0], [1], [0, 0, 1, 1], [], []>} : vector<256x128xf32>, vector<128x128xf32>, vector<256x128xf32> -> vector<256x128xf32>
    %c0_51 = arith.constant 0 : index
    %c0_52 = arith.constant 0 : index
    %27 = vector.load %arg6[%c0_51, %c0_52] : memref<256x128xf32, #tpu.memory_space<vmem>>, vector<256x128xf32>
    %28 = arith.addf %27, %26 : vector<256x128xf32>
    %c0_53 = arith.constant 0 : index
    %c0_54 = arith.constant 0 : index
    %29 = vector.load %arg6[%c0_53, %c0_54] : memref<256x128xf32, #tpu.memory_space<vmem>>, vector<256x128xf32>
    tpu.vector_store %arg6[%c0_53, %c0_54], %28 {strides = array<i32>} : memref<256x128xf32, #tpu.memory_space<vmem>>, vector<256x128xf32>,
    %c0_55 = arith.constant 0 : index
    %c0_56 = arith.constant 0 : index
    %c2 = arith.constant 2 : index
    %c0_57 = arith.constant 0 : index
    %30 = vector.load %arg5[%c0_55, %c0_56, %c2, %c0_57] : memref<1x18x18x128xf32, #tpu.memory_space<vmem>>, vector<1x16x16x128xf32>
    %31 = vector.shape_cast %30 : vector<1x16x16x128xf32> to vector<256x128xf32>
    %c0_58 = arith.constant 0 : index
    %c2_59 = arith.constant 2 : index
    %c0_60 = arith.constant 0 : index
    %c0_61 = arith.constant 0 : index
    %32 = vector.load %arg2[%c0_58, %c2_59, %c0_60, %c0_61] : memref<2x9x128x128xf32, #tpu.memory_space<vmem>>, vector<1x1x128x128xf32>
    %33 = vector.shape_cast %32 : vector<1x1x128x128xf32> to vector<128x128xf32>
    %cst_62 = arith.constant dense<0.000000e+00> : vector<256x128xf32>
    %34 = tpu.matmul %31, %33, %cst_62 {dimension_numbers = #tpu.dot_dimension_numbers<[1], [0], [0], [1], [0, 0, 1, 1], [], []>} : vector<256x128xf32>, vector<128x128xf32>, vector<256x128xf32> -> vector<256x128xf32>
    %c0_63 = arith.constant 0 : index
    %c0_64 = arith.constant 0 : index
    %35 = vector.load %arg6[%c0_63, %c0_64] : memref<256x128xf32, #tpu.memory_space<vmem>>, vector<256x128xf32>
    %36 = arith.addf %35, %34 : vector<256x128xf32>
    %c0_65 = arith.constant 0 : index
    %c0_66 = arith.constant 0 : index
    %37 = vector.load %arg6[%c0_65, %c0_66] : memref<256x128xf32, #tpu.memory_space<vmem>>, vector<256x128xf32>
    tpu.vector_store %arg6[%c0_65, %c0_66], %36 {strides = array<i32>} : memref<256x128xf32, #tpu.memory_space<vmem>>, vector<256x128xf32>,
    %c0_67 = arith.constant 0 : index
    %c1_68 = arith.constant 1 : index
    %c0_69 = arith.constant 0 : index
    %c0_70 = arith.constant 0 : index
    %38 = vector.load %arg5[%c0_67, %c1_68, %c0_69, %c0_70] : memref<1x18x18x128xf32, #tpu.memory_space<vmem>>, vector<1x16x16x128xf32>
    %39 = vector.shape_cast %38 : vector<1x16x16x128xf32> to vector<256x128xf32>
    %c0_71 = arith.constant 0 : index
    %c3 = arith.constant 3 : index
    %c0_72 = arith.constant 0 : index
    %c0_73 = arith.constant 0 : index
    %40 = vector.load %arg2[%c0_71, %c3, %c0_72, %c0_73] : memref<2x9x128x128xf32, #tpu.memory_space<vmem>>, vector<1x1x128x128xf32>
    %41 = vector.shape_cast %40 : vector<1x1x128x128xf32> to vector<128x128xf32>
    %cst_74 = arith.constant dense<0.000000e+00> : vector<256x128xf32>
    %42 = tpu.matmul %39, %41, %cst_74 {dimension_numbers = #tpu.dot_dimension_numbers<[1], [0], [0], [1], [0, 0, 1, 1], [], []>} : vector<256x128xf32>, vector<128x128xf32>, vector<256x128xf32> -> vector<256x128xf32>
    %c0_75 = arith.constant 0 : index
    %c0_76 = arith.constant 0 : index
    %43 = vector.load %arg6[%c0_75, %c0_76] : memref<256x128xf32, #tpu.memory_space<vmem>>, vector<256x128xf32>
    %44 = arith.addf %43, %42 : vector<256x128xf32>
    %c0_77 = arith.constant 0 : index
    %c0_78 = arith.constant 0 : index
    %45 = vector.load %arg6[%c0_77, %c0_78] : memref<256x128xf32, #tpu.memory_space<vmem>>, vector<256x128xf32>
    tpu.vector_store %arg6[%c0_77, %c0_78], %44 {strides = array<i32>} : memref<256x128xf32, #tpu.memory_space<vmem>>, vector<256x128xf32>,
    %c0_79 = arith.constant 0 : index
    %c1_80 = arith.constant 1 : index
    %c1_81 = arith.constant 1 : index
    %c0_82 = arith.constant 0 : index
    %46 = vector.load %arg5[%c0_79, %c1_80, %c1_81, %c0_82] : memref<1x18x18x128xf32, #tpu.memory_space<vmem>>, vector<1x16x16x128xf32>
    %47 = vector.shape_cast %46 : vector<1x16x16x128xf32> to vector<256x128xf32>
    %c0_83 = arith.constant 0 : index
    %c4_84 = arith.constant 4 : index
    %c0_85 = arith.constant 0 : index
    %c0_86 = arith.constant 0 : index
    %48 = vector.load %arg2[%c0_83, %c4_84, %c0_85, %c0_86] : memref<2x9x128x128xf32, #tpu.memory_space<vmem>>, vector<1x1x128x128xf32>
    %49 = vector.shape_cast %48 : vector<1x1x128x128xf32> to vector<128x128xf32>
    %cst_87 = arith.constant dense<0.000000e+00> : vector<256x128xf32>
    %50 = tpu.matmul %47, %49, %cst_87 {dimension_numbers = #tpu.dot_dimension_numbers<[1], [0], [0], [1], [0, 0, 1, 1], [], []>} : vector<256x128xf32>, vector<128x128xf32>, vector<256x128xf32> -> vector<256x128xf32>
    %c0_88 = arith.constant 0 : index
    %c0_89 = arith.constant 0 : index
    %51 = vector.load %arg6[%c0_88, %c0_89] : memref<256x128xf32, #tpu.memory_space<vmem>>, vector<256x128xf32>
    %52 = arith.addf %51, %50 : vector<256x128xf32>
    %c0_90 = arith.constant 0 : index
    %c0_91 = arith.constant 0 : index
    %53 = vector.load %arg6[%c0_90, %c0_91] : memref<256x128xf32, #tpu.memory_space<vmem>>, vector<256x128xf32>
    tpu.vector_store %arg6[%c0_90, %c0_91], %52 {strides = array<i32>} : memref<256x128xf32, #tpu.memory_space<vmem>>, vector<256x128xf32>,
    %c0_92 = arith.constant 0 : index
    %c1_93 = arith.constant 1 : index
    %c2_94 = arith.constant 2 : index
    %c0_95 = arith.constant 0 : index
    %54 = vector.load %arg5[%c0_92, %c1_93, %c2_94, %c0_95] : memref<1x18x18x128xf32, #tpu.memory_space<vmem>>, vector<1x16x16x128xf32>
    %55 = vector.shape_cast %54 : vector<1x16x16x128xf32> to vector<256x128xf32>
    %c0_96 = arith.constant 0 : index
    %c5 = arith.constant 5 : index
    %c0_97 = arith.constant 0 : index
    %c0_98 = arith.constant 0 : index
    %56 = vector.load %arg2[%c0_96, %c5, %c0_97, %c0_98] : memref<2x9x128x128xf32, #tpu.memory_space<vmem>>, vector<1x1x128x128xf32>
    %57 = vector.shape_cast %56 : vector<1x1x128x128xf32> to vector<128x128xf32>
    %cst_99 = arith.constant dense<0.000000e+00> : vector<256x128xf32>
    %58 = tpu.matmul %55, %57, %cst_99 {dimension_numbers = #tpu.dot_dimension_numbers<[1], [0], [0], [1], [0, 0, 1, 1], [], []>} : vector<256x128xf32>, vector<128x128xf32>, vector<256x128xf32> -> vector<256x128xf32>
    %c0_100 = arith.constant 0 : index
    %c0_101 = arith.constant 0 : index
    %59 = vector.load %arg6[%c0_100, %c0_101] : memref<256x128xf32, #tpu.memory_space<vmem>>, vector<256x128xf32>
    %60 = arith.addf %59, %58 : vector<256x128xf32>
    %c0_102 = arith.constant 0 : index
    %c0_103 = arith.constant 0 : index
    %61 = vector.load %arg6[%c0_102, %c0_103] : memref<256x128xf32, #tpu.memory_space<vmem>>, vector<256x128xf32>
    tpu.vector_store %arg6[%c0_102, %c0_103], %60 {strides = array<i32>} : memref<256x128xf32, #tpu.memory_space<vmem>>, vector<256x128xf32>,
    %c0_104 = arith.constant 0 : index
    %c2_105 = arith.constant 2 : index
    %c0_106 = arith.constant 0 : index
    %c0_107 = arith.constant 0 : index
    %62 = vector.load %arg5[%c0_104, %c2_105, %c0_106, %c0_107] : memref<1x18x18x128xf32, #tpu.memory_space<vmem>>, vector<1x16x16x128xf32>
    %63 = vector.shape_cast %62 : vector<1x16x16x128xf32> to vector<256x128xf32>
    %c0_108 = arith.constant 0 : index
    %c6 = arith.constant 6 : index
    %c0_109 = arith.constant 0 : index
    %c0_110 = arith.constant 0 : index
    %64 = vector.load %arg2[%c0_108, %c6, %c0_109, %c0_110] : memref<2x9x128x128xf32, #tpu.memory_space<vmem>>, vector<1x1x128x128xf32>
    %65 = vector.shape_cast %64 : vector<1x1x128x128xf32> to vector<128x128xf32>
    %cst_111 = arith.constant dense<0.000000e+00> : vector<256x128xf32>
    %66 = tpu.matmul %63, %65, %cst_111 {dimension_numbers = #tpu.dot_dimension_numbers<[1], [0], [0], [1], [0, 0, 1, 1], [], []>} : vector<256x128xf32>, vector<128x128xf32>, vector<256x128xf32> -> vector<256x128xf32>
    %c0_112 = arith.constant 0 : index
    %c0_113 = arith.constant 0 : index
    %67 = vector.load %arg6[%c0_112, %c0_113] : memref<256x128xf32, #tpu.memory_space<vmem>>, vector<256x128xf32>
    %68 = arith.addf %67, %66 : vector<256x128xf32>
    %c0_114 = arith.constant 0 : index
    %c0_115 = arith.constant 0 : index
    %69 = vector.load %arg6[%c0_114, %c0_115] : memref<256x128xf32, #tpu.memory_space<vmem>>, vector<256x128xf32>
    tpu.vector_store %arg6[%c0_114, %c0_115], %68 {strides = array<i32>} : memref<256x128xf32, #tpu.memory_space<vmem>>, vector<256x128xf32>,
    %c0_116 = arith.constant 0 : index
    %c2_117 = arith.constant 2 : index
    %c1_118 = arith.constant 1 : index
    %c0_119 = arith.constant 0 : index
    %70 = vector.load %arg5[%c0_116, %c2_117, %c1_118, %c0_119] : memref<1x18x18x128xf32, #tpu.memory_space<vmem>>, vector<1x16x16x128xf32>
    %71 = vector.shape_cast %70 : vector<1x16x16x128xf32> to vector<256x128xf32>
    %c0_120 = arith.constant 0 : index
    %c7 = arith.constant 7 : index
    %c0_121 = arith.constant 0 : index
    %c0_122 = arith.constant 0 : index
    %72 = vector.load %arg2[%c0_120, %c7, %c0_121, %c0_122] : memref<2x9x128x128xf32, #tpu.memory_space<vmem>>, vector<1x1x128x128xf32>
    %73 = vector.shape_cast %72 : vector<1x1x128x128xf32> to vector<128x128xf32>
    %cst_123 = arith.constant dense<0.000000e+00> : vector<256x128xf32>
    %74 = tpu.matmul %71, %73, %cst_123 {dimension_numbers = #tpu.dot_dimension_numbers<[1], [0], [0], [1], [0, 0, 1, 1], [], []>} : vector<256x128xf32>, vector<128x128xf32>, vector<256x128xf32> -> vector<256x128xf32>
    %c0_124 = arith.constant 0 : index
    %c0_125 = arith.constant 0 : index
    %75 = vector.load %arg6[%c0_124, %c0_125] : memref<256x128xf32, #tpu.memory_space<vmem>>, vector<256x128xf32>
    %76 = arith.addf %75, %74 : vector<256x128xf32>
    %c0_126 = arith.constant 0 : index
    %c0_127 = arith.constant 0 : index
    %77 = vector.load %arg6[%c0_126, %c0_127] : memref<256x128xf32, #tpu.memory_space<vmem>>, vector<256x128xf32>
    tpu.vector_store %arg6[%c0_126, %c0_127], %76 {strides = array<i32>} : memref<256x128xf32, #tpu.memory_space<vmem>>, vector<256x128xf32>,
    %c0_128 = arith.constant 0 : index
    %c2_129 = arith.constant 2 : index
    %c2_130 = arith.constant 2 : index
    %c0_131 = arith.constant 0 : index
    %78 = vector.load %arg5[%c0_128, %c2_129, %c2_130, %c0_131] : memref<1x18x18x128xf32, #tpu.memory_space<vmem>>, vector<1x16x16x128xf32>
    %79 = vector.shape_cast %78 : vector<1x16x16x128xf32> to vector<256x128xf32>
    %c0_132 = arith.constant 0 : index
    %c8 = arith.constant 8 : index
    %c0_133 = arith.constant 0 : index
    %c0_134 = arith.constant 0 : index
    %80 = vector.load %arg2[%c0_132, %c8, %c0_133, %c0_134] : memref<2x9x128x128xf32, #tpu.memory_space<vmem>>, vector<1x1x128x128xf32>
    %81 = vector.shape_cast %80 : vector<1x1x128x128xf32> to vector<128x128xf32>
    %cst_135 = arith.constant dense<0.000000e+00> : vector<256x128xf32>
    %82 = tpu.matmul %79, %81, %cst_135 {dimension_numbers = #tpu.dot_dimension_numbers<[1], [0], [0], [1], [0, 0, 1, 1], [], []>} : vector<256x128xf32>, vector<128x128xf32>, vector<256x128xf32> -> vector<256x128xf32>
    %c0_136 = arith.constant 0 : index
    %c0_137 = arith.constant 0 : index
    %83 = vector.load %arg6[%c0_136, %c0_137] : memref<256x128xf32, #tpu.memory_space<vmem>>, vector<256x128xf32>
    %84 = arith.addf %83, %82 : vector<256x128xf32>
    %c0_138 = arith.constant 0 : index
    %c0_139 = arith.constant 0 : index
    %85 = vector.load %arg6[%c0_138, %c0_139] : memref<256x128xf32, #tpu.memory_space<vmem>>, vector<256x128xf32>
    tpu.vector_store %arg6[%c0_138, %c0_139], %84 {strides = array<i32>} : memref<256x128xf32, #tpu.memory_space<vmem>>, vector<256x128xf32>,
    %c0_140 = arith.constant 0 : index
    %c0_141 = arith.constant 0 : index
    %86 = vector.load %arg6[%c0_140, %c0_141] : memref<256x128xf32, #tpu.memory_space<vmem>>, vector<256x128xf32>
    %cst_142 = arith.constant 0.000000e+00 : f32
    %87 = vector.broadcast %cst_142 : f32 to vector<256x128xf32>
    %88 = arith.maximumf %86, %87 : vector<256x128xf32>
    %89 = vector.shape_cast %88 : vector<256x128xf32> to vector<1x16x16x128xf32>
    %c0_143 = arith.constant 0 : index
    %c1_144 = arith.constant 1 : index
    %c1_145 = arith.constant 1 : index
    %c0_146 = arith.constant 0 : index
    %90 = vector.load %arg5[%c0_143, %c1_144, %c1_145, %c0_146] : memref<1x18x18x128xf32, #tpu.memory_space<vmem>>, vector<1x16x16x128xf32>
    tpu.vector_store %arg5[%c0_143, %c1_144, %c1_145, %c0_146], %89 {strides = array<i32>} : memref<1x18x18x128xf32, #tpu.memory_space<vmem>>, vector<1x16x16x128xf32>,
    %c0_147 = arith.constant 0 : index
    %c0_148 = arith.constant 0 : index
    %c0_149 = arith.constant 0 : index
    %c0_150 = arith.constant 0 : index
    %91 = vector.load %arg5[%c0_147, %c0_148, %c0_149, %c0_150] : memref<1x18x18x128xf32, #tpu.memory_space<vmem>>, vector<1x16x16x128xf32>
    %92 = vector.shape_cast %91 : vector<1x16x16x128xf32> to vector<256x128xf32>
    %c1_151 = arith.constant 1 : index
    %c0_152 = arith.constant 0 : index
    %c0_153 = arith.constant 0 : index
    %c0_154 = arith.constant 0 : index
    %93 = vector.load %arg2[%c1_151, %c0_152, %c0_153, %c0_154] : memref<2x9x128x128xf32, #tpu.memory_space<vmem>>, vector<1x1x128x128xf32>
    %94 = vector.shape_cast %93 : vector<1x1x128x128xf32> to vector<128x128xf32>
    %cst_155 = arith.constant dense<0.000000e+00> : vector<256x128xf32>
    %95 = tpu.matmul %92, %94, %cst_155 {dimension_numbers = #tpu.dot_dimension_numbers<[1], [0], [0], [1], [0, 0, 1, 1], [], []>} : vector<256x128xf32>, vector<128x128xf32>, vector<256x128xf32> -> vector<256x128xf32>
    %c1_156 = arith.constant 1 : index
    %c0_157 = arith.constant 0 : index
    %c0_158 = arith.constant 0 : index
    %96 = vector.load %arg3[%c1_156, %c0_157, %c0_158] : memref<2x1x128xf32, #tpu.memory_space<vmem>>, vector<1x1x128xf32>
    %97 = vector.shape_cast %96 : vector<1x1x128xf32> to vector<1x128xf32>
    %98 = vector.broadcast %97 : vector<1x128xf32> to vector<256x128xf32>
    %99 = arith.addf %95, %98 : vector<256x128xf32>
    %c0_159 = arith.constant 0 : index
    %c0_160 = arith.constant 0 : index
    %100 = vector.load %arg6[%c0_159, %c0_160] : memref<256x128xf32, #tpu.memory_space<vmem>>, vector<256x128xf32>
    tpu.vector_store %arg6[%c0_159, %c0_160], %99 {strides = array<i32>} : memref<256x128xf32, #tpu.memory_space<vmem>>, vector<256x128xf32>,
    %c0_161 = arith.constant 0 : index
    %c0_162 = arith.constant 0 : index
    %c1_163 = arith.constant 1 : index
    %c0_164 = arith.constant 0 : index
    %101 = vector.load %arg5[%c0_161, %c0_162, %c1_163, %c0_164] : memref<1x18x18x128xf32, #tpu.memory_space<vmem>>, vector<1x16x16x128xf32>
    %102 = vector.shape_cast %101 : vector<1x16x16x128xf32> to vector<256x128xf32>
    %c1_165 = arith.constant 1 : index
    %c1_166 = arith.constant 1 : index
    %c0_167 = arith.constant 0 : index
    %c0_168 = arith.constant 0 : index
    %103 = vector.load %arg2[%c1_165, %c1_166, %c0_167, %c0_168] : memref<2x9x128x128xf32, #tpu.memory_space<vmem>>, vector<1x1x128x128xf32>
    %104 = vector.shape_cast %103 : vector<1x1x128x128xf32> to vector<128x128xf32>
    %cst_169 = arith.constant dense<0.000000e+00> : vector<256x128xf32>
    %105 = tpu.matmul %102, %104, %cst_169 {dimension_numbers = #tpu.dot_dimension_numbers<[1], [0], [0], [1], [0, 0, 1, 1], [], []>} : vector<256x128xf32>, vector<128x128xf32>, vector<256x128xf32> -> vector<256x128xf32>
    %c0_170 = arith.constant 0 : index
    %c0_171 = arith.constant 0 : index
    %106 = vector.load %arg6[%c0_170, %c0_171] : memref<256x128xf32, #tpu.memory_space<vmem>>, vector<256x128xf32>
    %107 = arith.addf %106, %105 : vector<256x128xf32>
    %c0_172 = arith.constant 0 : index
    %c0_173 = arith.constant 0 : index
    %108 = vector.load %arg6[%c0_172, %c0_173] : memref<256x128xf32, #tpu.memory_space<vmem>>, vector<256x128xf32>
    tpu.vector_store %arg6[%c0_172, %c0_173], %107 {strides = array<i32>} : memref<256x128xf32, #tpu.memory_space<vmem>>, vector<256x128xf32>,
    %c0_174 = arith.constant 0 : index
    %c0_175 = arith.constant 0 : index
    %c2_176 = arith.constant 2 : index
    %c0_177 = arith.constant 0 : index
    %109 = vector.load %arg5[%c0_174, %c0_175, %c2_176, %c0_177] : memref<1x18x18x128xf32, #tpu.memory_space<vmem>>, vector<1x16x16x128xf32>
    %110 = vector.shape_cast %109 : vector<1x16x16x128xf32> to vector<256x128xf32>
    %c1_178 = arith.constant 1 : index
    %c2_179 = arith.constant 2 : index
    %c0_180 = arith.constant 0 : index
    %c0_181 = arith.constant 0 : index
    %111 = vector.load %arg2[%c1_178, %c2_179, %c0_180, %c0_181] : memref<2x9x128x128xf32, #tpu.memory_space<vmem>>, vector<1x1x128x128xf32>
    %112 = vector.shape_cast %111 : vector<1x1x128x128xf32> to vector<128x128xf32>
    %cst_182 = arith.constant dense<0.000000e+00> : vector<256x128xf32>
    %113 = tpu.matmul %110, %112, %cst_182 {dimension_numbers = #tpu.dot_dimension_numbers<[1], [0], [0], [1], [0, 0, 1, 1], [], []>} : vector<256x128xf32>, vector<128x128xf32>, vector<256x128xf32> -> vector<256x128xf32>
    %c0_183 = arith.constant 0 : index
    %c0_184 = arith.constant 0 : index
    %114 = vector.load %arg6[%c0_183, %c0_184] : memref<256x128xf32, #tpu.memory_space<vmem>>, vector<256x128xf32>
    %115 = arith.addf %114, %113 : vector<256x128xf32>
    %c0_185 = arith.constant 0 : index
    %c0_186 = arith.constant 0 : index
    %116 = vector.load %arg6[%c0_185, %c0_186] : memref<256x128xf32, #tpu.memory_space<vmem>>, vector<256x128xf32>
    tpu.vector_store %arg6[%c0_185, %c0_186], %115 {strides = array<i32>} : memref<256x128xf32, #tpu.memory_space<vmem>>, vector<256x128xf32>,
    %c0_187 = arith.constant 0 : index
    %c1_188 = arith.constant 1 : index
    %c0_189 = arith.constant 0 : index
    %c0_190 = arith.constant 0 : index
    %117 = vector.load %arg5[%c0_187, %c1_188, %c0_189, %c0_190] : memref<1x18x18x128xf32, #tpu.memory_space<vmem>>, vector<1x16x16x128xf32>
    %118 = vector.shape_cast %117 : vector<1x16x16x128xf32> to vector<256x128xf32>
    %c1_191 = arith.constant 1 : index
    %c3_192 = arith.constant 3 : index
    %c0_193 = arith.constant 0 : index
    %c0_194 = arith.constant 0 : index
    %119 = vector.load %arg2[%c1_191, %c3_192, %c0_193, %c0_194] : memref<2x9x128x128xf32, #tpu.memory_space<vmem>>, vector<1x1x128x128xf32>
    %120 = vector.shape_cast %119 : vector<1x1x128x128xf32> to vector<128x128xf32>
    %cst_195 = arith.constant dense<0.000000e+00> : vector<256x128xf32>
    %121 = tpu.matmul %118, %120, %cst_195 {dimension_numbers = #tpu.dot_dimension_numbers<[1], [0], [0], [1], [0, 0, 1, 1], [], []>} : vector<256x128xf32>, vector<128x128xf32>, vector<256x128xf32> -> vector<256x128xf32>
    %c0_196 = arith.constant 0 : index
    %c0_197 = arith.constant 0 : index
    %122 = vector.load %arg6[%c0_196, %c0_197] : memref<256x128xf32, #tpu.memory_space<vmem>>, vector<256x128xf32>
    %123 = arith.addf %122, %121 : vector<256x128xf32>
    %c0_198 = arith.constant 0 : index
    %c0_199 = arith.constant 0 : index
    %124 = vector.load %arg6[%c0_198, %c0_199] : memref<256x128xf32, #tpu.memory_space<vmem>>, vector<256x128xf32>
    tpu.vector_store %arg6[%c0_198, %c0_199], %123 {strides = array<i32>} : memref<256x128xf32, #tpu.memory_space<vmem>>, vector<256x128xf32>,
    %c0_200 = arith.constant 0 : index
    %c1_201 = arith.constant 1 : index
    %c1_202 = arith.constant 1 : index
    %c0_203 = arith.constant 0 : index
    %125 = vector.load %arg5[%c0_200, %c1_201, %c1_202, %c0_203] : memref<1x18x18x128xf32, #tpu.memory_space<vmem>>, vector<1x16x16x128xf32>
    %126 = vector.shape_cast %125 : vector<1x16x16x128xf32> to vector<256x128xf32>
    %c1_204 = arith.constant 1 : index
    %c4_205 = arith.constant 4 : index
    %c0_206 = arith.constant 0 : index
    %c0_207 = arith.constant 0 : index
    %127 = vector.load %arg2[%c1_204, %c4_205, %c0_206, %c0_207] : memref<2x9x128x128xf32, #tpu.memory_space<vmem>>, vector<1x1x128x128xf32>
    %128 = vector.shape_cast %127 : vector<1x1x128x128xf32> to vector<128x128xf32>
    %cst_208 = arith.constant dense<0.000000e+00> : vector<256x128xf32>
    %129 = tpu.matmul %126, %128, %cst_208 {dimension_numbers = #tpu.dot_dimension_numbers<[1], [0], [0], [1], [0, 0, 1, 1], [], []>} : vector<256x128xf32>, vector<128x128xf32>, vector<256x128xf32> -> vector<256x128xf32>
    %c0_209 = arith.constant 0 : index
    %c0_210 = arith.constant 0 : index
    %130 = vector.load %arg6[%c0_209, %c0_210] : memref<256x128xf32, #tpu.memory_space<vmem>>, vector<256x128xf32>
    %131 = arith.addf %130, %129 : vector<256x128xf32>
    %c0_211 = arith.constant 0 : index
    %c0_212 = arith.constant 0 : index
    %132 = vector.load %arg6[%c0_211, %c0_212] : memref<256x128xf32, #tpu.memory_space<vmem>>, vector<256x128xf32>
    tpu.vector_store %arg6[%c0_211, %c0_212], %131 {strides = array<i32>} : memref<256x128xf32, #tpu.memory_space<vmem>>, vector<256x128xf32>,
    %c0_213 = arith.constant 0 : index
    %c1_214 = arith.constant 1 : index
    %c2_215 = arith.constant 2 : index
    %c0_216 = arith.constant 0 : index
    %133 = vector.load %arg5[%c0_213, %c1_214, %c2_215, %c0_216] : memref<1x18x18x128xf32, #tpu.memory_space<vmem>>, vector<1x16x16x128xf32>
    %134 = vector.shape_cast %133 : vector<1x16x16x128xf32> to vector<256x128xf32>
    %c1_217 = arith.constant 1 : index
    %c5_218 = arith.constant 5 : index
    %c0_219 = arith.constant 0 : index
    %c0_220 = arith.constant 0 : index
    %135 = vector.load %arg2[%c1_217, %c5_218, %c0_219, %c0_220] : memref<2x9x128x128xf32, #tpu.memory_space<vmem>>, vector<1x1x128x128xf32>
    %136 = vector.shape_cast %135 : vector<1x1x128x128xf32> to vector<128x128xf32>
    %cst_221 = arith.constant dense<0.000000e+00> : vector<256x128xf32>
    %137 = tpu.matmul %134, %136, %cst_221 {dimension_numbers = #tpu.dot_dimension_numbers<[1], [0], [0], [1], [0, 0, 1, 1], [], []>} : vector<256x128xf32>, vector<128x128xf32>, vector<256x128xf32> -> vector<256x128xf32>
    %c0_222 = arith.constant 0 : index
    %c0_223 = arith.constant 0 : index
    %138 = vector.load %arg6[%c0_222, %c0_223] : memref<256x128xf32, #tpu.memory_space<vmem>>, vector<256x128xf32>
    %139 = arith.addf %138, %137 : vector<256x128xf32>
    %c0_224 = arith.constant 0 : index
    %c0_225 = arith.constant 0 : index
    %140 = vector.load %arg6[%c0_224, %c0_225] : memref<256x128xf32, #tpu.memory_space<vmem>>, vector<256x128xf32>
    tpu.vector_store %arg6[%c0_224, %c0_225], %139 {strides = array<i32>} : memref<256x128xf32, #tpu.memory_space<vmem>>, vector<256x128xf32>,
    %c0_226 = arith.constant 0 : index
    %c2_227 = arith.constant 2 : index
    %c0_228 = arith.constant 0 : index
    %c0_229 = arith.constant 0 : index
    %141 = vector.load %arg5[%c0_226, %c2_227, %c0_228, %c0_229] : memref<1x18x18x128xf32, #tpu.memory_space<vmem>>, vector<1x16x16x128xf32>
    %142 = vector.shape_cast %141 : vector<1x16x16x128xf32> to vector<256x128xf32>
    %c1_230 = arith.constant 1 : index
    %c6_231 = arith.constant 6 : index
    %c0_232 = arith.constant 0 : index
    %c0_233 = arith.constant 0 : index
    %143 = vector.load %arg2[%c1_230, %c6_231, %c0_232, %c0_233] : memref<2x9x128x128xf32, #tpu.memory_space<vmem>>, vector<1x1x128x128xf32>
    %144 = vector.shape_cast %143 : vector<1x1x128x128xf32> to vector<128x128xf32>
    %cst_234 = arith.constant dense<0.000000e+00> : vector<256x128xf32>
    %145 = tpu.matmul %142, %144, %cst_234 {dimension_numbers = #tpu.dot_dimension_numbers<[1], [0], [0], [1], [0, 0, 1, 1], [], []>} : vector<256x128xf32>, vector<128x128xf32>, vector<256x128xf32> -> vector<256x128xf32>
    %c0_235 = arith.constant 0 : index
    %c0_236 = arith.constant 0 : index
    %146 = vector.load %arg6[%c0_235, %c0_236] : memref<256x128xf32, #tpu.memory_space<vmem>>, vector<256x128xf32>
    %147 = arith.addf %146, %145 : vector<256x128xf32>
    %c0_237 = arith.constant 0 : index
    %c0_238 = arith.constant 0 : index
    %148 = vector.load %arg6[%c0_237, %c0_238] : memref<256x128xf32, #tpu.memory_space<vmem>>, vector<256x128xf32>
    tpu.vector_store %arg6[%c0_237, %c0_238], %147 {strides = array<i32>} : memref<256x128xf32, #tpu.memory_space<vmem>>, vector<256x128xf32>,
    %c0_239 = arith.constant 0 : index
    %c2_240 = arith.constant 2 : index
    %c1_241 = arith.constant 1 : index
    %c0_242 = arith.constant 0 : index
    %149 = vector.load %arg5[%c0_239, %c2_240, %c1_241, %c0_242] : memref<1x18x18x128xf32, #tpu.memory_space<vmem>>, vector<1x16x16x128xf32>
    %150 = vector.shape_cast %149 : vector<1x16x16x128xf32> to vector<256x128xf32>
    %c1_243 = arith.constant 1 : index
    %c7_244 = arith.constant 7 : index
    %c0_245 = arith.constant 0 : index
    %c0_246 = arith.constant 0 : index
    %151 = vector.load %arg2[%c1_243, %c7_244, %c0_245, %c0_246] : memref<2x9x128x128xf32, #tpu.memory_space<vmem>>, vector<1x1x128x128xf32>
    %152 = vector.shape_cast %151 : vector<1x1x128x128xf32> to vector<128x128xf32>
    %cst_247 = arith.constant dense<0.000000e+00> : vector<256x128xf32>
    %153 = tpu.matmul %150, %152, %cst_247 {dimension_numbers = #tpu.dot_dimension_numbers<[1], [0], [0], [1], [0, 0, 1, 1], [], []>} : vector<256x128xf32>, vector<128x128xf32>, vector<256x128xf32> -> vector<256x128xf32>
    %c0_248 = arith.constant 0 : index
    %c0_249 = arith.constant 0 : index
    %154 = vector.load %arg6[%c0_248, %c0_249] : memref<256x128xf32, #tpu.memory_space<vmem>>, vector<256x128xf32>
    %155 = arith.addf %154, %153 : vector<256x128xf32>
    %c0_250 = arith.constant 0 : index
    %c0_251 = arith.constant 0 : index
    %156 = vector.load %arg6[%c0_250, %c0_251] : memref<256x128xf32, #tpu.memory_space<vmem>>, vector<256x128xf32>
    tpu.vector_store %arg6[%c0_250, %c0_251], %155 {strides = array<i32>} : memref<256x128xf32, #tpu.memory_space<vmem>>, vector<256x128xf32>,
    %c0_252 = arith.constant 0 : index
    %c2_253 = arith.constant 2 : index
    %c2_254 = arith.constant 2 : index
    %c0_255 = arith.constant 0 : index
    %157 = vector.load %arg5[%c0_252, %c2_253, %c2_254, %c0_255] : memref<1x18x18x128xf32, #tpu.memory_space<vmem>>, vector<1x16x16x128xf32>
    %158 = vector.shape_cast %157 : vector<1x16x16x128xf32> to vector<256x128xf32>
    %c1_256 = arith.constant 1 : index
    %c8_257 = arith.constant 8 : index
    %c0_258 = arith.constant 0 : index
    %c0_259 = arith.constant 0 : index
    %159 = vector.load %arg2[%c1_256, %c8_257, %c0_258, %c0_259] : memref<2x9x128x128xf32, #tpu.memory_space<vmem>>, vector<1x1x128x128xf32>
    %160 = vector.shape_cast %159 : vector<1x1x128x128xf32> to vector<128x128xf32>
    %cst_260 = arith.constant dense<0.000000e+00> : vector<256x128xf32>
    %161 = tpu.matmul %158, %160, %cst_260 {dimension_numbers = #tpu.dot_dimension_numbers<[1], [0], [0], [1], [0, 0, 1, 1], [], []>} : vector<256x128xf32>, vector<128x128xf32>, vector<256x128xf32> -> vector<256x128xf32>
    %c0_261 = arith.constant 0 : index
    %c0_262 = arith.constant 0 : index
    %162 = vector.load %arg6[%c0_261, %c0_262] : memref<256x128xf32, #tpu.memory_space<vmem>>, vector<256x128xf32>
    %163 = arith.addf %162, %161 : vector<256x128xf32>
    %c0_263 = arith.constant 0 : index
    %c0_264 = arith.constant 0 : index
    %164 = vector.load %arg6[%c0_263, %c0_264] : memref<256x128xf32, #tpu.memory_space<vmem>>, vector<256x128xf32>
    tpu.vector_store %arg6[%c0_263, %c0_264], %163 {strides = array<i32>} : memref<256x128xf32, #tpu.memory_space<vmem>>, vector<256x128xf32>,
    %c0_265 = arith.constant 0 : index
    %c0_266 = arith.constant 0 : index
    %165 = vector.load %arg6[%c0_265, %c0_266] : memref<256x128xf32, #tpu.memory_space<vmem>>, vector<256x128xf32>
    %cst_267 = arith.constant 0.000000e+00 : f32
    %166 = vector.broadcast %cst_267 : f32 to vector<256x128xf32>
    %167 = arith.maximumf %165, %166 : vector<256x128xf32>
    %168 = vector.shape_cast %167 : vector<256x128xf32> to vector<1x16x16x128xf32>
    %c0_268 = arith.constant 0 : index
    %c1_269 = arith.constant 1 : index
    %c1_270 = arith.constant 1 : index
    %c0_271 = arith.constant 0 : index
    %169 = vector.load %arg5[%c0_268, %c1_269, %c1_270, %c0_271] : memref<1x18x18x128xf32, #tpu.memory_space<vmem>>, vector<1x16x16x128xf32>
    tpu.vector_store %arg5[%c0_268, %c1_269, %c1_270, %c0_271], %168 {strides = array<i32>} : memref<1x18x18x128xf32, #tpu.memory_space<vmem>>, vector<1x16x16x128xf32>,
    %c0_272 = arith.constant 0 : index
    %c0_273 = arith.constant 0 : index
    %c0_274 = arith.constant 0 : index
    %c0_275 = arith.constant 0 : index
    %170 = vector.load %arg5[%c0_272, %c0_273, %c0_274, %c0_275] : memref<1x18x18x128xf32, #tpu.memory_space<vmem>>, vector<1x17x17x128xf32>
    %c0_276 = arith.constant 0 : index
    %c0_277 = arith.constant 0 : index
    %c1_278 = arith.constant 1 : index
    %c0_279 = arith.constant 0 : index
    %171 = vector.load %arg5[%c0_276, %c0_277, %c1_278, %c0_279] : memref<1x18x18x128xf32, #tpu.memory_space<vmem>>, vector<1x17x17x128xf32>
    %172 = arith.maximumf %170, %171 : vector<1x17x17x128xf32>
    %c0_280 = arith.constant 0 : index
    %c1_281 = arith.constant 1 : index
    %c0_282 = arith.constant 0 : index
    %c0_283 = arith.constant 0 : index
    %173 = vector.load %arg5[%c0_280, %c1_281, %c0_282, %c0_283] : memref<1x18x18x128xf32, #tpu.memory_space<vmem>>, vector<1x17x17x128xf32>
    %c0_284 = arith.constant 0 : index
    %c1_285 = arith.constant 1 : index
    %c1_286 = arith.constant 1 : index
    %c0_287 = arith.constant 0 : index
    %174 = vector.load %arg5[%c0_284, %c1_285, %c1_286, %c0_287] : memref<1x18x18x128xf32, #tpu.memory_space<vmem>>, vector<1x17x17x128xf32>
    %175 = arith.maximumf %173, %174 : vector<1x17x17x128xf32>
    %176 = arith.maximumf %172, %175 : vector<1x17x17x128xf32>
    %c0_288 = arith.constant 0 : index
    %c0_289 = arith.constant 0 : index
    %c0_290 = arith.constant 0 : index
    %c0_291 = arith.constant 0 : index
    %177 = vector.load %arg4[%c0_288, %c0_289, %c0_290, %c0_291] : memref<1x17x17x128xf32, #tpu.memory_space<vmem>>, vector<1x17x17x128xf32>
    tpu.vector_store %arg4[%c0_288, %c0_289, %c0_290, %c0_291], %176 {strides = array<i32>} : memref<1x17x17x128xf32, #tpu.memory_space<vmem>>, vector<1x17x17x128xf32>,
    return
  }
  func.func @transform_0(%arg0: i32) -> (i32, i32, i32, i32) {
    %c0_i32 = arith.constant 0 : i32
    %c0_i32_0 = arith.constant 0 : i32
    %c0_i32_1 = arith.constant 0 : i32
    %c0_i32_2 = arith.constant 0 : i32
    return %arg0, %c0_i32, %c0_i32_0, %c0_i32_1 : i32, i32, i32, i32
  }
  func.func @transform_1(%arg0: i32) -> (i32, i32, i32, i32) {
    %c0_i32 = arith.constant 0 : i32
    %c0_i32_0 = arith.constant 0 : i32
    %c0_i32_1 = arith.constant 0 : i32
    %c0_i32_2 = arith.constant 0 : i32
    %c0_i32_3 = arith.constant 0 : i32
    return %c0_i32, %c0_i32_0, %c0_i32_1, %c0_i32_2 : i32, i32, i32, i32
  }
  func.func @transform_2(%arg0: i32) -> (i32, i32, i32) {
    %c0_i32 = arith.constant 0 : i32
    %c0_i32_0 = arith.constant 0 : i32
    %c0_i32_1 = arith.constant 0 : i32
    %c0_i32_2 = arith.constant 0 : i32
    return %c0_i32, %c0_i32_0, %c0_i32_1 : i32, i32, i32
  }
  func.func @transform_3(%arg0: i32) -> (i32, i32, i32, i32) {
    %c0_i32 = arith.constant 0 : i32
    %c0_i32_0 = arith.constant 0 : i32
    %c0_i32_1 = arith.constant 0 : i32
    %c0_i32_2 = arith.constant 0 : i32
    return %arg0, %c0_i32, %c0_i32_0, %c0_i32_1 : i32, i32, i32, i32
  }
}

</mosaic_0001>

<bundles_post_ra>
// kernel: tpu_custom_call.1
= control target key start
LH: loop header
LB: loop body
LE: loop exit
PB: predicated region body
PF: predicated region fallthrough
CT: control target
= control target key end

     0   :  { %8 = vsyncpa [#allocation5], 0  ;;  %s12616_s0 = inlined_call_operand.vmem [shape: f32[2,16,16,4], index: 0, kind: input, shape index: {}]   ;;  %s12617_s1 = inlined_call_operand.hbm [shape: f32[2,9,128,128], index: 1, kind: input, shape index: {}]   ;;  %s12618_s2 = inlined_call_operand.hbm [shape: f32[2,1,128], index: 2, kind: input, shape index: {}]   ;;  %s12619_s3 = inlined_call_operand.vmem [shape: f32[2,17,17,128], index: 3, kind: output, shape index: {}]  }
   0x1   :  { %9 = vsyncpa [#allocation7], 0  ;;  %s11183_s12 = smov 0  }
   0x2 LB: > { %s11156_s13 = smov [#allocation4]   ;;  %s11189_s15 = sadd.s32 4294967295, %s11154_s12   ;;  %s11154_s12 = sphi %s11183_s12, %s15_s12  }
   0x3   : > { %s126_s14 = sshll.u32 %s11156_s13, 4  ;;  %p7569_p0 = scmp.ge.s32.totalorder %s11154_s12, 1  ;;  %s127_s14 = int_to_ptr.vmem [resolvable:$true] %s126_s14 }
   0x4   : > { %p114_p1 = scmp.lt.s32.totalorder %s11154_s12, 3  ;;  %p12620_p3 = scmp.eq.s32.totalorder %s11189_s15, 0 }
   0x5   : > { %s11157_s17 = smov [#allocation6]   ;;  %s11084_s22 = scalar_lea.hbm %s12617_s1, 36864 }
   0x6   : > { %p11193_p2 = pnand %p7569_p0, %p114_p1  ;;  %s139_s18 = sshll.u32 %s11157_s17, 4  ;;  %s11206_s18 = int_to_ptr.vmem [resolvable:$true] %s139_s18 }
   0x7   : > { %p11085_p6 = scmp.ne.s32.totalorder %s12617_s1, %s11084_s22  ;;  %p11091_p10 = scmp.lt.u32.totalorder %s11084_s22, %s12617_s1 }
   0x8   : > { %s12698_s16 = scalar_select %p11193_p2, 1, 0 }
   0x9   : > { %p11049_p4 = pneg %p11193_p2 }
   0xb   : > { %p11202_p5 = pnand %p12620_p3, %p11049_p4 }
   0xd   : > { %p11086_p7 = pneg %p11202_p5 }
   0xf   : > { %p11087_p8 = pnand %p11086_p7, %p11085_p6 }
  0x11   : > { %p11088_p9 = pneg %p11087_p8 }
  0x13   : > { %p11093_p11 = pnand %p11091_p10, %p11088_p9 }
  0x15   : > { %11096 = shalt.err (!%p11093_p11)
}
  0x16   : > { %s11097_s27 = scalar_lea.vmem %s127_s14, 36864  ;;  %p11105_p1 = scmp.lt.s32.totalorder %s127_s14, %s127_s14 }
  0x17   : > { %p11098_p12 = scmp.ne.s32.totalorder %s127_s14, %s11097_s27  ;;  %p11106_p4 = scmp.lt.s32.totalorder %s11097_s27, %s11097_s27 }
  0x19   : > { %p11100_p13 = pnand %p11098_p12, %p11086_p7  ;;  %p11107_p3 = por %p11106_p4, %p11105_p1 }
  0x1b   : > { %p11101_p0 = pneg %p11100_p13 }
  0x1d   : > { %p11108_p2 = pnand %p11107_p3, %p11101_p0 }
  0x1f   : > { %11111 = shalt.err (!%p11108_p2)
}
  0x20   : > { %s11158_s28 = smov 128   ;;  %s11159_s29 = smov 8  }
  0x21   : > { %11052 = dma.hbm_to_vmem [thread:$0]  (!%p11202_p5), %s12617_s1, 36864, %s127_s14, [#allocation5], %s11158_s28, %s11158_s28, %s11159_s29  }
  0x22   : > { %s11112_s7 = scalar_lea.hbm %s12618_s2, 32 }
  0x23   : > { %p11113_p6 = scmp.ne.s32.totalorder %s12618_s2, %s11112_s7  ;;  %p11119_p8 = scmp.lt.u32.totalorder %s11112_s7, %s12618_s2 }
  0x25   : > { %p11115_p2 = pnand %p11113_p6, %p11086_p7 }
  0x27   : > { %p11116_p3 = pneg %p11115_p2 }
  0x29   : > { %p11121_p9 = pnand %p11119_p8, %p11116_p3 }
  0x2b   : > { %11124 = shalt.err (!%p11121_p9)
}
  0x2c   : > { %s11125_s13 = scalar_lea.vmem %s11206_s18, 32  ;;  %p11133_p13 = scmp.lt.s32.totalorder %s11206_s18, %s11206_s18 }
  0x2d   : > { %p11126_p10 = scmp.ne.s32.totalorder %s11206_s18, %s11125_s13  ;;  %p11134_p0 = scmp.lt.s32.totalorder %s11125_s13, %s11125_s13 }
  0x2f   : > { %p11128_p11 = pnand %p11126_p10, %p11086_p7  ;;  %p11135_p1 = por %p11134_p0, %p11133_p13 }
  0x31   : > { %p11129_p12 = pneg %p11128_p11 }
  0x33   : > { %p11136_p4 = pnand %p11135_p1, %p11129_p12 }
  0x35   : > { %11139 = shalt.err (!%p11136_p4)
}
  0x36   : > { %s11160_s14 = smov 16   ;;  %s11161_s17 = smov 1  }
  0x37   : > { %11055 = dma.hbm_to_vmem [thread:$0]  (!%p11202_p5), %s12618_s2, 32, %s11206_s18, [#allocation7], %s11160_s14, %s11160_s14, %s11161_s17  }
  0x38   : > { %p12700_p6 = scmp.ne.s32.totalorder %s12698_s16, 0 }
  0x3a   : > { %163 = sbr.rel (%p12700_p6) target bundleno = 1646 (0x66e), region = 32 }
  0x41   : > { %p12701_p7 = scmp.eq.s32.totalorder %s11189_s15, 0 }
  0x43   : > { %11145 = dma.done.wait (%p12701_p7), [#allocation5], 36864   ;;  %p12702_p2 = pmov %p12701_p7 }
  0x45   : > { %11147 = vsyncadd (%p12702_p2), [#allocation5], 4294930432  ;;  %p12703_p3 = pmov %p12702_p2 }
  0x46   : > { %p12704_p8 = pmov %p12702_p2 }
  0x47   : > { %11149 = dma.done.wait (%p12703_p3), [#allocation7], 32  }
  0x48   : > { %11151 = vsyncadd (%p12704_p8), [#allocation7], 4294967264  ;;  %p191_p9 = scmp.lt.s32.totalorder %s11189_s15, 1  ;;  %v11162_v0 = vmov 0.0   ;;  %v375_v1 = vld [vmem:[#allocation4] sm:$0xff]  ;;  %v376_v2 = vld [vmem:[#allocation4 + $0x8] sm:$0xff] }
  0x49   : > { %201 = vst [vmem:[#allocation2] sm:$0xff] %v11162_v0  ;;  %202 = vst [vmem:[#allocation2 + $0x8] sm:$0xff] %v11162_v0  ;;  %v377_v3 = vld [vmem:[#allocation4 + $0x10] sm:$0xff]  ;;  %v9888_v4 = vpack.c.bf16 %v376_v2, %v375_v1  ;;  %v378_v5 = vld [vmem:[#allocation4 + $0x18] sm:$0xff]  ;;  %vm277_vm0 = vcmask 31744   ;;  %vm310_vm1 = vcmask 1047584  }
  0x4a   : > { %203 = vst [vmem:[#allocation2 + $0x10] sm:$0x3] %v11162_v0  ;;  %205 = vst [vmem:[#allocation2 + $0x198] sm:$0xff] %v11162_v0  ;;  %s12845_s15 = smov (!%p191_p9, %s11189_s15), 1  ;;  %v9892_v6 = vpack.c.bf16 %v378_v5, %v377_v3  ;;  %v379_v7 = vld [vmem:[#allocation4 + $0x20] sm:$0xff]  ;;  %v380_v8 = vld [vmem:[#allocation4 + $0x28] sm:$0xff] }
  0x4b   : > { %206 = vst [vmem:[#allocation2 + $0x1a0] sm:$0xff] %v11162_v0  ;;  %207 = vst [vmem:[#allocation2 + $0x1a8] sm:$0x3] %v11162_v0  ;;  %s7583_s16 = sshll.u32 %s12845_s15, 8  ;;  %9889 = vmatprep.subr.bf16.mxu0 %v9888_v4  ;;  %v9896_v9 = vpack.c.bf16 %v380_v8, %v379_v7  ;;  %v381_v11 = vld [vmem:[#allocation4 + $0x30] sm:$0xff]  ;;  %v382_v12 = vld [vmem:[#allocation4 + $0x38] sm:$0xff] }
  0x4c   : > { %209 = vst [vmem:[#allocation2 + $0x18] sm:$0x1] %v11162_v0  ;;  %210 = vst [vmem:[#allocation2 + $0x30] sm:$0x1] %v11162_v0  ;;  %s11317_s22 = scalar_lea.vmem %s12616_s0, %s7583_s16  ;;  %9891 = vmatpush3.bf16.msra.mxu0 %v9888_v4  ;;  %v9900_v18 = vpack.c.bf16 %v382_v12, %v381_v11  ;;  %v383_v22 = vld [vmem:[#allocation4 + $0x40] sm:$0xff]  ;;  %v384_v23 = vld [vmem:[#allocation4 + $0x48] sm:$0xff] }
  0x4d   : > { %211 = vst [vmem:[#allocation2 + $0x48] sm:$0x1] %v11162_v0  ;;  %212 = vst [vmem:[#allocation2 + $0x60] sm:$0x1] %v11162_v0  ;;  %9893 = vmatprep.subr.bf16.mxu0 %v9892_v6  ;;  %v244_v13 = vld [vmem:[%s11317_s22] sm:$0xff]  ;;  %v245_v14 = vld [vmem:[%s11317_s22 + $0x8] sm:$0xff]  ;;  %v9904_v29 = vpack.c.bf16 %v384_v23, %v383_v22 }
  0x4e   : > { %213 = vst [vmem:[#allocation2 + $0x78] sm:$0x1] %v11162_v0  ;;  %214 = vst [vmem:[#allocation2 + $0x90] sm:$0x1] %v11162_v0  ;;  %v246_v15 = vld [vmem:[%s11317_s22 + $0x10] sm:$0xff]  ;;  %v247_v16 = vld [vmem:[%s11317_s22 + $0x18] sm:$0xff] }
  0x4f   : > { %215 = vst [vmem:[#allocation2 + $0xa8] sm:$0x1] %v11162_v0  ;;  %216 = vst [vmem:[#allocation2 + $0xc0] sm:$0x1] %v11162_v0  ;;  %v248_v17 = vld [vmem:[%s11317_s22 + $0x20] sm:$0xff]  ;;  %v249_v19 = vld [vmem:[%s11317_s22 + $0x28] sm:$0xff] }
  0x50   : > { %217 = vst [vmem:[#allocation2 + $0xd8] sm:$0x1] %v11162_v0  ;;  %218 = vst [vmem:[#allocation2 + $0xf0] sm:$0x1] %v11162_v0  ;;  %9895 = vmatpush3.bf16.msra.mxu0 %v9892_v6  ;;  %v250_v20 = vld [vmem:[%s11317_s22 + $0x30] sm:$0xff]  ;;  %v251_v21 = vld [vmem:[%s11317_s22 + $0x38] sm:$0xff] }
  0x51   : > { %219 = vst [vmem:[#allocation2 + $0x108] sm:$0x1] %v11162_v0  ;;  %220 = vst [vmem:[#allocation2 + $0x120] sm:$0x1] %v11162_v0  ;;  %9897 = vmatprep.subr.bf16.mxu0 %v9896_v9  ;;  %v252_v24 = vld [vmem:[%s11317_s22 + $0x40] sm:$0xff]  ;;  %v253_v25 = vld [vmem:[%s11317_s22 + $0x48] sm:$0xff] }
  0x52   : > { %221 = vst [vmem:[#allocation2 + $0x138] sm:$0x1] %v11162_v0  ;;  %222 = vst [vmem:[#allocation2 + $0x150] sm:$0x1] %v11162_v0  ;;  %v254_v26 = vld [vmem:[%s11317_s22 + $0x50] sm:$0xff]  ;;  %v255_v27 = vld [vmem:[%s11317_s22 + $0x58] sm:$0xff] }
  0x53   : > { %223 = vst [vmem:[#allocation2 + $0x168] sm:$0x1] %v11162_v0  ;;  %224 = vst [vmem:[#allocation2 + $0x180] sm:$0x1] %v11162_v0  ;;  %v256_v28 = vld [vmem:[%s11317_s22 + $0x60] sm:$0xff]  ;;  %v257_v30 = vld [vmem:[%s11317_s22 + $0x68] sm:$0xff] }
  0x54   : > { %227 = vst [vmem:[#allocation2 + $0x29] sm:$0x1] %v11162_v0  ;;  %228 = vst [vmem:[#allocation2 + $0x41] sm:$0x1] %v11162_v0  ;;  %9899 = vmatpush3.bf16.msra.mxu0 %v9896_v9  ;;  %v258_v31 = vld [vmem:[%s11317_s22 + $0x70] sm:$0xff]  ;;  %v259_v32 = vld [vmem:[%s11317_s22 + $0x78] sm:$0xff] }
  0x55   : > { %229 = vst [vmem:[#allocation2 + $0x59] sm:$0x1] %v11162_v0  ;;  %230 = vst [vmem:[#allocation2 + $0x71] sm:$0x1] %v11162_v0  ;;  %9901 = vmatprep.subr.bf16.mxu0 %v9900_v18  ;;  %v385_v33 = vld [vmem:[#allocation4 + $0x50] sm:$0xff]  ;;  %v386_v34 = vld [vmem:[#allocation4 + $0x58] sm:$0xff] }
  0x56   : > { %231 = vst [vmem:[#allocation2 + $0x89] sm:$0x1] %v11162_v0  ;;  %232 = vst [vmem:[#allocation2 + $0xa1] sm:$0x1] %v11162_v0  ;;  %v260_v35 = vld [vmem:[%s11317_s22 + $0x80] sm:$0xff]  ;;  %v261_v36 = vld [vmem:[%s11317_s22 + $0x88] sm:$0xff]  ;;  %v9908_v38 = vpack.c.bf16 %v386_v34, %v385_v33 }
  0x57   : > { %233 = vst [vmem:[#allocation2 + $0xb9] sm:$0x1] %v11162_v0  ;;  %234 = vst [vmem:[#allocation2 + $0xd1] sm:$0x1] %v11162_v0  ;;  %v262_v37 = vld [vmem:[%s11317_s22 + $0x90] sm:$0xff]  ;;  %v263_v39 = vld [vmem:[%s11317_s22 + $0x98] sm:$0xff] }
  0x58   : > { %235 = vst [vmem:[#allocation2 + $0xe9] sm:$0x1] %v11162_v0  ;;  %236 = vst [vmem:[#allocation2 + $0x101] sm:$0x1] %v11162_v0  ;;  %9903 = vmatpush3.bf16.msra.mxu0 %v9900_v18  ;;  %v387_v40 = vld [vmem:[#allocation4 + $0x60] sm:$0xff]  ;;  %v388_v41 = vld [vmem:[#allocation4 + $0x68] sm:$0xff] }
  0x59   : > { %237 = vst [vmem:[#allocation2 + $0x119] sm:$0x1] %v11162_v0  ;;  %238 = vst [vmem:[#allocation2 + $0x131] sm:$0x1] %v11162_v0  ;;  %9905 = vmatprep.subr.bf16.mxu0 %v9904_v29  ;;  %v264_v42 = vld [vmem:[%s11317_s22 + $0xa0] sm:$0xff]  ;;  %v9912_v43 = vpack.c.bf16 %v388_v41, %v387_v40  ;;  %v265_v44 = vld [vmem:[%s11317_s22 + $0xa8] sm:$0xff] }
  0x5a   : > { %239 = vst [vmem:[#allocation2 + $0x149] sm:$0x1] %v11162_v0  ;;  %240 = vst [vmem:[#allocation2 + $0x161] sm:$0x1] %v11162_v0  ;;  %v266_v45 = vld [vmem:[%s11317_s22 + $0xb0] sm:$0xff]  ;;  %v389_v46 = vld [vmem:[#allocation4 + $0x70] sm:$0xff] }
  0x5b   : > { %241 = vst [vmem:[#allocation2 + $0x179] sm:$0x1] %v11162_v0  ;;  %242 = vst [vmem:[#allocation2 + $0x191] sm:$0x1] %v11162_v0  ;;  %v390_v47 = vld [vmem:[#allocation4 + $0x78] sm:$0xff]  ;;  %v267_v48 = vld [vmem:[%s11317_s22 + $0xb8] sm:$0xff] }
  0x5c   : > { %208 = vst [vmem:[#allocation2] sm:$0x1] %v11162_v0  ;;  %225 = vst [vmem:[#allocation2 + $0x198] sm:$0x1] %v11162_v0  ;;  %9907 = vmatpush3.bf16.msra.mxu0 %v9904_v29  ;;  %v9916_v49 = vpack.c.bf16 %v390_v47, %v389_v46  ;;  %v268_v50 = vld [vmem:[%s11317_s22 + $0xc0] sm:$0xff]  ;;  %v269_v51 = vld [vmem:[%s11317_s22 + $0xc8] sm:$0xff] }
  0x5d   : > { %226 = vst [vmem:[#allocation2 + $0x11] sm:$0x1] %v11162_v0  ;;  %243 = vst [vmem:[#allocation2 + $0x1a9] sm:$0x1] %v11162_v0  ;;  %9909 = vmatprep.subr.bf16.mxu0 %v9908_v38  ;;  %v270_v52 = vld [vmem:[%s11317_s22 + $0xd0] sm:$0xff]  ;;  %v689_v54 = vld [vmem:[#allocation4 + $0x88] sm:$0xff] }
  0x5e   : > { %278 = vst.msk [vmem:[#allocation2 + $0x19] sm:$0xff] %vm277_vm0, %v244_v13  ;;  %279 = vst.msk [vmem:[#allocation2 + $0x21] sm:$0xff] %vm277_vm0, %v245_v14  ;;  %v688_v53 = vld [vmem:[#allocation4 + $0x80] sm:$0xff]  ;;  %v271_v55 = vld [vmem:[%s11317_s22 + $0xd8] sm:$0xff]  ;;  %s11040_s23 = smul.u32 408, %s12845_s15 }
  0x5f   : > { %311 = vst.msk [vmem:[#allocation2 + $0x19] sm:$0xff] %vm310_vm1, %v11162_v0  ;;  %312 = vst.msk [vmem:[#allocation2 + $0x21] sm:$0xff] %vm310_vm1, %v11162_v0  ;;  %v272_v56 = vld [vmem:[%s11317_s22 + $0xe0] sm:$0xff]  ;;  %v273_v57 = vld [vmem:[%s11317_s22 + $0xe8] sm:$0xff]  ;;  %v9920_v58 = vpack.c.bf16 %v689_v54, %v688_v53 }
  0x60   : > { %280 = vst.msk [vmem:[#allocation2 + $0x31] sm:$0xff] %vm277_vm0, %v246_v15  ;;  %281 = vst.msk [vmem:[#allocation2 + $0x39] sm:$0xff] %vm277_vm0, %v247_v16  ;;  %9911 = vmatpush3.bf16.msra.mxu0 %v9908_v38  ;;  %v690_v59 = vld [vmem:[#allocation4 + $0x90] sm:$0xff]  ;;  %v691_v60 = vld [vmem:[#allocation4 + $0x98] sm:$0xff]  ;;  %s12379_s25 = scalar_lea.vmem %s12619_s3, %s11040_s23 }
  0x61   : > { %313 = vst.msk [vmem:[#allocation2 + $0x31] sm:$0xff] %vm310_vm1, %v11162_v0  ;;  %314 = vst.msk [vmem:[#allocation2 + $0x39] sm:$0xff] %vm310_vm1, %v11162_v0  ;;  %9913 = vmatprep.subr.bf16.mxu0 %v9912_v43  ;;  %v9924_v62 = vpack.c.bf16 %v691_v60, %v690_v59  ;;  %v692_v63 = vld [vmem:[#allocation4 + $0xa0] sm:$0xff]  ;;  %v693_v1 = vld [vmem:[#allocation4 + $0xa8] sm:$0xff] }
  0x62   : > { %282 = vst.msk [vmem:[#allocation2 + $0x49] sm:$0xff] %vm277_vm0, %v248_v17  ;;  %283 = vst.msk [vmem:[#allocation2 + $0x51] sm:$0xff] %vm277_vm0, %v249_v19  ;;  %v9928_v4 = vpack.c.bf16 %v693_v1, %v692_v63  ;;  %v694_v5 = vld [vmem:[#allocation4 + $0xb0] sm:$0xff]  ;;  %v695_v6 = vld [vmem:[#allocation4 + $0xb8] sm:$0xff] }
  0x63   : > { %v343_v10 = vld [vmem:[#allocation2] sm:$0xff]  ;;  %315 = vst.msk [vmem:[#allocation2 + $0x49] sm:$0xff] %vm310_vm1, %v11162_v0  ;;  %316 = vst.msk [vmem:[#allocation2 + $0x51] sm:$0xff] %vm310_vm1, %v11162_v0  ;;  %v9932_v9 = vpack.c.bf16 %v695_v6, %v694_v5  ;;  %v697_v11 = vld [vmem:[#allocation4 + $0xc8] sm:$0xff] }
  0x64   : > { %8480 = vmatprep.mubr.f32.mxu0 %v343_v10  ;;  %284 = vst.msk [vmem:[#allocation2 + $0x61] sm:$0xff] %vm277_vm0, %v250_v20  ;;  %285 = vst.msk [vmem:[#allocation2 + $0x69] sm:$0xff] %vm277_vm0, %v251_v21  ;;  %9915 = vmatpush3.bf16.msra.mxu0 %v9912_v43  ;;  %v696_v10 = vld [vmem:[#allocation4 + $0xc0] sm:$0xff]  ;;  %v698_v15 = vld [vmem:[#allocation4 + $0xd0] sm:$0xff] }
  0x65   : > { %317 = vst.msk [vmem:[#allocation2 + $0x61] sm:$0xff] %vm310_vm1, %v11162_v0  ;;  %318 = vst.msk [vmem:[#allocation2 + $0x69] sm:$0xff] %vm310_vm1, %v11162_v0  ;;  %9917 = vmatprep.subr.bf16.mxu0 %v9916_v49  ;;  %v9936_v14 = vpack.c.bf16 %v697_v11, %v696_v10  ;;  %v699_v16 = vld [vmem:[#allocation4 + $0xd8] sm:$0xff]  ;;  %v700_v20 = vld [vmem:[#allocation4 + $0xe0] sm:$0xff] }
  0x66   : > { %286 = vst.msk [vmem:[#allocation2 + $0x79] sm:$0xff] %vm277_vm0, %v252_v24  ;;  %287 = vst.msk [vmem:[#allocation2 + $0x81] sm:$0xff] %vm277_vm0, %v253_v25  ;;  %v11439_v61 = vld [vmem:[#allocation2 + $0x18] sm:$0xff]  ;;  %v11443_v2 = vld [vmem:[#allocation2 + $0x20] sm:$0xff]  ;;  %v9940_v19 = vpack.c.bf16 %v699_v16, %v698_v15 }
  0x67   : > { %319 = vst.msk [vmem:[#allocation2 + $0x79] sm:$0xff] %vm310_vm1, %v11162_v0  ;;  %320 = vst.msk [vmem:[#allocation2 + $0x81] sm:$0xff] %vm310_vm1, %v11162_v0  ;;  %v701_v21 = vld [vmem:[#allocation4 + $0xe8] sm:$0xff]  ;;  %v702_v25 = vld [vmem:[#allocation4 + $0xf0] sm:$0xff] }
  0x68   : > { %288 = vst.msk [vmem:[#allocation2 + $0x91] sm:$0xff] %vm277_vm0, %v254_v26  ;;  %289 = vst.msk [vmem:[#allocation2 + $0x99] sm:$0xff] %vm277_vm0, %v255_v27  ;;  %9919 = vmatpush3.bf16.msra.mxu0 %v9916_v49  ;;  %v11445_v3 = vld [vmem:[#allocation2 + $0x30] sm:$0xff]  ;;  %v11449_v7 = vld [vmem:[#allocation2 + $0x38] sm:$0xff]  ;;  %v9944_v24 = vpack.c.bf16 %v701_v21, %v700_v20 }
  0x69   : > { %321 = vst.msk [vmem:[#allocation2 + $0x91] sm:$0xff] %vm310_vm1, %v11162_v0  ;;  %322 = vst.msk [vmem:[#allocation2 + $0x99] sm:$0xff] %vm310_vm1, %v11162_v0  ;;  %9921 = vmatprep.subr.bf16.mxu0 %v9920_v58  ;;  %v703_v26 = vld [vmem:[#allocation4 + $0xf8] sm:$0xff]  ;;  %v11530_v54 = vld [vmem:[#allocation2 + $0x19] sm:$0xff] }
  0x6a   : > { %290 = vst.msk [vmem:[#allocation2 + $0xa9] sm:$0xff] %vm277_vm0, %v256_v28  ;;  %291 = vst.msk [vmem:[#allocation2 + $0xb1] sm:$0xff] %vm277_vm0, %v257_v30  ;;  %v11451_v8 = vld [vmem:[#allocation2 + $0x48] sm:$0xff]  ;;  %v11455_v12 = vld [vmem:[#allocation2 + $0x50] sm:$0xff]  ;;  %v9948_v29 = vpack.c.bf16 %v703_v26, %v702_v25 }
  0x6b   : > { %323 = vst.msk [vmem:[#allocation2 + $0xa9] sm:$0xff] %vm310_vm1, %v11162_v0  ;;  %324 = vst.msk [vmem:[#allocation2 + $0xb1] sm:$0xff] %vm310_vm1, %v11162_v0  ;;  %8481 = vmatmul.mubr.f32.vlgmr.msra.gmra.mrb[0].mxu0 %v11162_v0  ;;  %v1058_v30 = vld [vmem:[#allocation4 + $0x100] sm:$0xff]  ;;  %v1065_v63 = vld [vmem:[#allocation4 + $0x138] sm:$0xff] }
  0x6c   : > { %292 = vst.msk [vmem:[#allocation2 + $0xc1] sm:$0xff] %vm277_vm0, %v258_v31  ;;  %293 = vst.msk [vmem:[#allocation2 + $0xc9] sm:$0xff] %vm277_vm0, %v259_v32  ;;  %9923 = vmatpush3.bf16.msra.mxu0 %v9920_v58  ;;  %8483 = vmatprep.mubr.f32.mxu0 %v11439_v61  ;;  %v11457_v13 = vld [vmem:[#allocation2 + $0x60] sm:$0xff]  ;;  %v11461_v17 = vld [vmem:[#allocation2 + $0x68] sm:$0xff] }
  0x6d   : > { %325 = vst.msk [vmem:[#allocation2 + $0xc1] sm:$0xff] %vm310_vm1, %v11162_v0  ;;  %326 = vst.msk [vmem:[#allocation2 + $0xc9] sm:$0xff] %vm310_vm1, %v11162_v0  ;;  %9925 = vmatprep.subr.bf16.mxu0 %v9924_v62  ;;  %v1059_v31 = vld [vmem:[#allocation4 + $0x108] sm:$0xff]  ;;  %v656_v53 = vld [vmem:[#allocation2 + $0x9] sm:$0xff] }
  0x6e   : > { %294 = vst.msk [vmem:[#allocation2 + $0xd9] sm:$0xff] %vm277_vm0, %v260_v35  ;;  %295 = vst.msk [vmem:[#allocation2 + $0xe1] sm:$0xff] %vm277_vm0, %v261_v36  ;;  %v11463_v18 = vld [vmem:[#allocation2 + $0x78] sm:$0xff]  ;;  %v11467_v22 = vld [vmem:[#allocation2 + $0x80] sm:$0xff]  ;;  %v9952_v34 = vpack.c.bf16 %v1059_v31, %v1058_v30 }
  0x6f   : > { %327 = vst.msk [vmem:[#allocation2 + $0xd9] sm:$0xff] %vm310_vm1, %v11162_v0  ;;  %328 = vst.msk [vmem:[#allocation2 + $0xe1] sm:$0xff] %vm310_vm1, %v11162_v0  ;;  %8484 = vmatmul.mubr.f32.gmra.mrb[2].mxu0 %v11443_v2  ;;  %v11533_v58 = vld [vmem:[#allocation2 + $0x21] sm:$0xff]  ;;  %v11535_v59 = vld [vmem:[#allocation2 + $0x31] sm:$0xff] }
  0x70   : > { %296 = vst.msk [vmem:[#allocation2 + $0xf1] sm:$0xff] %vm277_vm0, %v262_v37  ;;  %297 = vst.msk [vmem:[#allocation2 + $0xf9] sm:$0xff] %vm277_vm0, %v263_v39  ;;  %8486 = vmatprep.mubr.f32.mxu0 %v11445_v3  ;;  %9927 = vmatpush3.bf16.msra.mxu0 %v9924_v62  ;;  %v11469_v23 = vld [vmem:[#allocation2 + $0x90] sm:$0xff]  ;;  %v11473_v27 = vld [vmem:[#allocation2 + $0x98] sm:$0xff] }
  0x71   : > { %329 = vst.msk [vmem:[#allocation2 + $0xf1] sm:$0xff] %vm310_vm1, %v11162_v0  ;;  %330 = vst.msk [vmem:[#allocation2 + $0xf9] sm:$0xff] %vm310_vm1, %v11162_v0  ;;  %9929 = vmatprep.subr.bf16.mxu0 %v9928_v4  ;;  %v1064_v62 = vld [vmem:[#allocation4 + $0x130] sm:$0xff]  ;;  %v1066_v6 = vld [vmem:[#allocation4 + $0x140] sm:$0xff] }
  0x72   : > { %298 = vst.msk [vmem:[#allocation2 + $0x109] sm:$0xff] %vm277_vm0, %v264_v42  ;;  %299 = vst.msk [vmem:[#allocation2 + $0x111] sm:$0xff] %vm277_vm0, %v265_v44  ;;  %v11475_v28 = vld [vmem:[#allocation2 + $0xa8] sm:$0xff]  ;;  %v11479_v32 = vld [vmem:[#allocation2 + $0xb0] sm:$0xff]  ;;  %v9964_v5 = vpack.c.bf16 %v1065_v63, %v1064_v62 }
  0x73   : > { %331 = vst.msk [vmem:[#allocation2 + $0x109] sm:$0xff] %vm310_vm1, %v11162_v0  ;;  %332 = vst.msk [vmem:[#allocation2 + $0x111] sm:$0xff] %vm310_vm1, %v11162_v0  ;;  %8487 = vmatmul.mubr.f32.gmra.mrb[4].mxu0 %v11449_v7  ;;  %v11539_v1 = vld [vmem:[#allocation2 + $0x39] sm:$0xff]  ;;  %v11545_v10 = vld [vmem:[#allocation2 + $0x51] sm:$0xff] }
  0x74   : > { %300 = vst.msk [vmem:[#allocation2 + $0x121] sm:$0xff] %vm277_vm0, %v266_v45  ;;  %301 = vst.msk [vmem:[#allocation2 + $0x129] sm:$0xff] %vm277_vm0, %v267_v48  ;;  %8489 = vmatprep.mubr.f32.mxu0 %v11451_v8  ;;  %9931 = vmatpush3.bf16.msra.mxu0 %v9928_v4  ;;  %v11481_v33 = vld [vmem:[#allocation2 + $0xc0] sm:$0xff]  ;;  %v11485_v35 = vld [vmem:[#allocation2 + $0xc8] sm:$0xff] }
  0x75   : > { %333 = vst.msk [vmem:[#allocation2 + $0x121] sm:$0xff] %vm310_vm1, %v11162_v0  ;;  %334 = vst.msk [vmem:[#allocation2 + $0x129] sm:$0xff] %vm310_vm1, %v11162_v0  ;;  %9933 = vmatprep.subr.bf16.mxu0 %v9932_v9  ;;  %v11541_v4 = vld [vmem:[#allocation2 + $0x49] sm:$0xff]  ;;  %v11547_v11 = vld [vmem:[#allocation2 + $0x61] sm:$0xff] }
  0x76   : > { %302 = vst.msk [vmem:[#allocation2 + $0x139] sm:$0xff] %vm277_vm0, %v268_v50  ;;  %303 = vst.msk [vmem:[#allocation2 + $0x141] sm:$0xff] %vm277_vm0, %v269_v51  ;;  %v11487_v36 = vld [vmem:[#allocation2 + $0xd8] sm:$0xff]  ;;  %v11491_v37 = vld [vmem:[#allocation2 + $0xe0] sm:$0xff] }
  0x77   : > { %304 = vst.msk [vmem:[#allocation2 + $0x151] sm:$0xff] %vm277_vm0, %v270_v52  ;;  %305 = vst.msk [vmem:[#allocation2 + $0x159] sm:$0xff] %vm277_vm0, %v271_v55  ;;  %8490 = vmatmul.mubr.f32.gmra.mrb[6].mxu0 %v11455_v12  ;;  %v7133_v50 = vld [vmem:[#allocation2 + $0x1] sm:$0xff]  ;;  %v11553_v20 = vld [vmem:[#allocation2 + $0x79] sm:$0xff] }
  0x78   : > { %335 = vst.msk [vmem:[#allocation2 + $0x139] sm:$0xff] %vm310_vm1, %v11162_v0  ;;  %336 = vst.msk [vmem:[#allocation2 + $0x141] sm:$0xff] %vm310_vm1, %v11162_v0  ;;  %8492 = vmatprep.mubr.f32.mxu0 %v11457_v13  ;;  %9935 = vmatpush3.bf16.msra.mxu0 %v9932_v9  ;;  %v11493_v38 = vld [vmem:[#allocation2 + $0xf0] sm:$0xff]  ;;  %v11497_v39 = vld [vmem:[#allocation2 + $0xf8] sm:$0xff] }
  0x79   : > { %337 = vst.msk [vmem:[#allocation2 + $0x151] sm:$0xff] %vm310_vm1, %v11162_v0  ;;  %338 = vst.msk [vmem:[#allocation2 + $0x159] sm:$0xff] %vm310_vm1, %v11162_v0  ;;  %9937 = vmatprep.subr.bf16.mxu0 %v9936_v14  ;;  %v1060_v51 = vld [vmem:[#allocation4 + $0x110] sm:$0xff]  ;;  %v1061_v52 = vld [vmem:[#allocation4 + $0x118] sm:$0xff] }
  0x7a   : > { %306 = vst.msk [vmem:[#allocation2 + $0x169] sm:$0xff] %vm277_vm0, %v272_v56  ;;  %307 = vst.msk [vmem:[#allocation2 + $0x171] sm:$0xff] %vm277_vm0, %v273_v57  ;;  %v11499_v40 = vld [vmem:[#allocation2 + $0x108] sm:$0xff]  ;;  %v11503_v41 = vld [vmem:[#allocation2 + $0x110] sm:$0xff]  ;;  %v9956_v55 = vpack.c.bf16 %v1061_v52, %v1060_v51 }
  0x7b   : > { %339 = vst.msk [vmem:[#allocation2 + $0x169] sm:$0xff] %vm310_vm1, %v11162_v0  ;;  %340 = vst.msk [vmem:[#allocation2 + $0x171] sm:$0xff] %vm310_vm1, %v11162_v0  ;;  %8493 = vmatmul.mubr.f32.gmra.mrb[8].mxu0 %v11461_v17  ;;  %v1062_v56 = vld [vmem:[#allocation4 + $0x120] sm:$0xff]  ;;  %v1063_v57 = vld [vmem:[#allocation4 + $0x128] sm:$0xff] }
  0x7c   : > { %8495 = vmatprep.mubr.f32.mxu0 %v11463_v18  ;;  %9939 = vmatpush3.bf16.msra.mxu0 %v9936_v14  ;;  %v11505_v42 = vld [vmem:[#allocation2 + $0x120] sm:$0xff]  ;;  %v11509_v43 = vld [vmem:[#allocation2 + $0x128] sm:$0xff]  ;;  %v9960_v60 = vpack.c.bf16 %v1063_v57, %v1062_v56  ;;  %v1067_v9 = vld [vmem:[#allocation4 + $0x148] sm:$0xff] }
  0x7d   : > { %9941 = vmatprep.subr.bf16.mxu0 %v9940_v19  ;;  %v9968_v14 = vpack.c.bf16 %v1067_v9, %v1066_v6  ;;  %v1068_v15 = vld [vmem:[#allocation4 + $0x150] sm:$0xff]  ;;  %v1069_v16 = vld [vmem:[#allocation4 + $0x158] sm:$0xff]  ;;  %v1071_v25 = vld [vmem:[#allocation4 + $0x168] sm:$0xff] }
  0x7e   : > { %v9972_v21 = vpack.c.bf16 %v1069_v16, %v1068_v15  ;;  %v11557_v26 = vld [vmem:[#allocation2 + $0x81] sm:$0xff]  ;;  %v11565_v51 = vld [vmem:[#allocation2 + $0xa9] sm:$0xff]  ;;  %v11569_v56 = vld [vmem:[#allocation2 + $0xb1] sm:$0xff] }
  0x7f   : > { %8496 = vmatmul.mubr.f32.gmra.mrb[10].mxu0 %v11467_v22  ;;  %v11511_v44 = vld [vmem:[#allocation2 + $0x138] sm:$0xff]  ;;  %v11515_v45 = vld [vmem:[#allocation2 + $0x140] sm:$0xff]  ;;  %v11575_v62 = vld [vmem:[#allocation2 + $0xc9] sm:$0xff] }
  0x80   : > { %8498 = vmatprep.mubr.f32.mxu0 %v11469_v23  ;;  %9943 = vmatpush3.bf16.msra.mxu0 %v9940_v19  ;;  %v11517_v46 = vld [vmem:[#allocation2 + $0x150] sm:$0xff]  ;;  %v11521_v47 = vld [vmem:[#allocation2 + $0x158] sm:$0xff]  ;;  %v1072_v31 = vld [vmem:[#allocation4 + $0x170] sm:$0xff] }
  0x81   : > { %9945 = vmatprep.subr.bf16.mxu0 %v9944_v24  ;;  %v11551_v19 = vld [vmem:[#allocation2 + $0x69] sm:$0xff]  ;;  %v11571_v57 = vld [vmem:[#allocation2 + $0xc1] sm:$0xff]  ;;  %v11577_v63 = vld [vmem:[#allocation2 + $0xd9] sm:$0xff] }
  0x82   : > { %v11523_v48 = vld [vmem:[#allocation2 + $0x168] sm:$0xff]  ;;  %v11527_v49 = vld [vmem:[#allocation2 + $0x170] sm:$0xff]  ;;  %v11587_v9 = vld [vmem:[#allocation2 + $0xf9] sm:$0xff] }
  0x83   : > { %8499 = vmatmul.mubr.f32.gmra.mrb[12].mxu0 %v11473_v27  ;;  %v11583_v6 = vld [vmem:[#allocation2 + $0xf1] sm:$0xff]  ;;  %12705 = vst [vmem:[#allocation10_spill] sm:$0xff] %v11587_v9  ;;  %v11595_v16 = vld [vmem:[#allocation2 + $0x121] sm:$0xff] }
  0x84   : > { %8501 = vmatprep.mubr.f32.mxu0 %v11475_v28  ;;  %9947 = vmatpush3.bf16.msra.mxu0 %v9944_v24  ;;  %v1070_v24 = vld [vmem:[#allocation4 + $0x160] sm:$0xff]  ;;  %12708 = vst [vmem:[#allocation13_spill] sm:$0xff] %v11595_v16 }
  0x85   : > { %9949 = vmatprep.subr.bf16.mxu0 %v9948_v29  ;;  %v9976_v30 = vpack.c.bf16 %v1071_v25, %v1070_v24  ;;  %v11593_v15 = vld [vmem:[#allocation2 + $0x111] sm:$0xff]  ;;  %v11601_v24 = vld [vmem:[#allocation2 + $0x139] sm:$0xff]  ;;  %v11605_v25 = vld [vmem:[#allocation2 + $0x141] sm:$0xff] }
  0x86   : > { %12707 = vst [vmem:[#allocation12_spill] sm:$0xff] %v11593_v15  ;;  %12710 = vst [vmem:[#allocation15_spill] sm:$0xff] %v11601_v24 }
  0x87   : > { %8502 = vmatmul.mubr.f32.gmra.mrb[14].mxu0 %v11479_v32  ;;  %12711 = vst [vmem:[#allocation16_spill] sm:$0xff] %v11605_v25 }
  0x88   : > { %8504 = vmatprep.mubr.f32.mxu0 %v11481_v33  ;;  %9951 = vmatpush3.bf16.msra.mxu0 %v9948_v29  ;;  %v11559_v29 = vld [vmem:[#allocation2 + $0x91] sm:$0xff] }
  0x89   : > { %9953 = vmatprep.subr.bf16.mxu0 %v9952_v34 }
  0x8b   : > { %8505 = vmatmul.mubr.f32.gmra.mrb[16].mxu0 %v11485_v35 }
  0x8c   : > { %8507 = vmatprep.mubr.f32.mxu0 %v11487_v36 }
  0x8f   : > { %8508 = vmatmul.mubr.f32.gmra.mrb[18].mxu0 %v11491_v37 }
  0x90   : > { %8510 = vmatprep.mubr.f32.mxu0 %v11493_v38 }
  0x93   : > { %8511 = vmatmul.mubr.f32.gmra.mrb[20].mxu0 %v11497_v39 }
  0x94   : > { %8513 = vmatprep.mubr.f32.mxu0 %v11499_v40 }
  0x97   : > { %8514 = vmatmul.mubr.f32.gmra.mrb[22].mxu0 %v11503_v41 }
  0x98   : > { %8516 = vmatprep.mubr.f32.mxu0 %v11505_v42 }
  0x9b   : > { %8517 = vmatmul.mubr.f32.gmra.mrb[24].mxu0 %v11509_v43 }
  0x9c   : > { %8519 = vmatprep.mubr.f32.mxu0 %v11511_v44 }
  0x9f   : > { %8520 = vmatmul.mubr.f32.gmra.mrb[26].mxu0 %v11515_v45 }
  0xa0   : > { %8522 = vmatprep.mubr.f32.mxu0 %v11517_v46 }
  0xa3   : > { %8523 = vmatmul.mubr.f32.gmra.mrb[28].mxu0 %v11521_v47 }
  0xa4   : > { %8525 = vmatprep.mubr.f32.mxu0 %v11523_v48 }
  0xa7   : > { %8526 = vmatmul.mubr.f32.gmra.mrb[30].mxu0 %v11527_v49 }
  0xa8   : > { %8560 = vmatprep.mubr.f32.mxu0 %v7133_v50  ;;  %v11563_v50 = vld [vmem:[#allocation2 + $0x99] sm:$0xff] }
  0xab   : > { %8561 = vmatmul.mubr.f32.vlgmr.msra.gmra.mrb[0].mxu0 %v656_v53  ;;  %v1428_v53 = vld [vmem:[#allocation4 + $0x180] sm:$0xff] }
  0xac   : > { %9955 = vmatpush3.bf16.msra.mxu0 %v9952_v34  ;;  %8563 = vmatprep.mubr.f32.mxu0 %v11530_v54  ;;  %v1073_v34 = vld [vmem:[#allocation4 + $0x178] sm:$0xff] }
  0xad   : > { %9957 = vmatprep.subr.bf16.mxu0 %v9956_v55  ;;  %v9980_v52 = vpack.c.bf16 %v1073_v34, %v1072_v31  ;;  %v11608_v31 = vld [vmem:[#allocation2 + $0x151] sm:$0xff] }
  0xae   : > { %12712 = vst [vmem:[#allocation17_spill] sm:$0xff] %v11608_v31  ;;  %v275_v34 = vld [vmem:[%s11317_s22 + $0xf8] sm:$0xff] }
  0xaf   : > { %8564 = vmatmul.mubr.f32.gmra.mrb[2].mxu0 %v11533_v58  ;;  %309 = vst.msk [vmem:[#allocation2 + $0x189] sm:$0xff] %vm277_vm0, %v275_v34  ;;  %v1431_v34 = vld [vmem:[#allocation4 + $0x198] sm:$0xff] }
  0xb0   : > { %8566 = vmatprep.mubr.f32.mxu0 %v11535_v59  ;;  %9959 = vmatpush3.bf16.msra.mxu0 %v9956_v55  ;;  %v1429_v55 = vld [vmem:[#allocation4 + $0x188] sm:$0xff]  ;;  %342 = vst.msk [vmem:[#allocation2 + $0x189] sm:$0xff] %vm310_vm1, %v11162_v0 }
  0xb1   : > { %9961 = vmatprep.subr.bf16.mxu0 %v9960_v60 }
  0xb3   : > { %8567 = vmatmul.mubr.f32.gmra.mrb[4].mxu0 %v11539_v1 }
  0xb4   : > { %8569 = vmatprep.mubr.f32.mxu0 %v11541_v4  ;;  %9963 = vmatpush3.bf16.msra.mxu0 %v9960_v60  ;;  %v9984_v60 = vpack.c.bf16 %v1429_v55, %v1428_v53  ;;  %v11621_v53 = vld [vmem:[#allocation2 + $0x169] sm:$0xff]  ;;  %v11625_v55 = vld [vmem:[#allocation2 + $0x171] sm:$0xff] }
  0xb5   : > { %9965 = vmatprep.subr.bf16.mxu0 %v9964_v5  ;;  %12714 = vst [vmem:[#allocation19_spill] sm:$0xff] %v11621_v53 }
  0xb7   : > { %8570 = vmatmul.mubr.f32.gmra.mrb[6].mxu0 %v11545_v10 }
  0xb8   : > { %8572 = vmatprep.mubr.f32.mxu0 %v11547_v11  ;;  %9967 = vmatpush3.bf16.msra.mxu0 %v9964_v5  ;;  %v11581_v5 = vld [vmem:[#allocation2 + $0xe1] sm:$0xff] }
  0xb9   : > { %9969 = vmatprep.subr.bf16.mxu0 %v9968_v14 }
  0xbb   : > { %8573 = vmatmul.mubr.f32.gmra.mrb[8].mxu0 %v11551_v19 }
  0xbc   : > { %8575 = vmatprep.mubr.f32.mxu0 %v11553_v20  ;;  %9971 = vmatpush3.bf16.msra.mxu0 %v9968_v14  ;;  %v11589_v14 = vld [vmem:[#allocation2 + $0x109] sm:$0xff] }
  0xbd   : > { %9973 = vmatprep.subr.bf16.mxu0 %v9972_v21  ;;  %12706 = vst [vmem:[#allocation11_spill] sm:$0xff] %v11589_v14 }
  0xbf   : > { %8576 = vmatmul.mubr.f32.gmra.mrb[10].mxu0 %v11557_v26 }
  0xc0   : > { %8578 = vmatprep.mubr.f32.mxu0 %v11559_v29  ;;  %9975 = vmatpush3.bf16.msra.mxu0 %v9972_v21  ;;  %v11599_v21 = vld [vmem:[#allocation2 + $0x129] sm:$0xff] }
  0xc1   : > { %9977 = vmatprep.subr.bf16.mxu0 %v9976_v30  ;;  %12709 = vst [vmem:[#allocation14_spill] sm:$0xff] %v11599_v21 }
  0xc3   : > { %8579 = vmatmul.mubr.f32.gmra.mrb[12].mxu0 %v11563_v50 }
  0xc4   : > { %8581 = vmatprep.mubr.f32.mxu0 %v11565_v51  ;;  %9979 = vmatpush3.bf16.msra.mxu0 %v9976_v30  ;;  %v274_v30 = vld [vmem:[%s11317_s22 + $0xf0] sm:$0xff] }
  0xc5   : > { %9981 = vmatprep.subr.bf16.mxu0 %v9980_v52  ;;  %308 = vst.msk [vmem:[#allocation2 + $0x181] sm:$0xff] %vm277_vm0, %v274_v30  ;;  %v1025_v30 = vld [vmem:[#allocation2 + $0x2] sm:$0xff] }
  0xc6   : > { %341 = vst.msk [vmem:[#allocation2 + $0x181] sm:$0xff] %vm310_vm1, %v11162_v0  ;;  %v11628_v0 = vld [vmem:[#allocation2 + $0x1a] sm:$0xff] }
  0xc7   : > { %8582 = vmatmul.mubr.f32.gmra.mrb[14].mxu0 %v11569_v56  ;;  %12715 = vst [vmem:[#allocation20_spill] sm:$0xff] %v11628_v0 }
  0xc8   : > { %8584 = vmatprep.mubr.f32.mxu0 %v11571_v57  ;;  %9983 = vmatpush3.bf16.msra.mxu0 %v9980_v52  ;;  %v11619_v52 = vld [vmem:[#allocation2 + $0x159] sm:$0xff] }
  0xc9   : > { %9985 = vmatprep.subr.bf16.mxu0 %v9984_v60  ;;  %12713 = vst [vmem:[#allocation18_spill] sm:$0xff] %v11619_v52 }
  0xcb   : > { %8585 = vmatmul.mubr.f32.gmra.mrb[16].mxu0 %v11575_v62 }
  0xcc   : > { %8587 = vmatprep.mubr.f32.mxu0 %v11577_v63 }
  0xcf   : > { %8588 = vmatmul.mubr.f32.gmra.mrb[18].mxu0 %v11581_v5 }
  0xd0   : > { %8590 = vmatprep.mubr.f32.mxu0 %v11583_v6 }
  0xd3   : > { %8591 = vmatmul.mubr.f32.gmra.mrb[20].mxu0 %v11587_v9  ;;  %v1435_v9 = vld [vmem:[#allocation4 + $0x1b8] sm:$0xff] }
  0xd4   : > { %8593 = vmatprep.mubr.f32.mxu0 %v11589_v14  ;;  %v1434_v14 = vld [vmem:[#allocation4 + $0x1b0] sm:$0xff] }
  0xd7   : > { %8594 = vmatmul.mubr.f32.gmra.mrb[22].mxu0 %v11593_v15 }
  0xd8   : > { %8596 = vmatprep.mubr.f32.mxu0 %v11595_v16  ;;  %v1433_v16 = vld [vmem:[#allocation4 + $0x1a8] sm:$0xff] }
  0xdb   : > { %8597 = vmatmul.mubr.f32.gmra.mrb[24].mxu0 %v11599_v21  ;;  %v1432_v21 = vld [vmem:[#allocation4 + $0x1a0] sm:$0xff] }
  0xdc   : > { %8599 = vmatprep.mubr.f32.mxu0 %v11601_v24  ;;  %v1430_v24 = vld [vmem:[#allocation4 + $0x190] sm:$0xff]  ;;  %v9992_v15 = vpack.c.bf16 %v1433_v16, %v1432_v21  ;;  %v11643_v16 = vld [vmem:[#allocation2 + $0x52] sm:$0xff] }
  0xdd   : > { %12720 = vst [vmem:[#allocation25_spill] sm:$0xff] %v11643_v16  ;;  %v11645_v21 = vld [vmem:[#allocation2 + $0x62] sm:$0xff] }
  0xde   : > { %12721 = vst [vmem:[#allocation26_spill] sm:$0xff] %v11645_v21 }
  0xdf   : > { %8600 = vmatmul.mubr.f32.gmra.mrb[26].mxu0 %v11605_v25  ;;  %v1026_v25 = vld [vmem:[#allocation2 + $0xa] sm:$0xff] }
  0xe0   : > { %8602 = vmatprep.mubr.f32.mxu0 %v11608_v31  ;;  %v9988_v31 = vpack.c.bf16 %v1431_v34, %v1430_v24  ;;  %v11639_v24 = vld [vmem:[#allocation2 + $0x4a] sm:$0xff]  ;;  %v1437_v34 = vld [vmem:[#allocation4 + $0x1c8] sm:$0xff] }
  0xe1   : > { %12719 = vst [vmem:[#allocation24_spill] sm:$0xff] %v11639_v24 }
  0xe3   : > { %8603 = vmatmul.mubr.f32.gmra.mrb[28].mxu0 %v11619_v52  ;;  %v11631_v52 = vld [vmem:[#allocation2 + $0x22] sm:$0xff] }
  0xe4   : > { %8605 = vmatprep.mubr.f32.mxu0 %v11621_v53  ;;  %12716 = vst [vmem:[#allocation21_spill] sm:$0xff] %v11631_v52  ;;  %v11633_v53 = vld [vmem:[#allocation2 + $0x32] sm:$0xff] }
  0xe5   : > { %12717 = vst [vmem:[#allocation22_spill] sm:$0xff] %v11633_v53 }
  0xe7   : > { %8606 = vmatmul.mubr.f32.gmra.mrb[30].mxu0 %v11625_v55 }
  0xe8   : > { %8640 = vmatprep.mubr.f32.mxu0 %v1025_v30  ;;  %v11637_v30 = vld [vmem:[#allocation2 + $0x3a] sm:$0xff] }
  0xe9   : > { %12718 = vst [vmem:[#allocation23_spill] sm:$0xff] %v11637_v30 }
  0xeb   : > { %8641 = vmatmul.mubr.f32.vlgmr.msra.gmra.mrb[0].mxu0 %v1026_v25  ;;  %v1436_v25 = vld [vmem:[#allocation4 + $0x1c0] sm:$0xff] }
  0xec   : > { %9987 = vmatpush3.bf16.msra.mxu0 %v9984_v60  ;;  %8643 = vmatprep.mubr.f32.mxu0 %v11628_v0  ;;  %v9996_v60 = vpack.c.bf16 %v1435_v9, %v1434_v14  ;;  %v1439_v0 = vld [vmem:[#allocation4 + $0x1d8] sm:$0xff]  ;;  %v11651_v14 = vld [vmem:[#allocation2 + $0x7a] sm:$0xff] }
  0xed   : > { %9989 = vmatprep.subr.bf16.mxu0 %v9988_v31  ;;  %v11649_v9 = vld [vmem:[#allocation2 + $0x6a] sm:$0xff]  ;;  %12723 = vst [vmem:[#allocation28_spill] sm:$0xff] %v11651_v14 }
  0xee   : > { %12722 = vst [vmem:[#allocation27_spill] sm:$0xff] %v11649_v9 }
  0xef   : > { %8644 = vmatmul.mubr.f32.gmra.mrb[2].mxu0 %v11631_v52  ;;  %v1438_v52 = vld [vmem:[#allocation4 + $0x1d0] sm:$0xff] }
  0xf0   : > { %8646 = vmatprep.mubr.f32.mxu0 %v11633_v53  ;;  %9991 = vmatpush3.bf16.msra.mxu0 %v9988_v31  ;;  %v10000_v53 = vpack.c.bf16 %v1437_v34, %v1436_v25  ;;  %v10004_v31 = vpack.c.bf16 %v1439_v0, %v1438_v52  ;;  %v11657_v25 = vld [vmem:[#allocation2 + $0x92] sm:$0xff]  ;;  %v11661_v52 = vld [vmem:[#allocation2 + $0x9a] sm:$0xff]  ;;  %v11663_v0 = vld [vmem:[#allocation2 + $0xaa] sm:$0xff] }
  0xf1   : > { %9993 = vmatprep.subr.bf16.mxu0 %v9992_v15 }
  0xf3   : > { %8647 = vmatmul.mubr.f32.gmra.mrb[4].mxu0 %v11637_v30  ;;  %v1441_v30 = vld [vmem:[#allocation4 + $0x1e8] sm:$0xff] }
  0xf4   : > { %8649 = vmatprep.mubr.f32.mxu0 %v11639_v24  ;;  %9995 = vmatpush3.bf16.msra.mxu0 %v9992_v15  ;;  %v1440_v24 = vld [vmem:[#allocation4 + $0x1e0] sm:$0xff]  ;;  %v11655_v15 = vld [vmem:[#allocation2 + $0x82] sm:$0xff] }
  0xf5   : > { %9997 = vmatprep.subr.bf16.mxu0 %v9996_v60  ;;  %v10008_v34 = vpack.c.bf16 %v1441_v30, %v1440_v24  ;;  %v11669_v30 = vld [vmem:[#allocation2 + $0xc2] sm:$0xff] }
  0xf6   : > { %12725 = vst [vmem:[#allocation30_spill] sm:$0xff] %v11669_v30 }
  0xf7   : > { %8650 = vmatmul.mubr.f32.gmra.mrb[6].mxu0 %v11643_v16  ;;  %v1443_v16 = vld [vmem:[#allocation4 + $0x1f8] sm:$0xff] }
  0xf8   : > { %8652 = vmatprep.mubr.f32.mxu0 %v11645_v21  ;;  %9999 = vmatpush3.bf16.msra.mxu0 %v9996_v60  ;;  %v1442_v21 = vld [vmem:[#allocation4 + $0x1f0] sm:$0xff] }
  0xf9   : > { %10001 = vmatprep.subr.bf16.mxu0 %v10000_v53  ;;  %v10012_v60 = vpack.c.bf16 %v1443_v16, %v1442_v21  ;;  %v11675_v16 = vld [vmem:[#allocation2 + $0xda] sm:$0xff]  ;;  %v11679_v21 = vld [vmem:[#allocation2 + $0xe2] sm:$0xff] }
  0xfa   : > { %12727 = vst [vmem:[#allocation32_spill] sm:$0xff] %v11675_v16  ;;  %12728 = vst [vmem:[#allocation33_spill] sm:$0xff] %v11679_v21 }
  0xfb   : > { %8653 = vmatmul.mubr.f32.gmra.mrb[8].mxu0 %v11649_v9  ;;  %v1799_v9 = vld [vmem:[#allocation4 + $0x208] sm:$0xff] }
  0xfc   : > { %8655 = vmatprep.mubr.f32.mxu0 %v11651_v14  ;;  %10003 = vmatpush3.bf16.msra.mxu0 %v10000_v53  ;;  %v1798_v14 = vld [vmem:[#allocation4 + $0x200] sm:$0xff] }
  0xfd   : > { %10005 = vmatprep.subr.bf16.mxu0 %v10004_v31  ;;  %v11667_v53 = vld [vmem:[#allocation2 + $0xb2] sm:$0xff]  ;;  %v10016_v24 = vpack.c.bf16 %v1799_v9, %v1798_v14  ;;  %v11685_v9 = vld [vmem:[#allocation2 + $0xfa] sm:$0xff]  ;;  %v11687_v14 = vld [vmem:[#allocation2 + $0x10a] sm:$0xff] }
  0xfe   : > { %12724 = vst [vmem:[#allocation29_spill] sm:$0xff] %v11667_v53  ;;  %12730 = vst [vmem:[#allocation35_spill] sm:$0xff] %v11685_v9 }
  0xff   : > { %8656 = vmatmul.mubr.f32.gmra.mrb[10].mxu0 %v11655_v15  ;;  %12731 = vst [vmem:[#allocation36_spill] sm:$0xff] %v11687_v14 }
 0x100   : > { %8658 = vmatprep.mubr.f32.mxu0 %v11657_v25  ;;  %10007 = vmatpush3.bf16.msra.mxu0 %v10004_v31  ;;  %v11673_v31 = vld [vmem:[#allocation2 + $0xca] sm:$0xff] }
 0x101   : > { %10009 = vmatprep.subr.bf16.mxu0 %v10008_v34  ;;  %12726 = vst [vmem:[#allocation31_spill] sm:$0xff] %v11673_v31 }
 0x103   : > { %8659 = vmatmul.mubr.f32.gmra.mrb[12].mxu0 %v11661_v52 }
 0x104   : > { %8661 = vmatprep.mubr.f32.mxu0 %v11663_v0  ;;  %10011 = vmatpush3.bf16.msra.mxu0 %v10008_v34  ;;  %v11681_v34 = vld [vmem:[#allocation2 + $0xf2] sm:$0xff] }
 0x105   : > { %10013 = vmatprep.subr.bf16.mxu0 %v10012_v60  ;;  %12729 = vst [vmem:[#allocation34_spill] sm:$0xff] %v11681_v34 }
 0x107   : > { %8662 = vmatmul.mubr.f32.gmra.mrb[14].mxu0 %v11667_v53  ;;  %v1803_v53 = vld [vmem:[#allocation4 + $0x228] sm:$0xff] }
 0x108   : > { %8664 = vmatprep.mubr.f32.mxu0 %v11669_v30  ;;  %10015 = vmatpush3.bf16.msra.mxu0 %v10012_v60  ;;  %v11691_v60 = vld [vmem:[#allocation2 + $0x112] sm:$0xff] }
 0x109   : > { %10017 = vmatprep.subr.bf16.mxu0 %v10016_v24  ;;  %12732 = vst [vmem:[#allocation37_spill] sm:$0xff] %v11691_v60 }
 0x10b   : > { %8665 = vmatmul.mubr.f32.gmra.mrb[16].mxu0 %v11673_v31  ;;  %v11693_v31 = vld [vmem:[#allocation2 + $0x122] sm:$0xff] }
 0x10c   : > { %8667 = vmatprep.mubr.f32.mxu0 %v11675_v16  ;;  %12733 = vst [vmem:[#allocation38_spill] sm:$0xff] %v11693_v31  ;;  %v11697_v16 = vld [vmem:[#allocation2 + $0x12a] sm:$0xff] }
 0x10d   : > { %12734 = vst [vmem:[#allocation39_spill] sm:$0xff] %v11697_v16 }
 0x10f   : > { %8668 = vmatmul.mubr.f32.gmra.mrb[18].mxu0 %v11679_v21  ;;  %v11699_v21 = vld [vmem:[#allocation2 + $0x13a] sm:$0xff] }
 0x110   : > { %8670 = vmatprep.mubr.f32.mxu0 %v11681_v34  ;;  %12735 = vst [vmem:[#allocation40_spill] sm:$0xff] %v11699_v21  ;;  %v11703_v34 = vld [vmem:[#allocation2 + $0x142] sm:$0xff] }
 0x111   : > { %12736 = vst [vmem:[#allocation41_spill] sm:$0xff] %v11703_v34 }
 0x113   : > { %8671 = vmatmul.mubr.f32.gmra.mrb[20].mxu0 %v11685_v9  ;;  %v11705_v9 = vld [vmem:[#allocation2 + $0x152] sm:$0xff] }
 0x114   : > { %8673 = vmatprep.mubr.f32.mxu0 %v11687_v14  ;;  %12737 = vst [vmem:[#allocation42_spill] sm:$0xff] %v11705_v9  ;;  %v11709_v14 = vld [vmem:[#allocation2 + $0x15a] sm:$0xff] }
 0x115   : > { %12738 = vst [vmem:[#allocation43_spill] sm:$0xff] %v11709_v14 }
 0x117   : > { %8674 = vmatmul.mubr.f32.gmra.mrb[22].mxu0 %v11691_v60  ;;  %v11711_v60 = vld [vmem:[#allocation2 + $0x16a] sm:$0xff] }
 0x118   : > { %8676 = vmatprep.mubr.f32.mxu0 %v11693_v31  ;;  %12739 = vst [vmem:[#allocation44_spill] sm:$0xff] %v11711_v60  ;;  %v11715_v31 = vld [vmem:[#allocation2 + $0x172] sm:$0xff] }
 0x119   : > { %12740 = vst [vmem:[#allocation45_spill] sm:$0xff] %v11715_v31 }
 0x11b   : > { %8677 = vmatmul.mubr.f32.gmra.mrb[24].mxu0 %v11697_v16  ;;  %v1800_v16 = vld [vmem:[#allocation4 + $0x210] sm:$0xff] }
 0x11c   : > { %8679 = vmatprep.mubr.f32.mxu0 %v11699_v21  ;;  %v1801_v21 = vld [vmem:[#allocation4 + $0x218] sm:$0xff] }
 0x11d   : > { %v10020_v30 = vpack.c.bf16 %v1801_v21, %v1800_v16  ;;  %v1807_v16 = vld [vmem:[#allocation4 + $0x248] sm:$0xff]  ;;  %v2542_v21 = vld [vmem:[#allocation4 + $0x318] sm:$0xff] }
 0x11f   : > { %8680 = vmatmul.mubr.f32.gmra.mrb[26].mxu0 %v11703_v34  ;;  %v1802_v34 = vld [vmem:[#allocation4 + $0x220] sm:$0xff] }
 0x120   : > { %8682 = vmatprep.mubr.f32.mxu0 %v11705_v9  ;;  %v1804_v9 = vld [vmem:[#allocation4 + $0x230] sm:$0xff] }
 0x123   : > { %8683 = vmatmul.mubr.f32.gmra.mrb[28].mxu0 %v11709_v14  ;;  %v10024_v14 = vpack.c.bf16 %v1803_v53, %v1802_v34  ;;  %v1809_v53 = vld [vmem:[#allocation4 + $0x258] sm:$0xff] }
 0x124   : > { %8685 = vmatprep.mubr.f32.mxu0 %v11711_v60  ;;  %v1805_v60 = vld [vmem:[#allocation4 + $0x238] sm:$0xff] }
 0x125   : > { %v12751_v34 = vld [vmem:[#allocation20_spill] sm:$0xff] }
 0x127   : > { %8686 = vmatmul.mubr.f32.gmra.mrb[30].mxu0 %v11715_v31  ;;  %v10028_v31 = vpack.c.bf16 %v1805_v60, %v1804_v9  ;;  %v2544_v60 = vld [vmem:[#allocation4 + $0x328] sm:$0xff] }
 0x128   : > { %8720 = vmatprep.mubr.f32.mxu0 %v11439_v61  ;;  %v1806_v61 = vld [vmem:[#allocation4 + $0x240] sm:$0xff] }
 0x12b   : > { %8721 = vmatmul.mubr.f32.vlgmr.msra.gmra.mrb[0].mxu0 %v11443_v2  ;;  %v10032_v2 = vpack.c.bf16 %v1807_v16, %v1806_v61  ;;  %v12752_v61 = vld [vmem:[#allocation21_spill] sm:$0xff]  ;;  %v12753_v16 = vld [vmem:[#allocation22_spill] sm:$0xff] }
 0x12c   : > { %10019 = vmatpush3.bf16.msra.mxu0 %v10016_v24  ;;  %8723 = vmatprep.mubr.f32.mxu0 %v11445_v3  ;;  %v1808_v3 = vld [vmem:[#allocation4 + $0x250] sm:$0xff]  ;;  %v1813_v24 = vld [vmem:[#allocation4 + $0x278] sm:$0xff] }
 0x12d   : > { %10021 = vmatprep.subr.bf16.mxu0 %v10020_v30 }
 0x12f   : > { %8724 = vmatmul.mubr.f32.gmra.mrb[2].mxu0 %v11449_v7  ;;  %v10036_v7 = vpack.c.bf16 %v1809_v53, %v1808_v3  ;;  %v2546_v3 = vld [vmem:[#allocation4 + $0x338] sm:$0xff]  ;;  %v12754_v53 = vld [vmem:[#allocation23_spill] sm:$0xff] }
 0x130   : > { %8726 = vmatprep.mubr.f32.mxu0 %v11451_v8  ;;  %10023 = vmatpush3.bf16.msra.mxu0 %v10020_v30  ;;  %v1810_v8 = vld [vmem:[#allocation4 + $0x260] sm:$0xff]  ;;  %v1811_v30 = vld [vmem:[#allocation4 + $0x268] sm:$0xff] }
 0x131   : > { %10025 = vmatprep.subr.bf16.mxu0 %v10024_v14 }
 0x133   : > { %8727 = vmatmul.mubr.f32.gmra.mrb[4].mxu0 %v11455_v12  ;;  %v10040_v12 = vpack.c.bf16 %v1811_v30, %v1810_v8  ;;  %v2547_v30 = vld [vmem:[#allocation4 + $0x340] sm:$0xff] }
 0x134   : > { %8729 = vmatprep.mubr.f32.mxu0 %v11457_v13  ;;  %10027 = vmatpush3.bf16.msra.mxu0 %v10024_v14  ;;  %v1812_v13 = vld [vmem:[#allocation4 + $0x270] sm:$0xff]  ;;  %v2543_v14 = vld [vmem:[#allocation4 + $0x320] sm:$0xff] }
 0x135   : > { %10029 = vmatprep.subr.bf16.mxu0 %v10028_v31 }
 0x137   : > { %8730 = vmatmul.mubr.f32.gmra.mrb[6].mxu0 %v11461_v17  ;;  %v10044_v17 = vpack.c.bf16 %v1813_v24, %v1812_v13  ;;  %v12756_v13 = vld [vmem:[#allocation25_spill] sm:$0xff]  ;;  %v12757_v24 = vld [vmem:[#allocation26_spill] sm:$0xff] }
 0x138   : > { %8732 = vmatprep.mubr.f32.mxu0 %v11463_v18  ;;  %10031 = vmatpush3.bf16.msra.mxu0 %v10028_v31  ;;  %v2168_v18 = vld [vmem:[#allocation4 + $0x280] sm:$0xff]  ;;  %v2169_v31 = vld [vmem:[#allocation4 + $0x288] sm:$0xff] }
 0x139   : > { %10033 = vmatprep.subr.bf16.mxu0 %v10032_v2 }
 0x13b   : > { %8733 = vmatmul.mubr.f32.gmra.mrb[8].mxu0 %v11467_v22  ;;  %v10048_v22 = vpack.c.bf16 %v2169_v31, %v2168_v18  ;;  %v2549_v18 = vld [vmem:[#allocation4 + $0x350] sm:$0xff]  ;;  %v2550_v31 = vld [vmem:[#allocation4 + $0x358] sm:$0xff] }
 0x13c   : > { %8735 = vmatprep.mubr.f32.mxu0 %v11469_v23  ;;  %10035 = vmatpush3.bf16.msra.mxu0 %v10032_v2  ;;  %v11747_v23 = vld [vmem:[#allocation2 + $0x180] sm:$0xff] }
 0x13d   : > { %10037 = vmatprep.subr.bf16.mxu0 %v10036_v7  ;;  %v2545_v2 = vld [vmem:[#allocation4 + $0x330] sm:$0xff] }
 0x13e   : > { %v10092_v8 = vpack.c.bf16 %v2546_v3, %v2545_v2  ;;  %v2918_v2 = vld [vmem:[#allocation4 + $0x3c8] sm:$0xff]  ;;  %v2513_v3 = vld [vmem:[#allocation2 + $0x80] sm:$0xff] }
 0x13f   : > { %8736 = vmatmul.mubr.f32.gmra.mrb[10].mxu0 %v11473_v27  ;;  %v11751_v27 = vld [vmem:[#allocation2 + $0x188] sm:$0xff] }
 0x140   : > { %8738 = vmatprep.mubr.f32.mxu0 %v11475_v28  ;;  %10039 = vmatpush3.bf16.msra.mxu0 %v10036_v7  ;;  %v2170_v28 = vld [vmem:[#allocation4 + $0x290] sm:$0xff] }
 0x141   : > { %10041 = vmatprep.subr.bf16.mxu0 %v10040_v12  ;;  %v12755_v7 = vld [vmem:[#allocation24_spill] sm:$0xff] }
 0x143   : > { %8739 = vmatmul.mubr.f32.gmra.mrb[12].mxu0 %v11479_v32  ;;  %v2171_v32 = vld [vmem:[#allocation4 + $0x298] sm:$0xff] }
 0x144   : > { %8741 = vmatprep.mubr.f32.mxu0 %v11481_v33  ;;  %10043 = vmatpush3.bf16.msra.mxu0 %v10040_v12  ;;  %v10052_v33 = vpack.c.bf16 %v2171_v32, %v2170_v28  ;;  %v2548_v12 = vld [vmem:[#allocation4 + $0x348] sm:$0xff]  ;;  %v12759_v28 = vld [vmem:[#allocation28_spill] sm:$0xff]  ;;  %v10100_v32 = vpack.c.bf16 %v2550_v31, %v2549_v18  ;;  %v2517_v31 = vld [vmem:[#allocation2 + $0xb0] sm:$0xff] }
 0x145   : > { %10045 = vmatprep.subr.bf16.mxu0 %v10044_v17  ;;  %v2922_v18 = vld [vmem:[#allocation4 + $0x3e8] sm:$0xff] }
 0x147   : > { %8742 = vmatmul.mubr.f32.gmra.mrb[14].mxu0 %v11485_v35  ;;  %v2172_v35 = vld [vmem:[#allocation4 + $0x2a0] sm:$0xff] }
 0x148   : > { %8744 = vmatprep.mubr.f32.mxu0 %v11487_v36  ;;  %10047 = vmatpush3.bf16.msra.mxu0 %v10044_v17  ;;  %v2173_v36 = vld [vmem:[#allocation4 + $0x2a8] sm:$0xff]  ;;  %v10096_v17 = vpack.c.bf16 %v2548_v12, %v2547_v30  ;;  %v2920_v30 = vld [vmem:[#allocation4 + $0x3d8] sm:$0xff] }
 0x149   : > { %10049 = vmatprep.subr.bf16.mxu0 %v10048_v22  ;;  %v2515_v12 = vld [vmem:[#allocation2 + $0x98] sm:$0xff] }
 0x14b   : > { %8745 = vmatmul.mubr.f32.gmra.mrb[16].mxu0 %v11491_v37  ;;  %v10056_v37 = vpack.c.bf16 %v2173_v36, %v2172_v35  ;;  %v2552_v35 = vld [vmem:[#allocation4 + $0x368] sm:$0xff] }
 0x14c   : > { %8747 = vmatprep.mubr.f32.mxu0 %v11493_v38  ;;  %v2174_v38 = vld [vmem:[#allocation4 + $0x2b0] sm:$0xff] }
 0x14f   : > { %8748 = vmatmul.mubr.f32.gmra.mrb[18].mxu0 %v11497_v39  ;;  %v2175_v39 = vld [vmem:[#allocation4 + $0x2b8] sm:$0xff] }
 0x150   : > { %8750 = vmatprep.mubr.f32.mxu0 %v11499_v40  ;;  %v10060_v40 = vpack.c.bf16 %v2175_v39, %v2174_v38  ;;  %v2554_v38 = vld [vmem:[#allocation4 + $0x378] sm:$0xff] }
 0x153   : > { %8751 = vmatmul.mubr.f32.gmra.mrb[20].mxu0 %v11503_v41  ;;  %v2176_v41 = vld [vmem:[#allocation4 + $0x2c0] sm:$0xff] }
 0x154   : > { %8753 = vmatprep.mubr.f32.mxu0 %v11505_v42  ;;  %v2177_v42 = vld [vmem:[#allocation4 + $0x2c8] sm:$0xff] }
 0x157   : > { %8754 = vmatmul.mubr.f32.gmra.mrb[22].mxu0 %v11509_v43  ;;  %v10064_v43 = vpack.c.bf16 %v2177_v42, %v2176_v41  ;;  %v2910_v41 = vld [vmem:[#allocation4 + $0x388] sm:$0xff]  ;;  %v12760_v42 = vld [vmem:[#allocation29_spill] sm:$0xff] }
 0x158   : > { %8756 = vmatprep.mubr.f32.mxu0 %v11511_v44  ;;  %v2178_v44 = vld [vmem:[#allocation4 + $0x2d0] sm:$0xff] }
 0x15b   : > { %8757 = vmatmul.mubr.f32.gmra.mrb[24].mxu0 %v11515_v45  ;;  %v2179_v45 = vld [vmem:[#allocation4 + $0x2d8] sm:$0xff] }
 0x15c   : > { %8759 = vmatprep.mubr.f32.mxu0 %v11517_v46  ;;  %v10068_v46 = vpack.c.bf16 %v2179_v45, %v2178_v44  ;;  %v12763_v44 = vld [vmem:[#allocation32_spill] sm:$0xff]  ;;  %v12766_v45 = vld [vmem:[#allocation35_spill] sm:$0xff] }
 0x15f   : > { %8760 = vmatmul.mubr.f32.gmra.mrb[26].mxu0 %v11521_v47  ;;  %v2180_v47 = vld [vmem:[#allocation4 + $0x2e0] sm:$0xff] }
 0x160   : > { %8762 = vmatprep.mubr.f32.mxu0 %v11523_v48  ;;  %v2181_v48 = vld [vmem:[#allocation4 + $0x2e8] sm:$0xff] }
 0x163   : > { %8763 = vmatmul.mubr.f32.gmra.mrb[28].mxu0 %v11527_v49  ;;  %v10072_v49 = vpack.c.bf16 %v2181_v48, %v2180_v47  ;;  %v12768_v47 = vld [vmem:[#allocation37_spill] sm:$0xff]  ;;  %v12769_v48 = vld [vmem:[#allocation38_spill] sm:$0xff] }
 0x164   : > { %8765 = vmatprep.mubr.f32.mxu0 %v11747_v23 }
 0x167   : > { %8766 = vmatmul.mubr.f32.gmra.mrb[30].mxu0 %v11751_v27 }
 0x168   : > { %8800 = vmatprep.mubr.f32.mxu0 %v11530_v54  ;;  %v2182_v54 = vld [vmem:[#allocation4 + $0x2f0] sm:$0xff] }
 0x16b   : > { %8801 = vmatmul.mubr.f32.vlgmr.msra.gmra.mrb[0].mxu0 %v11533_v58  ;;  %v2183_v58 = vld [vmem:[#allocation4 + $0x2f8] sm:$0xff] }
 0x16c   : > { %10051 = vmatpush3.bf16.msra.mxu0 %v10048_v22  ;;  %8803 = vmatprep.mubr.f32.mxu0 %v11535_v59  ;;  %v10076_v59 = vpack.c.bf16 %v2183_v58, %v2182_v54  ;;  %v12758_v22 = vld [vmem:[#allocation27_spill] sm:$0xff]  ;;  %v12771_v54 = vld [vmem:[#allocation40_spill] sm:$0xff]  ;;  %v12772_v58 = vld [vmem:[#allocation41_spill] sm:$0xff] }
 0x16d   : > { %10053 = vmatprep.subr.bf16.mxu0 %v10052_v33 }
 0x16f   : > { %8804 = vmatmul.mubr.f32.gmra.mrb[2].mxu0 %v11539_v1  ;;  %v2539_v1 = vld [vmem:[#allocation4 + $0x300] sm:$0xff] }
 0x170   : > { %8806 = vmatprep.mubr.f32.mxu0 %v11541_v4  ;;  %10055 = vmatpush3.bf16.msra.mxu0 %v10052_v33  ;;  %v2540_v4 = vld [vmem:[#allocation4 + $0x308] sm:$0xff]  ;;  %v2551_v33 = vld [vmem:[#allocation4 + $0x360] sm:$0xff] }
 0x171   : > { %10057 = vmatprep.subr.bf16.mxu0 %v10056_v37  ;;  %v10104_v36 = vpack.c.bf16 %v2552_v35, %v2551_v33  ;;  %v2924_v33 = vld [vmem:[#allocation4 + $0x3f8] sm:$0xff] }
 0x172   : > { %v2519_v35 = vld [vmem:[#allocation2 + $0xc8] sm:$0xff] }
 0x173   : > { %8807 = vmatmul.mubr.f32.gmra.mrb[4].mxu0 %v11545_v10  ;;  %v10080_v10 = vpack.c.bf16 %v2540_v4, %v2539_v1  ;;  %v12774_v1 = vld [vmem:[#allocation43_spill] sm:$0xff]  ;;  %v12775_v4 = vld [vmem:[#allocation44_spill] sm:$0xff] }
 0x174   : > { %8809 = vmatprep.mubr.f32.mxu0 %v11547_v11  ;;  %10059 = vmatpush3.bf16.msra.mxu0 %v10056_v37  ;;  %v12741_v11 = vld [vmem:[#allocation10_spill] sm:$0xff]  ;;  %v2553_v37 = vld [vmem:[#allocation4 + $0x370] sm:$0xff] }
 0x175   : > { %10061 = vmatprep.subr.bf16.mxu0 %v10060_v40  ;;  %v10108_v39 = vpack.c.bf16 %v2554_v38, %v2553_v37  ;;  %v3279_v38 = vld [vmem:[#allocation4 + $0x400] sm:$0xff] }
 0x177   : > { %8810 = vmatmul.mubr.f32.gmra.mrb[6].mxu0 %v11551_v19  ;;  %v12742_v19 = vld [vmem:[#allocation11_spill] sm:$0xff] }
 0x178   : > { %8812 = vmatprep.mubr.f32.mxu0 %v11553_v20  ;;  %10063 = vmatpush3.bf16.msra.mxu0 %v10060_v40  ;;  %v12743_v20 = vld [vmem:[#allocation12_spill] sm:$0xff]  ;;  %v2909_v40 = vld [vmem:[#allocation4 + $0x380] sm:$0xff] }
 0x179   : > { %10065 = vmatprep.subr.bf16.mxu0 %v10064_v43 }
 0x17b   : > { %8813 = vmatmul.mubr.f32.gmra.mrb[8].mxu0 %v11557_v26  ;;  %v12744_v26 = vld [vmem:[#allocation13_spill] sm:$0xff] }
 0x17c   : > { %8815 = vmatprep.mubr.f32.mxu0 %v11559_v29  ;;  %10067 = vmatpush3.bf16.msra.mxu0 %v10064_v43  ;;  %v12745_v29 = vld [vmem:[#allocation14_spill] sm:$0xff] }
 0x17d   : > { %10069 = vmatprep.subr.bf16.mxu0 %v10068_v46  ;;  %v12761_v43 = vld [vmem:[#allocation30_spill] sm:$0xff] }
 0x17f   : > { %8816 = vmatmul.mubr.f32.gmra.mrb[10].mxu0 %v11563_v50  ;;  %v12746_v50 = vld [vmem:[#allocation15_spill] sm:$0xff] }
 0x180   : > { %8818 = vmatprep.mubr.f32.mxu0 %v11565_v51  ;;  %10071 = vmatpush3.bf16.msra.mxu0 %v10068_v46  ;;  %v12747_v51 = vld [vmem:[#allocation16_spill] sm:$0xff] }
 0x181   : > { %10073 = vmatprep.subr.bf16.mxu0 %v10072_v49  ;;  %v12767_v46 = vld [vmem:[#allocation36_spill] sm:$0xff] }
 0x183   : > { %8819 = vmatmul.mubr.f32.gmra.mrb[12].mxu0 %v11569_v56  ;;  %v12748_v56 = vld [vmem:[#allocation17_spill] sm:$0xff] }
 0x184   : > { %8821 = vmatprep.mubr.f32.mxu0 %v11571_v57  ;;  %10075 = vmatpush3.bf16.msra.mxu0 %v10072_v49  ;;  %v12749_v57 = vld [vmem:[#allocation18_spill] sm:$0xff]  ;;  %v12770_v49 = vld [vmem:[#allocation39_spill] sm:$0xff] }
 0x185   : > { %10077 = vmatprep.subr.bf16.mxu0 %v10076_v59 }
 0x187   : > { %8822 = vmatmul.mubr.f32.gmra.mrb[14].mxu0 %v11575_v62  ;;  %v12750_v62 = vld [vmem:[#allocation19_spill] sm:$0xff] }
 0x188   : > { %8824 = vmatprep.mubr.f32.mxu0 %v11577_v63  ;;  %10079 = vmatpush3.bf16.msra.mxu0 %v10076_v59  ;;  %v11783_v63 = vld [vmem:[#allocation2 + $0x181] sm:$0xff]  ;;  %v12773_v59 = vld [vmem:[#allocation42_spill] sm:$0xff] }
 0x189   : > { %10081 = vmatprep.subr.bf16.mxu0 %v10080_v10 }
 0x18b   : > { %8825 = vmatmul.mubr.f32.gmra.mrb[16].mxu0 %v11581_v5  ;;  %v11787_v5 = vld [vmem:[#allocation2 + $0x189] sm:$0xff] }
 0x18c   : > { %8827 = vmatprep.mubr.f32.mxu0 %v11583_v6  ;;  %v2541_v6 = vld [vmem:[#allocation4 + $0x310] sm:$0xff] }
 0x18d   : > { %v10084_v9 = vpack.c.bf16 %v2542_v21, %v2541_v6  ;;  %v2509_v6 = vld [vmem:[#allocation2 + $0x50] sm:$0xff]  ;;  %v2510_v21 = vld [vmem:[#allocation2 + $0x60] sm:$0xff] }
 0x18f   : > { %8828 = vmatmul.mubr.f32.gmra.mrb[18].mxu0 %v12741_v11  ;;  %v12776_v11 = vld [vmem:[#allocation45_spill] sm:$0xff] }
 0x190   : > { %8830 = vmatprep.mubr.f32.mxu0 %v12742_v19  ;;  %v11823_v19 = vld [vmem:[#allocation2 + $0x18a] sm:$0xff] }
 0x193   : > { %8831 = vmatmul.mubr.f32.gmra.mrb[20].mxu0 %v12743_v20  ;;  %v2506_v20 = vld [vmem:[#allocation2 + $0x30] sm:$0xff] }
 0x194   : > { %8833 = vmatprep.mubr.f32.mxu0 %v12744_v26  ;;  %v2911_v26 = vld [vmem:[#allocation4 + $0x390] sm:$0xff] }
 0x197   : > { %8834 = vmatmul.mubr.f32.gmra.mrb[22].mxu0 %v12745_v29  ;;  %v2912_v29 = vld [vmem:[#allocation4 + $0x398] sm:$0xff] }
 0x198   : > { %8836 = vmatprep.mubr.f32.mxu0 %v12746_v50  ;;  %v2507_v50 = vld [vmem:[#allocation2 + $0x38] sm:$0xff] }
 0x19b   : > { %8837 = vmatmul.mubr.f32.gmra.mrb[24].mxu0 %v12747_v51  ;;  %v2508_v51 = vld [vmem:[#allocation2 + $0x48] sm:$0xff] }
 0x19c   : > { %8839 = vmatprep.mubr.f32.mxu0 %v12748_v56  ;;  %v10116_v56 = vpack.c.bf16 %v2912_v29, %v2911_v26  ;;  %v2877_v26 = vld [vmem:[#allocation2 + $0x39] sm:$0xff] }
 0x19f   : > { %8840 = vmatmul.mubr.f32.gmra.mrb[26].mxu0 %v12749_v57  ;;  %v2913_v57 = vld [vmem:[#allocation4 + $0x3a0] sm:$0xff] }
 0x1a0   : > { %8842 = vmatprep.mubr.f32.mxu0 %v12750_v62  ;;  %v2914_v62 = vld [vmem:[#allocation4 + $0x3a8] sm:$0xff] }
 0x1a3   : > { %8843 = vmatmul.mubr.f32.gmra.mrb[28].mxu0 %v11625_v55  ;;  %v10088_v55 = vpack.c.bf16 %v2544_v60, %v2543_v14  ;;  %v2916_v14 = vld [vmem:[#allocation4 + $0x3b8] sm:$0xff] }
 0x1a4   : > { %8845 = vmatprep.mubr.f32.mxu0 %v11783_v63  ;;  %v2511_v60 = vld [vmem:[#allocation2 + $0x68] sm:$0xff] }
 0x1a7   : > { %8846 = vmatmul.mubr.f32.gmra.mrb[30].mxu0 %v11787_v5 }
 0x1a8   : > { %8880 = vmatprep.mubr.f32.mxu0 %v12751_v34  ;;  %v10120_v34 = vpack.c.bf16 %v2914_v62, %v2913_v57  ;;  %v3283_v57 = vld [vmem:[#allocation4 + $0x420] sm:$0xff] }
 0x1ab   : > { %8881 = vmatmul.mubr.f32.vlgmr.msra.gmra.mrb[0].mxu0 %v12752_v61  ;;  %v2512_v61 = vld [vmem:[#allocation2 + $0x78] sm:$0xff] }
 0x1ac   : > { %10083 = vmatpush3.bf16.msra.mxu0 %v10080_v10  ;;  %8883 = vmatprep.mubr.f32.mxu0 %v12753_v16  ;;  %v11819_v10 = vld [vmem:[#allocation2 + $0x182] sm:$0xff] }
 0x1ad   : > { %10085 = vmatprep.subr.bf16.mxu0 %v10084_v9 }
 0x1af   : > { %8884 = vmatmul.mubr.f32.gmra.mrb[2].mxu0 %v12754_v53  ;;  %v2514_v53 = vld [vmem:[#allocation2 + $0x90] sm:$0xff] }
 0x1b0   : > { %8886 = vmatprep.mubr.f32.mxu0 %v12755_v7  ;;  %10087 = vmatpush3.bf16.msra.mxu0 %v10084_v9  ;;  %v2915_v9 = vld [vmem:[#allocation4 + $0x3b0] sm:$0xff] }
 0x1b1   : > { %10089 = vmatprep.subr.bf16.mxu0 %v10088_v55  ;;  %v10124_v16 = vpack.c.bf16 %v2916_v14, %v2915_v9  ;;  %v2880_v9 = vld [vmem:[#allocation2 + $0x61] sm:$0xff] }
 0x1b3   : > { %8887 = vmatmul.mubr.f32.gmra.mrb[4].mxu0 %v12756_v13  ;;  %v2516_v13 = vld [vmem:[#allocation2 + $0xa8] sm:$0xff] }
 0x1b4   : > { %8889 = vmatprep.mubr.f32.mxu0 %v12757_v24  ;;  %10091 = vmatpush3.bf16.msra.mxu0 %v10088_v55  ;;  %v2917_v55 = vld [vmem:[#allocation4 + $0x3c0] sm:$0xff] }
 0x1b5   : > { %10093 = vmatprep.subr.bf16.mxu0 %v10092_v8  ;;  %v10128_v7 = vpack.c.bf16 %v2918_v2, %v2917_v55  ;;  %v3751_v55 = vld [vmem:[#allocation4 + $0x4b0] sm:$0xff]  ;;  %v3752_v2 = vld [vmem:[#allocation4 + $0x4b8] sm:$0xff] }
 0x1b7   : > { %8890 = vmatmul.mubr.f32.gmra.mrb[6].mxu0 %v12758_v22  ;;  %v2518_v22 = vld [vmem:[#allocation2 + $0xc0] sm:$0xff] }
 0x1b8   : > { %8892 = vmatprep.mubr.f32.mxu0 %v12759_v28  ;;  %10095 = vmatpush3.bf16.msra.mxu0 %v10092_v8  ;;  %v2919_v8 = vld [vmem:[#allocation4 + $0x3d0] sm:$0xff] }
 0x1b9   : > { %10097 = vmatprep.subr.bf16.mxu0 %v10096_v17  ;;  %v10132_v24 = vpack.c.bf16 %v2920_v30, %v2919_v8  ;;  %v3287_v8 = vld [vmem:[#allocation4 + $0x440] sm:$0xff]  ;;  %v10188_v30 = vpack.c.bf16 %v3752_v2, %v3751_v55  ;;  %v3260_v55 = vld [vmem:[#allocation2 + $0xda] sm:$0xff]  ;;  %v3261_v2 = vld [vmem:[#allocation2 + $0xe2] sm:$0xff] }
 0x1bb   : > { %8893 = vmatmul.mubr.f32.gmra.mrb[8].mxu0 %v11655_v15  ;;  %v10112_v15 = vpack.c.bf16 %v2910_v41, %v2909_v40  ;;  %v2521_v40 = vld [vmem:[#allocation2 + $0xe0] sm:$0xff]  ;;  %v2522_v41 = vld [vmem:[#allocation2 + $0xf0] sm:$0xff] }
 0x1bc   : > { %8895 = vmatprep.mubr.f32.mxu0 %v11657_v25  ;;  %10099 = vmatpush3.bf16.msra.mxu0 %v10096_v17  ;;  %v12762_v25 = vld [vmem:[#allocation31_spill] sm:$0xff]  ;;  %v2921_v17 = vld [vmem:[#allocation4 + $0x3e0] sm:$0xff] }
 0x1bd   : > { %10101 = vmatprep.subr.bf16.mxu0 %v10100_v32  ;;  %v10136_v28 = vpack.c.bf16 %v2922_v18, %v2921_v17  ;;  %v2883_v17 = vld [vmem:[#allocation2 + $0x81] sm:$0xff]  ;;  %v2884_v18 = vld [vmem:[#allocation2 + $0x91] sm:$0xff] }
 0x1bf   : > { %8896 = vmatmul.mubr.f32.gmra.mrb[10].mxu0 %v11661_v52  ;;  %v12764_v52 = vld [vmem:[#allocation33_spill] sm:$0xff] }
 0x1c0   : > { %8898 = vmatprep.mubr.f32.mxu0 %v11663_v0  ;;  %10103 = vmatpush3.bf16.msra.mxu0 %v10100_v32  ;;  %v12765_v0 = vld [vmem:[#allocation34_spill] sm:$0xff]  ;;  %v2923_v32 = vld [vmem:[#allocation4 + $0x3f0] sm:$0xff] }
 0x1c1   : > { %10105 = vmatprep.subr.bf16.mxu0 %v10104_v36  ;;  %v10140_v37 = vpack.c.bf16 %v2924_v33, %v2923_v32  ;;  %v3290_v32 = vld [vmem:[#allocation4 + $0x458] sm:$0xff]  ;;  %v3755_v33 = vld [vmem:[#allocation4 + $0x4d0] sm:$0xff] }
 0x1c3   : > { %8899 = vmatmul.mubr.f32.gmra.mrb[12].mxu0 %v12760_v42 }
 0x1c4   : > { %8901 = vmatprep.mubr.f32.mxu0 %v12761_v43  ;;  %10107 = vmatpush3.bf16.msra.mxu0 %v10104_v36  ;;  %v2520_v36 = vld [vmem:[#allocation2 + $0xd8] sm:$0xff] }
 0x1c5   : > { %10109 = vmatprep.subr.bf16.mxu0 %v10108_v39  ;;  %v2523_v43 = vld [vmem:[#allocation2 + $0xf8] sm:$0xff] }
 0x1c7   : > { %8902 = vmatmul.mubr.f32.gmra.mrb[14].mxu0 %v12762_v25  ;;  %v2525_v25 = vld [vmem:[#allocation2 + $0x110] sm:$0xff] }
 0x1c8   : > { %8904 = vmatprep.mubr.f32.mxu0 %v12763_v44  ;;  %10111 = vmatpush3.bf16.msra.mxu0 %v10108_v39  ;;  %v3280_v39 = vld [vmem:[#allocation4 + $0x408] sm:$0xff]  ;;  %v2526_v44 = vld [vmem:[#allocation2 + $0x120] sm:$0xff] }
 0x1c9   : > { %10113 = vmatprep.subr.bf16.mxu0 %v10112_v15  ;;  %v10144_v42 = vpack.c.bf16 %v3280_v39, %v3279_v38 }
 0x1cb   : > { %8905 = vmatmul.mubr.f32.gmra.mrb[16].mxu0 %v12764_v52  ;;  %v2527_v52 = vld [vmem:[#allocation2 + $0x128] sm:$0xff] }
 0x1cc   : > { %8907 = vmatprep.mubr.f32.mxu0 %v12765_v0  ;;  %v2528_v0 = vld [vmem:[#allocation2 + $0x138] sm:$0xff] }
 0x1cf   : > { %8908 = vmatmul.mubr.f32.gmra.mrb[18].mxu0 %v12766_v45  ;;  %v2529_v45 = vld [vmem:[#allocation2 + $0x140] sm:$0xff] }
 0x1d0   : > { %8910 = vmatprep.mubr.f32.mxu0 %v12767_v46  ;;  %v2530_v46 = vld [vmem:[#allocation2 + $0x150] sm:$0xff] }
 0x1d3   : > { %8911 = vmatmul.mubr.f32.gmra.mrb[20].mxu0 %v12768_v47  ;;  %v2531_v47 = vld [vmem:[#allocation2 + $0x158] sm:$0xff] }
 0x1d4   : > { %8913 = vmatprep.mubr.f32.mxu0 %v12769_v48  ;;  %v2532_v48 = vld [vmem:[#allocation2 + $0x168] sm:$0xff] }
 0x1d7   : > { %8914 = vmatmul.mubr.f32.gmra.mrb[22].mxu0 %v12770_v49  ;;  %v2533_v49 = vld [vmem:[#allocation2 + $0x170] sm:$0xff] }
 0x1d8   : > { %8916 = vmatprep.mubr.f32.mxu0 %v12771_v54  ;;  %v2536_v54 = vld [vmem:[#allocation2 + $0x198] sm:$0xff] }
 0x1db   : > { %8917 = vmatmul.mubr.f32.gmra.mrb[24].mxu0 %v12772_v58  ;;  %v2876_v58 = vld [vmem:[#allocation2 + $0x31] sm:$0xff] }
 0x1dc   : > { %8919 = vmatprep.mubr.f32.mxu0 %v12773_v59  ;;  %v3281_v59 = vld [vmem:[#allocation4 + $0x410] sm:$0xff] }
 0x1df   : > { %8920 = vmatmul.mubr.f32.gmra.mrb[26].mxu0 %v12774_v1  ;;  %v3282_v1 = vld [vmem:[#allocation4 + $0x418] sm:$0xff] }
 0x1e0   : > { %8922 = vmatprep.mubr.f32.mxu0 %v12775_v4  ;;  %v11828_v4 = vld [vmem:[#allocation2 + $0x8] sm:$0xff] }
 0x1e3   : > { %8923 = vmatmul.mubr.f32.gmra.mrb[28].mxu0 %v12776_v11  ;;  %v3745_v11 = vld [vmem:[#allocation4 + $0x480] sm:$0xff] }
 0x1e4   : > { %8925 = vmatprep.mubr.f32.mxu0 %v11819_v10 }
 0x1e7   : > { %8926 = vmatmul.mubr.f32.gmra.mrb[30].mxu0 %v11823_v19 }
 0x1e8   : > { %8960 = vmatprep.mubr.f32.mxu0 %v2506_v20  ;;  %v3746_v20 = vld [vmem:[#allocation4 + $0x488] sm:$0xff] }
 0x1e9   : > { %v10176_v29 = vpack.c.bf16 %v3746_v20, %v3745_v11  ;;  %v2899_v11 = vld [vmem:[#allocation2 + $0x141] sm:$0xff]  ;;  %v2900_v20 = vld [vmem:[#allocation2 + $0x151] sm:$0xff] }
 0x1eb   : > { %8961 = vmatmul.mubr.f32.vlgmr.msra.gmra.mrb[0].mxu0 %v2507_v50  ;;  %v3747_v50 = vld [vmem:[#allocation4 + $0x490] sm:$0xff]  ;;  %10177 = vmatprep.subr.bf16.mxu1 %v10176_v29 }
 0x1ec   : > { %10115 = vmatpush3.bf16.msra.mxu0 %v10112_v15  ;;  %8963 = vmatprep.mubr.f32.mxu0 %v2508_v51  ;;  %v2524_v15 = vld [vmem:[#allocation2 + $0x108] sm:$0xff] }
 0x1ed   : > { %10117 = vmatprep.subr.bf16.mxu0 %v10116_v56  ;;  %v3748_v51 = vld [vmem:[#allocation4 + $0x498] sm:$0xff]  ;;  %10179 = vmatpush3.bf16.msra.mxu1 %v10176_v29 }
 0x1ee   : > { %v10180_v62 = vpack.c.bf16 %v3748_v51, %v3747_v50  ;;  %v2902_v29 = vld [vmem:[#allocation2 + $0x169] sm:$0xff]  ;;  %v2903_v50 = vld [vmem:[#allocation2 + $0x171] sm:$0xff]  ;;  %v7334_v51 = vld [vmem:[#allocation2 + $0x199] sm:$0xff] }
 0x1ef   : > { %8964 = vmatmul.mubr.f32.gmra.mrb[2].mxu0 %v2509_v6  ;;  %v3749_v6 = vld [vmem:[#allocation4 + $0x4a0] sm:$0xff] }
 0x1f0   : > { %8966 = vmatprep.mubr.f32.mxu0 %v2510_v21  ;;  %10119 = vmatpush3.bf16.msra.mxu0 %v10116_v56  ;;  %v2878_v56 = vld [vmem:[#allocation2 + $0x49] sm:$0xff]  ;;  %v3750_v21 = vld [vmem:[#allocation4 + $0x4a8] sm:$0xff] }
 0x1f1   : > { %10121 = vmatprep.subr.bf16.mxu0 %v10120_v34  ;;  %10181 = vmatprep.subr.bf16.mxu1 %v10180_v62 }
 0x1f2   : > { %10183 = vmatpush3.bf16.msra.mxu1 %v10180_v62  ;;  %v3248_v62 = vld [vmem:[#allocation2 + $0x4a] sm:$0xff] }
 0x1f3   : > { %8967 = vmatmul.mubr.f32.gmra.mrb[4].mxu0 %v2511_v60  ;;  %v3285_v60 = vld [vmem:[#allocation4 + $0x430] sm:$0xff] }
 0x1f4   : > { %8969 = vmatprep.mubr.f32.mxu0 %v2512_v61  ;;  %10123 = vmatpush3.bf16.msra.mxu0 %v10120_v34  ;;  %v2879_v34 = vld [vmem:[#allocation2 + $0x51] sm:$0xff]  ;;  %v10184_v61 = vpack.c.bf16 %v3750_v21, %v3749_v6  ;;  %v3250_v6 = vld [vmem:[#allocation2 + $0x62] sm:$0xff] }
 0x1f5   : > { %10125 = vmatprep.subr.bf16.mxu0 %v10124_v16  ;;  %v3251_v21 = vld [vmem:[#allocation2 + $0x6a] sm:$0xff] }
 0x1f6   : > { %10185 = vmatprep.subr.bf16.mxu1 %v10184_v61 }
 0x1f7   : > { %8970 = vmatmul.mubr.f32.gmra.mrb[6].mxu0 %v2513_v3  ;;  %v2881_v3 = vld [vmem:[#allocation2 + $0x69] sm:$0xff]  ;;  %10187 = vmatpush3.bf16.msra.mxu1 %v10184_v61 }
 0x1f8   : > { %8972 = vmatprep.mubr.f32.mxu0 %v2514_v53  ;;  %10127 = vmatpush3.bf16.msra.mxu0 %v10124_v16  ;;  %v3286_v16 = vld [vmem:[#allocation4 + $0x438] sm:$0xff]  ;;  %v2882_v53 = vld [vmem:[#allocation2 + $0x79] sm:$0xff] }
 0x1f9   : > { %10129 = vmatprep.subr.bf16.mxu0 %v10128_v7  ;;  %10189 = vmatprep.subr.bf16.mxu1 %v10188_v30  ;;  %v3258_v61 = vld [vmem:[#allocation2 + $0xc2] sm:$0xff] }
 0x1fb   : > { %8973 = vmatmul.mubr.f32.gmra.mrb[8].mxu0 %v2515_v12  ;;  %v3288_v12 = vld [vmem:[#allocation4 + $0x448] sm:$0xff]  ;;  %10191 = vmatpush3.bf16.msra.mxu1 %v10188_v30  ;;  %v3266_v30 = vld [vmem:[#allocation2 + $0x122] sm:$0xff] }
 0x1fc   : > { %8975 = vmatprep.mubr.f32.mxu0 %v2516_v13  ;;  %10131 = vmatpush3.bf16.msra.mxu0 %v10128_v7  ;;  %v10156_v7 = vpack.c.bf16 %v3286_v16, %v3285_v60  ;;  %v3753_v13 = vld [vmem:[#allocation4 + $0x4c0] sm:$0xff] }
 0x1fd   : > { %10133 = vmatprep.subr.bf16.mxu0 %v10132_v24  ;;  %v3257_v60 = vld [vmem:[#allocation2 + $0xb2] sm:$0xff]  ;;  %v3259_v16 = vld [vmem:[#allocation2 + $0xca] sm:$0xff] }
 0x1ff   : > { %8976 = vmatmul.mubr.f32.gmra.mrb[10].mxu0 %v2517_v31  ;;  %v10160_v31 = vpack.c.bf16 %v3288_v12, %v3287_v8  ;;  %v3265_v8 = vld [vmem:[#allocation2 + $0x112] sm:$0xff]  ;;  %v3267_v12 = vld [vmem:[#allocation2 + $0x12a] sm:$0xff] }
 0x200   : > { %8978 = vmatprep.mubr.f32.mxu0 %v2518_v22  ;;  %10135 = vmatpush3.bf16.msra.mxu0 %v10132_v24  ;;  %v3754_v24 = vld [vmem:[#allocation4 + $0x4c8] sm:$0xff]  ;;  %v3289_v22 = vld [vmem:[#allocation4 + $0x450] sm:$0xff] }
 0x201   : > { %10137 = vmatprep.subr.bf16.mxu0 %v10136_v28  ;;  %v10164_v38 = vpack.c.bf16 %v3290_v32, %v3289_v22  ;;  %v3273_v22 = vld [vmem:[#allocation2 + $0x172] sm:$0xff]  ;;  %v3277_v32 = vld [vmem:[#allocation2 + $0x1a2] sm:$0xff] }
 0x203   : > { %8979 = vmatmul.mubr.f32.gmra.mrb[12].mxu0 %v2519_v35  ;;  %v3756_v35 = vld [vmem:[#allocation4 + $0x4d8] sm:$0xff] }
 0x204   : > { %8981 = vmatprep.mubr.f32.mxu0 %v2520_v36  ;;  %10139 = vmatpush3.bf16.msra.mxu0 %v10136_v28  ;;  %v10192_v28 = vpack.c.bf16 %v3754_v24, %v3753_v13  ;;  %v2885_v36 = vld [vmem:[#allocation2 + $0x99] sm:$0xff]  ;;  %v10196_v39 = vpack.c.bf16 %v3756_v35, %v3755_v33  ;;  %v3269_v24 = vld [vmem:[#allocation2 + $0x142] sm:$0xff]  ;;  %v3757_v33 = vld [vmem:[#allocation4 + $0x4e0] sm:$0xff] }
 0x205   : > { %10141 = vmatprep.subr.bf16.mxu0 %v10140_v37  ;;  %v3268_v13 = vld [vmem:[#allocation2 + $0x13a] sm:$0xff] }
 0x206   : > { %10193 = vmatprep.subr.bf16.mxu1 %v10192_v28  ;;  %v3758_v35 = vld [vmem:[#allocation4 + $0x4e8] sm:$0xff] }
 0x207   : > { %8982 = vmatmul.mubr.f32.gmra.mrb[14].mxu0 %v2521_v40  ;;  %v3291_v40 = vld [vmem:[#allocation4 + $0x460] sm:$0xff]  ;;  %10195 = vmatpush3.bf16.msra.mxu1 %v10192_v28  ;;  %v3276_v28 = vld [vmem:[#allocation2 + $0x19a] sm:$0xff] }
 0x208   : > { %8984 = vmatprep.mubr.f32.mxu0 %v2522_v41  ;;  %10143 = vmatpush3.bf16.msra.mxu0 %v10140_v37  ;;  %v2886_v37 = vld [vmem:[#allocation2 + $0xa9] sm:$0xff]  ;;  %v3292_v41 = vld [vmem:[#allocation4 + $0x468] sm:$0xff] }
 0x209   : > { %10145 = vmatprep.subr.bf16.mxu0 %v10144_v42  ;;  %10197 = vmatprep.subr.bf16.mxu1 %v10196_v39 }
 0x20b   : > { %8985 = vmatmul.mubr.f32.gmra.mrb[16].mxu0 %v2523_v43  ;;  %v2888_v43 = vld [vmem:[#allocation2 + $0xc1] sm:$0xff]  ;;  %10199 = vmatpush3.bf16.msra.mxu1 %v10196_v39 }
 0x20c   : > { %8987 = vmatprep.mubr.f32.mxu0 %v2524_v15  ;;  %v10168_v15 = vpack.c.bf16 %v3292_v41, %v3291_v40  ;;  %v3712_v40 = vld [vmem:[#allocation2] sm:$0xff]  ;;  %v4060_v41 = vld [vmem:[#allocation4 + $0x508] sm:$0xff] }
 0x20d   : > { %9200 = vmatprep.mubr.f32.mxu1 %v3712_v40 }
 0x20f   : > { %8988 = vmatmul.mubr.f32.gmra.mrb[18].mxu0 %v2525_v25  ;;  %v3293_v25 = vld [vmem:[#allocation4 + $0x470] sm:$0xff] }
 0x210   : > { %8990 = vmatprep.mubr.f32.mxu0 %v2526_v44  ;;  %v3294_v44 = vld [vmem:[#allocation4 + $0x478] sm:$0xff] }
 0x213   : > { %8991 = vmatmul.mubr.f32.gmra.mrb[20].mxu0 %v2527_v52  ;;  %v2889_v52 = vld [vmem:[#allocation2 + $0xc9] sm:$0xff] }
 0x214   : > { %8993 = vmatprep.mubr.f32.mxu0 %v2528_v0  ;;  %v2890_v0 = vld [vmem:[#allocation2 + $0xd9] sm:$0xff] }
 0x217   : > { %8994 = vmatmul.mubr.f32.gmra.mrb[22].mxu0 %v2529_v45  ;;  %v10172_v45 = vpack.c.bf16 %v3294_v44, %v3293_v25  ;;  %v4063_v25 = vld [vmem:[#allocation4 + $0x520] sm:$0xff]  ;;  %v4064_v44 = vld [vmem:[#allocation4 + $0x528] sm:$0xff] }
 0x218   : > { %8996 = vmatprep.mubr.f32.mxu0 %v2530_v46  ;;  %v2891_v46 = vld [vmem:[#allocation2 + $0xe1] sm:$0xff] }
 0x21b   : > { %8997 = vmatmul.mubr.f32.gmra.mrb[24].mxu0 %v2531_v47  ;;  %v2892_v47 = vld [vmem:[#allocation2 + $0xf1] sm:$0xff] }
 0x21c   : > { %8999 = vmatprep.mubr.f32.mxu0 %v2532_v48  ;;  %v2893_v48 = vld [vmem:[#allocation2 + $0xf9] sm:$0xff] }
 0x21f   : > { %9000 = vmatmul.mubr.f32.gmra.mrb[26].mxu0 %v2533_v49  ;;  %v2894_v49 = vld [vmem:[#allocation2 + $0x109] sm:$0xff] }
 0x220   : > { %9002 = vmatprep.mubr.f32.mxu0 %v11747_v23  ;;  %v10148_v23 = vpack.c.bf16 %v3282_v1, %v3281_v59  ;;  %v2897_v59 = vld [vmem:[#allocation2 + $0x129] sm:$0xff]  ;;  %v2898_v1 = vld [vmem:[#allocation2 + $0x139] sm:$0xff] }
 0x223   : > { %9003 = vmatmul.mubr.f32.gmra.mrb[28].mxu0 %v11751_v27  ;;  %v3284_v27 = vld [vmem:[#allocation4 + $0x428] sm:$0xff] }
 0x224   : > { %9005 = vmatprep.mubr.f32.mxu0 %v2536_v54  ;;  %v10152_v14 = vpack.c.bf16 %v3284_v27, %v3283_v57  ;;  %v2895_v54 = vld [vmem:[#allocation2 + $0x111] sm:$0xff]  ;;  %v3247_v57 = vld [vmem:[#allocation2 + $0x3a] sm:$0xff] }
 0x225   : > { %v3249_v27 = vld [vmem:[#allocation2 + $0x52] sm:$0xff] }
 0x227   : > { %9006 = vmatmul.mubr.f32.gmra.mrb[30].mxu0 %v11828_v4 }
 0x228   : > { %9040 = vmatprep.mubr.f32.mxu0 %v2876_v58  ;;  %v2896_v58 = vld [vmem:[#allocation2 + $0x121] sm:$0xff] }
 0x22b   : > { %9041 = vmatmul.mubr.f32.vlgmr.msra.gmra.mrb[0].mxu0 %v2877_v26  ;;  %v2901_v26 = vld [vmem:[#allocation2 + $0x159] sm:$0xff] }
 0x22c   : > { %10147 = vmatpush3.bf16.msra.mxu0 %v10144_v42  ;;  %9043 = vmatprep.mubr.f32.mxu0 %v2878_v56  ;;  %v2887_v42 = vld [vmem:[#allocation2 + $0xb1] sm:$0xff]  ;;  %v2907_v56 = vld [vmem:[#allocation2 + $0x1a1] sm:$0xff] }
 0x22d   : > { %10149 = vmatprep.subr.bf16.mxu0 %v10148_v23 }
 0x22f   : > { %9044 = vmatmul.mubr.f32.gmra.mrb[2].mxu0 %v2879_v34  ;;  %v3252_v34 = vld [vmem:[#allocation2 + $0x7a] sm:$0xff] }
 0x230   : > { %9046 = vmatprep.mubr.f32.mxu0 %v2880_v9  ;;  %10151 = vmatpush3.bf16.msra.mxu0 %v10148_v23  ;;  %v3246_v23 = vld [vmem:[#allocation2 + $0x32] sm:$0xff] }
 0x231   : > { %10153 = vmatprep.subr.bf16.mxu0 %v10152_v14  ;;  %v3254_v9 = vld [vmem:[#allocation2 + $0x92] sm:$0xff] }
 0x233   : > { %9047 = vmatmul.mubr.f32.gmra.mrb[4].mxu0 %v2881_v3  ;;  %v3262_v3 = vld [vmem:[#allocation2 + $0xf2] sm:$0xff] }
 0x234   : > { %9049 = vmatprep.mubr.f32.mxu0 %v2882_v53  ;;  %10155 = vmatpush3.bf16.msra.mxu0 %v10152_v14  ;;  %v3256_v14 = vld [vmem:[#allocation2 + $0xaa] sm:$0xff]  ;;  %v3263_v53 = vld [vmem:[#allocation2 + $0xfa] sm:$0xff] }
 0x235   : > { %10157 = vmatprep.subr.bf16.mxu0 %v10156_v7 }
 0x237   : > { %9050 = vmatmul.mubr.f32.gmra.mrb[6].mxu0 %v2883_v17  ;;  %v3270_v17 = vld [vmem:[#allocation2 + $0x152] sm:$0xff] }
 0x238   : > { %9052 = vmatprep.mubr.f32.mxu0 %v2884_v18  ;;  %10159 = vmatpush3.bf16.msra.mxu0 %v10156_v7  ;;  %v3264_v7 = vld [vmem:[#allocation2 + $0x10a] sm:$0xff]  ;;  %v3271_v18 = vld [vmem:[#allocation2 + $0x15a] sm:$0xff] }
 0x239   : > { %10161 = vmatprep.subr.bf16.mxu0 %v10160_v31 }
 0x23b   : > { %9053 = vmatmul.mubr.f32.gmra.mrb[8].mxu0 %v2885_v36  ;;  %v10200_v36 = vpack.c.bf16 %v3758_v35, %v3757_v33 }
 0x23c   : > { %9055 = vmatprep.mubr.f32.mxu0 %v2886_v37  ;;  %10163 = vmatpush3.bf16.msra.mxu0 %v10160_v31  ;;  %v3272_v31 = vld [vmem:[#allocation2 + $0x16a] sm:$0xff]  ;;  %v3759_v37 = vld [vmem:[#allocation4 + $0x4f0] sm:$0xff] }
 0x23d   : > { %10165 = vmatprep.subr.bf16.mxu0 %v10164_v38  ;;  %10201 = vmatprep.subr.bf16.mxu1 %v10200_v36 }
 0x23e   : > { %10203 = vmatpush3.bf16.msra.mxu1 %v10200_v36 }
 0x23f   : > { %9056 = vmatmul.mubr.f32.gmra.mrb[10].mxu0 %v2887_v42  ;;  %v4061_v42 = vld [vmem:[#allocation4 + $0x510] sm:$0xff] }
 0x240   : > { %9058 = vmatprep.mubr.f32.mxu0 %v2888_v43  ;;  %10167 = vmatpush3.bf16.msra.mxu0 %v10164_v38  ;;  %v3760_v38 = vld [vmem:[#allocation4 + $0x4f8] sm:$0xff] }
 0x241   : > { %10169 = vmatprep.subr.bf16.mxu0 %v10168_v15  ;;  %v10204_v39 = vpack.c.bf16 %v3760_v38, %v3759_v37  ;;  %v4062_v43 = vld [vmem:[#allocation4 + $0x518] sm:$0xff] }
 0x243   : > { %9059 = vmatmul.mubr.f32.gmra.mrb[12].mxu0 %v2889_v52  ;;  %10205 = vmatprep.subr.bf16.mxu1 %v10204_v39  ;;  %v10216_v52 = vpack.c.bf16 %v4064_v44, %v4063_v25 }
 0x244   : > { %9061 = vmatprep.mubr.f32.mxu0 %v2890_v0  ;;  %10171 = vmatpush3.bf16.msra.mxu0 %v10168_v15  ;;  %v10212_v15 = vpack.c.bf16 %v4062_v43, %v4061_v42  ;;  %v4065_v0 = vld [vmem:[#allocation4 + $0x530] sm:$0xff] }
 0x245   : > { %10173 = vmatprep.subr.bf16.mxu0 %v10172_v45  ;;  %10207 = vmatpush3.bf16.msra.mxu1 %v10204_v39 }
 0x247   : > { %9062 = vmatmul.mubr.f32.gmra.mrb[14].mxu0 %v2891_v46 }
 0x248   : > { %9064 = vmatprep.mubr.f32.mxu0 %v2892_v47  ;;  %10175 = vmatpush3.bf16.msra.mxu0 %v10172_v45  ;;  %v4066_v45 = vld [vmem:[#allocation4 + $0x538] sm:$0xff]  ;;  %v4068_v47 = vld [vmem:[#allocation4 + $0x548] sm:$0xff] }
 0x249   : > { %9201 = vmatmul.mubr.f32.vlgmr.msra.gmra.mrb[0].mxu1 %v11828_v4  ;;  %v10220_v46 = vpack.c.bf16 %v4066_v45, %v4065_v0  ;;  %v4067_v4 = vld [vmem:[#allocation4 + $0x540] sm:$0xff] }
 0x24b   : > { %9065 = vmatmul.mubr.f32.gmra.mrb[16].mxu0 %v2893_v48  ;;  %v10224_v48 = vpack.c.bf16 %v4068_v47, %v4067_v4 }
 0x24c   : > { %9067 = vmatprep.mubr.f32.mxu0 %v2894_v49  ;;  %v4069_v49 = vld [vmem:[#allocation4 + $0x550] sm:$0xff] }
 0x24f   : > { %9068 = vmatmul.mubr.f32.gmra.mrb[18].mxu0 %v2895_v54  ;;  %v4070_v54 = vld [vmem:[#allocation4 + $0x558] sm:$0xff] }
 0x250   : > { %9070 = vmatprep.mubr.f32.mxu0 %v2896_v58  ;;  %v10228_v58 = vpack.c.bf16 %v4070_v54, %v4069_v49 }
 0x253   : > { %9071 = vmatmul.mubr.f32.gmra.mrb[20].mxu0 %v2897_v59  ;;  %v4071_v59 = vld [vmem:[#allocation4 + $0x560] sm:$0xff] }
 0x254   : > { %9073 = vmatprep.mubr.f32.mxu0 %v2898_v1  ;;  %v4072_v1 = vld [vmem:[#allocation4 + $0x568] sm:$0xff] }
 0x257   : > { %9074 = vmatmul.mubr.f32.gmra.mrb[22].mxu0 %v2899_v11  ;;  %v10232_v11 = vpack.c.bf16 %v4072_v1, %v4071_v59 }
 0x258   : > { %9076 = vmatprep.mubr.f32.mxu0 %v2900_v20  ;;  %v4073_v20 = vld [vmem:[#allocation4 + $0x570] sm:$0xff] }
 0x25b   : > { %9077 = vmatmul.mubr.f32.gmra.mrb[24].mxu0 %v2901_v26  ;;  %v4074_v26 = vld [vmem:[#allocation4 + $0x578] sm:$0xff] }
 0x25c   : > { %9079 = vmatprep.mubr.f32.mxu0 %v2902_v29  ;;  %v10236_v29 = vpack.c.bf16 %v4074_v26, %v4073_v20 }
 0x25f   : > { %9080 = vmatmul.mubr.f32.gmra.mrb[26].mxu0 %v2903_v50  ;;  %v4429_v50 = vld [vmem:[#allocation4 + $0x580] sm:$0xff] }
 0x260   : > { %9082 = vmatprep.mubr.f32.mxu0 %v11783_v63  ;;  %v3253_v63 = vld [vmem:[#allocation2 + $0x82] sm:$0xff] }
 0x263   : > { %9083 = vmatmul.mubr.f32.gmra.mrb[28].mxu0 %v11787_v5  ;;  %v3255_v5 = vld [vmem:[#allocation2 + $0x9a] sm:$0xff] }
 0x264   : > { %9085 = vmatprep.mubr.f32.mxu0 %v7334_v51  ;;  %v4430_v51 = vld [vmem:[#allocation4 + $0x588] sm:$0xff] }
 0x267   : > { %9086 = vmatmul.mubr.f32.gmra.mrb[30].mxu0 %v2907_v56  ;;  %v11836_v56 = vpack.c.bf16 %v4430_v51, %v4429_v50 }
 0x268   : > { %9120 = vmatprep.mubr.f32.mxu0 %v3246_v23  ;;  %v11839_v23 = vld [vmem:[#allocation6] ss:$0 sm:$0xff] }
 0x26b   : > { %9121 = vmatmul.mubr.f32.vlgmr.msra.gmra.mrb[0].mxu0 %v3247_v57 }
 0x26c   : > { %9123 = vmatprep.mubr.f32.mxu0 %v3248_v62 }
 0x26f   : > { %9124 = vmatmul.mubr.f32.gmra.mrb[2].mxu0 %v3249_v27 }
 0x270   : > { %9126 = vmatprep.mubr.f32.mxu0 %v3250_v6 }
 0x273   : > { %9127 = vmatmul.mubr.f32.gmra.mrb[4].mxu0 %v3251_v21 }
 0x274   : > { %9129 = vmatprep.mubr.f32.mxu0 %v3252_v34 }
 0x277   : > { %9130 = vmatmul.mubr.f32.gmra.mrb[6].mxu0 %v3253_v63 }
 0x278   : > { %9132 = vmatprep.mubr.f32.mxu0 %v3254_v9 }
 0x27b   : > { %9133 = vmatmul.mubr.f32.gmra.mrb[8].mxu0 %v3255_v5 }
 0x27c   : > { %9135 = vmatprep.mubr.f32.mxu0 %v3256_v14 }
 0x27f   : > { %9136 = vmatmul.mubr.f32.gmra.mrb[10].mxu0 %v3257_v60 }
 0x280   : > { %9138 = vmatprep.mubr.f32.mxu0 %v3258_v61 }
 0x283   : > { %9139 = vmatmul.mubr.f32.gmra.mrb[12].mxu0 %v3259_v16 }
 0x284   : > { %9141 = vmatprep.mubr.f32.mxu0 %v3260_v55 }
 0x287   : > { %9142 = vmatmul.mubr.f32.gmra.mrb[14].mxu0 %v3261_v2 }
 0x288   : > { %9144 = vmatprep.mubr.f32.mxu0 %v3262_v3 }
 0x28b   : > { %9145 = vmatmul.mubr.f32.gmra.mrb[16].mxu0 %v3263_v53 }
 0x28c   : > { %9147 = vmatprep.mubr.f32.mxu0 %v3264_v7 }
 0x28f   : > { %9148 = vmatmul.mubr.f32.gmra.mrb[18].mxu0 %v3265_v8 }
 0x290   : > { %9150 = vmatprep.mubr.f32.mxu0 %v3266_v30 }
 0x293   : > { %9151 = vmatmul.mubr.f32.gmra.mrb[20].mxu0 %v3267_v12 }
 0x294   : > { %9153 = vmatprep.mubr.f32.mxu0 %v3268_v13 }
 0x297   : > { %9154 = vmatmul.mubr.f32.gmra.mrb[22].mxu0 %v3269_v24 }
 0x298   : > { %9156 = vmatprep.mubr.f32.mxu0 %v3270_v17 }
 0x29b   : > { %9157 = vmatmul.mubr.f32.gmra.mrb[24].mxu0 %v3271_v18 }
 0x29c   : > { %9159 = vmatprep.mubr.f32.mxu0 %v3272_v31 }
 0x29f   : > { %9160 = vmatmul.mubr.f32.gmra.mrb[26].mxu0 %v3273_v22 }
 0x2a0   : > { %9162 = vmatprep.mubr.f32.mxu0 %v11819_v10  ;;  %v4059_v10 = vld [vmem:[#allocation4 + $0x500] sm:$0xff] }
 0x2a3   : > { %9163 = vmatmul.mubr.f32.gmra.mrb[28].mxu0 %v11823_v19  ;;  %v10208_v19 = vpack.c.bf16 %v4060_v41, %v4059_v10 }
 0x2a4   : > { %9165 = vmatprep.mubr.f32.mxu0 %v3276_v28 }
 0x2a5   : > { %10209 = vmatprep.subr.bf16.mxu1 %v10208_v19 }
 0x2a6   : > { %10211 = vmatpush3.bf16.msra.mxu1 %v10208_v19 }
 0x2a7   : > { %9166 = vmatmul.mubr.f32.gmra.mrb[30].mxu0 %v3277_v32  ;;  %10213 = vmatprep.subr.bf16.mxu1 %v10212_v15 }
 0x2aa   : > { %10215 = vmatpush3.bf16.msra.mxu1 %v10212_v15 }
 0x2ab   : > { %10217 = vmatprep.subr.bf16.mxu1 %v10216_v52 }
 0x2ae   : > { %10219 = vmatpush3.bf16.msra.mxu1 %v10216_v52 }
 0x2af   : > { %10221 = vmatprep.subr.bf16.mxu1 %v10220_v46 }
 0x2b2   : > { %10223 = vmatpush3.bf16.msra.mxu1 %v10220_v46 }
 0x2b3   : > { %10225 = vmatprep.subr.bf16.mxu1 %v10224_v48 }
 0x2b6   : > { %10227 = vmatpush3.bf16.msra.mxu1 %v10224_v48 }
 0x2b7   : > { %10229 = vmatprep.subr.bf16.mxu1 %v10228_v58 }
 0x2ba   : > { %10231 = vmatpush3.bf16.msra.mxu1 %v10228_v58 }
 0x2bb   : > { %10233 = vmatprep.subr.bf16.mxu1 %v10232_v11 }
 0x2be   : > { %10235 = vmatpush3.bf16.msra.mxu1 %v10232_v11 }
 0x2bf   : > { %10237 = vmatprep.subr.bf16.mxu1 %v10236_v29 }
 0x2c2   : > { %10239 = vmatpush3.bf16.msra.mxu1 %v10236_v29 }
 0x2c3   : > { %10241 = vmatprep.subr.bf16.mxu1 %v11836_v56 }
 0x33e   : > { %v9122_v57 = vpop.f32.mrb[0].mxu0 }
 0x33f   : > { %v11842_v62 = vadd.f32 %v9122_v57, %v11839_v23  ;;  %v3361_v27 = vpop.f32.mrb[1].mxu0 }
 0x340   : > { %v11845_v6 = vadd.f32 %v11839_v23, %v3361_v27 }
 0x341   : > { %v12667_v21 = vmax.f32 %v11842_v62, 0.0 }
 0x342   : > { %v12668_v34 = vmax.f32 %v11845_v6, 0.0  ;;  %v9125_v63 = vpop.f32.mrb[2].mxu0 }
 0x343   : > { %3681 = vst [vmem:[#allocation2 + $0x21] sm:$0xff] %v12667_v21  ;;  %v11852_v9 = vadd.f32 %v9125_v63, %v11839_v23  ;;  %v3371_v5 = vpop.f32.mrb[3].mxu0 }
 0x344   : > { %3680 = vst [vmem:[#allocation2 + $0x19] sm:$0xff] %v12668_v34  ;;  %v11857_v14 = vadd.f32 %v11839_v23, %v3371_v5 }
 0x345   : > { %v12665_v60 = vmax.f32 %v11852_v9, 0.0 }
 0x346   : > { %v12666_v61 = vmax.f32 %v11857_v14, 0.0  ;;  %v9128_v16 = vpop.f32.mrb[4].mxu0 }
 0x347   : > { %3683 = vst [vmem:[#allocation2 + $0x39] sm:$0xff] %v12665_v60  ;;  %v11864_v55 = vadd.f32 %v9128_v16, %v11839_v23  ;;  %v3381_v2 = vpop.f32.mrb[5].mxu0 }
 0x348   : > { %3682 = vst [vmem:[#allocation2 + $0x31] sm:$0xff] %v12666_v61  ;;  %v11869_v3 = vadd.f32 %v11839_v23, %v3381_v2 }
 0x349   : > { %v12663_v53 = vmax.f32 %v11864_v55, 0.0 }
 0x34a   : > { %v12664_v7 = vmax.f32 %v11869_v3, 0.0  ;;  %v9131_v8 = vpop.f32.mrb[6].mxu0 }
 0x34b   : > { %3685 = vst [vmem:[#allocation2 + $0x51] sm:$0xff] %v12663_v53  ;;  %v11876_v30 = vadd.f32 %v9131_v8, %v11839_v23  ;;  %v3391_v12 = vpop.f32.mrb[7].mxu0  ;;  %v11878_v13 = vld [vmem:[#allocation2 + $0x18] sm:$0xff]  ;;  %v11880_v24 = vld [vmem:[#allocation2 + $0x20] sm:$0xff] }
 0x34c   : > { %3684 = vst [vmem:[#allocation2 + $0x49] sm:$0xff] %v12664_v7  ;;  %v11885_v17 = vadd.f32 %v11839_v23, %v3391_v12  ;;  %9203 = vmatprep.mubr.f32.mxu1 %v11878_v13 }
 0x34d   : > { %v12661_v18 = vmax.f32 %v11876_v30, 0.0  ;;  %9204 = vmatmul.mubr.f32.gmra.mrb[2].mxu1 %v11880_v24 }
 0x34e   : > { %v12662_v31 = vmax.f32 %v11885_v17, 0.0  ;;  %v9134_v22 = vpop.f32.mrb[8].mxu0 }
 0x34f   : > { %3687 = vst [vmem:[#allocation2 + $0x69] sm:$0xff] %v12661_v18  ;;  %v11894_v28 = vadd.f32 %v9134_v22, %v11839_v23  ;;  %v3401_v32 = vpop.f32.mrb[9].mxu0  ;;  %v11896_v33 = vld [vmem:[#allocation2 + $0x30] sm:$0xff]  ;;  %v11898_v35 = vld [vmem:[#allocation2 + $0x38] sm:$0xff] }
 0x350   : > { %3686 = vst [vmem:[#allocation2 + $0x61] sm:$0xff] %v12662_v31  ;;  %v11903_v36 = vadd.f32 %v11839_v23, %v3401_v32  ;;  %9206 = vmatprep.mubr.f32.mxu1 %v11896_v33 }
 0x351   : > { %v12659_v37 = vmax.f32 %v11894_v28, 0.0  ;;  %9207 = vmatmul.mubr.f32.gmra.mrb[4].mxu1 %v11898_v35 }
 0x352   : > { %v12660_v38 = vmax.f32 %v11903_v36, 0.0  ;;  %v9137_v39 = vpop.f32.mrb[10].mxu0 }
 0x353   : > { %3689 = vst [vmem:[#allocation2 + $0x81] sm:$0xff] %v12659_v37  ;;  %v11912_v40 = vadd.f32 %v9137_v39, %v11839_v23  ;;  %v3411_v10 = vpop.f32.mrb[11].mxu0  ;;  %v11914_v41 = vld [vmem:[#allocation2 + $0x48] sm:$0xff]  ;;  %v11916_v19 = vld [vmem:[#allocation2 + $0x50] sm:$0xff] }
 0x354   : > { %3688 = vst [vmem:[#allocation2 + $0x79] sm:$0xff] %v12660_v38  ;;  %v10475_v42 = vadd.f32 %v11839_v23, %v3411_v10  ;;  %9209 = vmatprep.mubr.f32.mxu1 %v11914_v41 }
 0x355   : > { %v12658_v43 = vmax.f32 %v11912_v40, 0.0  ;;  %9210 = vmatmul.mubr.f32.gmra.mrb[6].mxu1 %v11916_v19 }
 0x356   : > { %v11924_v15 = vmax.f32 %v10475_v42, 0.0  ;;  %v9140_v25 = vpop.f32.mrb[12].mxu0 }
 0x357   : > { %3691 = vst [vmem:[#allocation2 + $0x99] sm:$0xff] %v12658_v43  ;;  %v10476_v44 = vadd.f32 %v9140_v25, %v11839_v23  ;;  %v3421_v52 = vpop.f32.mrb[13].mxu0  ;;  %v11929_v0 = vld [vmem:[#allocation2 + $0x60] sm:$0xff]  ;;  %v11931_v45 = vld [vmem:[#allocation2 + $0x68] sm:$0xff] }
 0x358   : > { %3690 = vst [vmem:[#allocation2 + $0x91] sm:$0xff] %v11924_v15  ;;  %v10477_v46 = vadd.f32 %v11839_v23, %v3421_v52  ;;  %9212 = vmatprep.mubr.f32.mxu1 %v11929_v0 }
 0x359   : > { %v11936_v4 = vmax.f32 %v10476_v44, 0.0  ;;  %9213 = vmatmul.mubr.f32.gmra.mrb[8].mxu1 %v11931_v45 }
 0x35a   : > { %v11939_v47 = vmax.f32 %v10477_v46, 0.0  ;;  %v9143_v48 = vpop.f32.mrb[14].mxu0 }
 0x35b   : > { %3693 = vst [vmem:[#allocation2 + $0xb1] sm:$0xff] %v11936_v4  ;;  %v10478_v49 = vadd.f32 %v9143_v48, %v11839_v23  ;;  %v3431_v54 = vpop.f32.mrb[15].mxu0  ;;  %v11943_v58 = vld [vmem:[#allocation2 + $0x78] sm:$0xff]  ;;  %v11945_v59 = vld [vmem:[#allocation2 + $0x80] sm:$0xff] }
 0x35c   : > { %3692 = vst [vmem:[#allocation2 + $0xa9] sm:$0xff] %v11939_v47  ;;  %v10479_v1 = vadd.f32 %v11839_v23, %v3431_v54  ;;  %9215 = vmatprep.mubr.f32.mxu1 %v11943_v58 }
 0x35d   : > { %v11950_v11 = vmax.f32 %v10478_v49, 0.0  ;;  %9216 = vmatmul.mubr.f32.gmra.mrb[10].mxu1 %v11945_v59 }
 0x35e   : > { %v11953_v20 = vmax.f32 %v10479_v1, 0.0  ;;  %v9146_v26 = vpop.f32.mrb[16].mxu0 }
 0x35f   : > { %3695 = vst [vmem:[#allocation2 + $0xc9] sm:$0xff] %v11950_v11  ;;  %v10480_v29 = vadd.f32 %v9146_v26, %v11839_v23  ;;  %v3441_v50 = vpop.f32.mrb[17].mxu0  ;;  %v11957_v51 = vld [vmem:[#allocation2 + $0x90] sm:$0xff]  ;;  %v11959_v57 = vld [vmem:[#allocation2 + $0x98] sm:$0xff] }
 0x360   : > { %3694 = vst [vmem:[#allocation2 + $0xc1] sm:$0xff] %v11953_v20  ;;  %v10481_v27 = vadd.f32 %v11839_v23, %v3441_v50  ;;  %9218 = vmatprep.mubr.f32.mxu1 %v11957_v51 }
 0x361   : > { %v11964_v63 = vmax.f32 %v10480_v29, 0.0  ;;  %9219 = vmatmul.mubr.f32.gmra.mrb[12].mxu1 %v11959_v57 }
 0x362   : > { %v11967_v5 = vmax.f32 %v10481_v27, 0.0  ;;  %v9149_v16 = vpop.f32.mrb[18].mxu0 }
 0x363   : > { %3697 = vst [vmem:[#allocation2 + $0xe1] sm:$0xff] %v11964_v63  ;;  %v10482_v2 = vadd.f32 %v9149_v16, %v11839_v23  ;;  %v3451_v8 = vpop.f32.mrb[19].mxu0  ;;  %v11971_v12 = vld [vmem:[#allocation2 + $0xa8] sm:$0xff]  ;;  %v11973_v22 = vld [vmem:[#allocation2 + $0xb0] sm:$0xff] }
 0x364   : > { %3696 = vst [vmem:[#allocation2 + $0xd9] sm:$0xff] %v11967_v5  ;;  %v10483_v32 = vadd.f32 %v11839_v23, %v3451_v8  ;;  %9221 = vmatprep.mubr.f32.mxu1 %v11971_v12 }
 0x365   : > { %v11978_v39 = vmax.f32 %v10482_v2, 0.0  ;;  %9222 = vmatmul.mubr.f32.gmra.mrb[14].mxu1 %v11973_v22 }
 0x366   : > { %v11981_v10 = vmax.f32 %v10483_v32, 0.0  ;;  %v9152_v42 = vpop.f32.mrb[20].mxu0 }
 0x367   : > { %3699 = vst [vmem:[#allocation2 + $0xf9] sm:$0xff] %v11978_v39  ;;  %v10484_v25 = vadd.f32 %v9152_v42, %v11839_v23  ;;  %v3461_v44 = vpop.f32.mrb[21].mxu0  ;;  %v11985_v52 = vld [vmem:[#allocation2 + $0xc0] sm:$0xff]  ;;  %v11987_v46 = vld [vmem:[#allocation2 + $0xc8] sm:$0xff] }
 0x368   : > { %3698 = vst [vmem:[#allocation2 + $0xf1] sm:$0xff] %v11981_v10  ;;  %v10485_v48 = vadd.f32 %v11839_v23, %v3461_v44  ;;  %9224 = vmatprep.mubr.f32.mxu1 %v11985_v52 }
 0x369   : > { %v11992_v49 = vmax.f32 %v10484_v25, 0.0  ;;  %9225 = vmatmul.mubr.f32.gmra.mrb[16].mxu1 %v11987_v46 }
 0x36a   : > { %v11995_v54 = vmax.f32 %v10485_v48, 0.0  ;;  %v9155_v1 = vpop.f32.mrb[22].mxu0 }
 0x36b   : > { %3701 = vst [vmem:[#allocation2 + $0x111] sm:$0xff] %v11992_v49  ;;  %v10486_v26 = vadd.f32 %v9155_v1, %v11839_v23  ;;  %v3471_v29 = vpop.f32.mrb[23].mxu0  ;;  %v11999_v50 = vld [vmem:[#allocation2 + $0xd8] sm:$0xff]  ;;  %v12001_v27 = vld [vmem:[#allocation2 + $0xe0] sm:$0xff] }
 0x36c   : > { %3700 = vst [vmem:[#allocation2 + $0x109] sm:$0xff] %v11995_v54  ;;  %v10487_v16 = vadd.f32 %v11839_v23, %v3471_v29  ;;  %9227 = vmatprep.mubr.f32.mxu1 %v11999_v50 }
 0x36d   : > { %v12006_v2 = vmax.f32 %v10486_v26, 0.0  ;;  %9228 = vmatmul.mubr.f32.gmra.mrb[18].mxu1 %v12001_v27 }
 0x36e   : > { %v12009_v8 = vmax.f32 %v10487_v16, 0.0  ;;  %v9158_v32 = vpop.f32.mrb[24].mxu0 }
 0x36f   : > { %3703 = vst [vmem:[#allocation2 + $0x129] sm:$0xff] %v12006_v2  ;;  %v10488_v42 = vadd.f32 %v9158_v32, %v11839_v23  ;;  %v3481_v25 = vpop.f32.mrb[25].mxu0  ;;  %v12013_v44 = vld [vmem:[#allocation2 + $0xf0] sm:$0xff]  ;;  %v12015_v48 = vld [vmem:[#allocation2 + $0xf8] sm:$0xff] }
 0x370   : > { %3702 = vst [vmem:[#allocation2 + $0x121] sm:$0xff] %v12009_v8  ;;  %v10489_v1 = vadd.f32 %v11839_v23, %v3481_v25  ;;  %9230 = vmatprep.mubr.f32.mxu1 %v12013_v44 }
 0x371   : > { %v12020_v26 = vmax.f32 %v10488_v42, 0.0  ;;  %9231 = vmatmul.mubr.f32.gmra.mrb[20].mxu1 %v12015_v48 }
 0x372   : > { %v12023_v29 = vmax.f32 %v10489_v1, 0.0  ;;  %v9161_v16 = vpop.f32.mrb[26].mxu0 }
 0x373   : > { %3705 = vst [vmem:[#allocation2 + $0x141] sm:$0xff] %v12020_v26  ;;  %v10490_v32 = vadd.f32 %v9161_v16, %v11839_v23  ;;  %v3491_v43 = vpop.f32.mrb[27].mxu0  ;;  %v12027_v37 = vld [vmem:[#allocation2 + $0x108] sm:$0xff]  ;;  %v12029_v38 = vld [vmem:[#allocation2 + $0x110] sm:$0xff] }
 0x374   : > { %12777 = vst [vmem:[#allocation10_spill] sm:$0xff] %v12027_v37  ;;  %12778 = vst [vmem:[#allocation11_spill] sm:$0xff] %v12029_v38  ;;  %v10491_v25 = vadd.f32 %v11839_v23, %v3491_v43  ;;  %9233 = vmatprep.mubr.f32.mxu1 %v12027_v37  ;;  %v4436_v37 = vld [vmem:[#allocation4 + $0x5b8] sm:$0xff] }
 0x375   : > { %3704 = vst [vmem:[#allocation2 + $0x139] sm:$0xff] %v12023_v29  ;;  %v12034_v42 = vmax.f32 %v10490_v32, 0.0  ;;  %9234 = vmatmul.mubr.f32.gmra.mrb[22].mxu1 %v12029_v38  ;;  %v4435_v38 = vld [vmem:[#allocation4 + $0x5b0] sm:$0xff] }
 0x376   : > { %v12037_v1 = vmax.f32 %v10491_v25, 0.0  ;;  %v9164_v18 = vpop.f32.mrb[28].mxu0 }
 0x377   : > { %3707 = vst [vmem:[#allocation2 + $0x159] sm:$0xff] %v12034_v42  ;;  %v10492_v16 = vadd.f32 %v9164_v18, %v11839_v23  ;;  %v3501_v31 = vpop.f32.mrb[29].mxu0  ;;  %v12041_v53 = vld [vmem:[#allocation2 + $0x120] sm:$0xff]  ;;  %v12043_v7 = vld [vmem:[#allocation2 + $0x128] sm:$0xff] }
 0x378   : > { %12779 = vst [vmem:[#allocation12_spill] sm:$0xff] %v12041_v53  ;;  %12780 = vst [vmem:[#allocation13_spill] sm:$0xff] %v12043_v7  ;;  %v10493_v43 = vadd.f32 %v11839_v23, %v3501_v31  ;;  %9236 = vmatprep.mubr.f32.mxu1 %v12041_v53 }
 0x379   : > { %3706 = vst [vmem:[#allocation2 + $0x151] sm:$0xff] %v12037_v1  ;;  %v12048_v32 = vmax.f32 %v10492_v16, 0.0  ;;  %9237 = vmatmul.mubr.f32.gmra.mrb[24].mxu1 %v12043_v7 }
 0x37a   : > { %v12051_v25 = vmax.f32 %v10493_v43, 0.0  ;;  %v9167_v60 = vpop.f32.mrb[30].mxu0 }
 0x37b   : > { %3709 = vst [vmem:[#allocation2 + $0x171] sm:$0xff] %v12048_v32  ;;  %v12055_v18 = vadd.f32 %v9167_v60, %v11839_v23  ;;  %v3511_v61 = vpop.f32.mrb[31].mxu0 }
 0x37c   : > { %v12057_v21 = vld [vmem:[#allocation2 + $0x138] sm:$0xff]  ;;  %v12059_v34 = vld [vmem:[#allocation2 + $0x140] sm:$0xff]  ;;  %3708 = vst [vmem:[#allocation2 + $0x169] sm:$0xff] %v12051_v25  ;;  %v12063_v31 = vadd.f32 %v11839_v23, %v3511_v61 }
 0x37d   : > { %12781 = vst [vmem:[#allocation14_spill] sm:$0xff] %v12055_v18  ;;  %12782 = vst [vmem:[#allocation15_spill] sm:$0xff] %v12057_v21  ;;  %9239 = vmatprep.mubr.f32.mxu1 %v12057_v21  ;;  %v12672_v16 = vmax.f32 %v12055_v18, 0.0  ;;  %v4431_v18 = vld [vmem:[#allocation4 + $0x590] sm:$0xff]  ;;  %v4027_v21 = vld [vmem:[#allocation2 + $0x9] sm:$0xff] }
 0x37e   : > { %12783 = vst [vmem:[#allocation16_spill] sm:$0xff] %v12059_v34  ;;  %12784 = vst [vmem:[#allocation17_spill] sm:$0xff] %v12063_v31  ;;  %9240 = vmatmul.mubr.f32.gmra.mrb[26].mxu1 %v12059_v34  ;;  %v12676_v43 = vmax.f32 %v12063_v31, 0.0  ;;  %v4026_v34 = vld [vmem:[#allocation2 + $0x1] sm:$0xff]  ;;  %v4433_v31 = vld [vmem:[#allocation4 + $0x5a0] sm:$0xff] }
 0x37f   : > { %3711 = vst [vmem:[#allocation2 + $0x189] sm:$0xff] %v12672_v16  ;;  %v4432_v16 = vld [vmem:[#allocation4 + $0x598] sm:$0xff] }
 0x380   : > { %v12071_v60 = vld [vmem:[#allocation2 + $0x150] sm:$0xff]  ;;  %v12073_v7 = vld [vmem:[#allocation2 + $0x158] sm:$0xff]  ;;  %3710 = vst [vmem:[#allocation2 + $0x181] sm:$0xff] %v12676_v43  ;;  %v10244_v53 = vpack.c.bf16 %v4432_v16, %v4431_v18  ;;  %v4439_v16 = vld [vmem:[#allocation4 + $0x5d0] sm:$0xff] }
 0x381   : > { %12785 = vst [vmem:[#allocation18_spill] sm:$0xff] %v12071_v60  ;;  %12786 = vst [vmem:[#allocation19_spill] sm:$0xff] %v12073_v7  ;;  %9242 = vmatprep.mubr.f32.mxu1 %v12071_v60  ;;  %v4434_v43 = vld [vmem:[#allocation4 + $0x5a8] sm:$0xff]  ;;  %v12789_v60 = vmax.f32 %v11845_v6, 0.0  ;;  %v4437_v18 = vld [vmem:[#allocation4 + $0x5c0] sm:$0xff]  ;;  %v12792_v6 = vmax.f32 %v11852_v9, 0.0 }
 0x382   : > { %9243 = vmatmul.mubr.f32.gmra.mrb[28].mxu1 %v12073_v7  ;;  %v10248_v7 = vpack.c.bf16 %v4434_v43, %v4433_v31  ;;  %v12794_v43 = vmax.f32 %v11864_v55, 0.0  ;;  %v4442_v9 = vld [vmem:[#allocation4 + $0x5e8] sm:$0xff]  ;;  %v4444_v55 = vld [vmem:[#allocation4 + $0x5f8] sm:$0xff] }
 0x383   : > { %v12079_v23 = vld [vmem:[#allocation2 + $0x168] sm:$0xff]  ;;  %v12081_v61 = vld [vmem:[#allocation2 + $0x170] sm:$0xff] }
 0x384   : > { %12787 = vst [vmem:[#allocation20_spill] sm:$0xff] %v12079_v23  ;;  %12788 = vst [vmem:[#allocation21_spill] sm:$0xff] %v12081_v61  ;;  %9245 = vmatprep.mubr.f32.mxu1 %v12079_v23  ;;  %v12790_v23 = vmax.f32 %v11842_v62, 0.0  ;;  %v4440_v62 = vld [vmem:[#allocation4 + $0x5d8] sm:$0xff] }
 0x386   : > { %9246 = vmatmul.mubr.f32.gmra.mrb[30].mxu1 %v12081_v61  ;;  %v12791_v61 = vmax.f32 %v11857_v14, 0.0  ;;  %v12795_v14 = vmax.f32 %v11885_v17, 0.0 }
 0x387   : > { %9280 = vmatprep.mubr.f32.mxu1 %v4026_v34  ;;  %v10252_v34 = vpack.c.bf16 %v4436_v37, %v4435_v38  ;;  %v4441_v37 = vld [vmem:[#allocation4 + $0x5e0] sm:$0xff]  ;;  %v12796_v38 = vmax.f32 %v11876_v30, 0.0  ;;  %v12799_v30 = vmax.f32 %v11912_v40, 0.0  ;;  %v4801_v40 = vld [vmem:[#allocation4 + $0x610] sm:$0xff] }
 0x38a   : > { %9281 = vmatmul.mubr.f32.vlgmr.msra.gmra.mrb[0].mxu1 %v4027_v21  ;;  %v4438_v21 = vld [vmem:[#allocation4 + $0x5c8] sm:$0xff] }
 0x38b   : > { %9283 = vmatprep.mubr.f32.mxu1 %v12789_v60  ;;  %10243 = vmatpush3.bf16.msra.mxu1 %v11836_v56  ;;  %v12793_v56 = vmax.f32 %v11869_v3, 0.0  ;;  %v10256_v31 = vpack.c.bf16 %v4438_v21, %v4437_v18  ;;  %v12797_v3 = vmax.f32 %v11903_v36, 0.0  ;;  %v4443_v60 = vld [vmem:[#allocation4 + $0x5f0] sm:$0xff]  ;;  %v4802_v18 = vld [vmem:[#allocation4 + $0x618] sm:$0xff] }
 0x38c   : > { %10245 = vmatprep.subr.bf16.mxu1 %v10244_v53  ;;  %v10268_v17 = vpack.c.bf16 %v4444_v55, %v4443_v60  ;;  %v4397_v21 = vld [vmem:[#allocation2 + $0xa] sm:$0xff] }
 0x38d   : > { %v12139_v60 = vld [vmem:[#allocation2 + $0x4a] sm:$0xff] }
 0x38e   : > { %9284 = vmatmul.mubr.f32.gmra.mrb[2].mxu1 %v12790_v23  ;;  %v12798_v23 = vmax.f32 %v11894_v28, 0.0  ;;  %v4396_v28 = vld [vmem:[#allocation2 + $0x2] sm:$0xff] }
 0x38f   : > { %9286 = vmatprep.mubr.f32.mxu1 %v12791_v61  ;;  %10247 = vmatpush3.bf16.msra.mxu1 %v10244_v53  ;;  %v10260_v53 = vpack.c.bf16 %v4440_v62, %v4439_v16  ;;  %v4799_v61 = vld [vmem:[#allocation4 + $0x600] sm:$0xff]  ;;  %v12127_v16 = vld [vmem:[#allocation2 + $0x1a] sm:$0xff] }
 0x390   : > { %10249 = vmatprep.subr.bf16.mxu1 %v10248_v7 }
 0x392   : > { %9287 = vmatmul.mubr.f32.gmra.mrb[4].mxu1 %v12792_v6  ;;  %v10276_v6 = vpack.c.bf16 %v4802_v18, %v4801_v40  ;;  %v4812_v40 = vld [vmem:[#allocation4 + $0x668] sm:$0xff] }
 0x393   : > { %9289 = vmatprep.mubr.f32.mxu1 %v12793_v56  ;;  %10251 = vmatpush3.bf16.msra.mxu1 %v10248_v7  ;;  %v10264_v7 = vpack.c.bf16 %v4442_v9, %v4441_v37  ;;  %v4803_v56 = vld [vmem:[#allocation4 + $0x620] sm:$0xff]  ;;  %v12151_v18 = vld [vmem:[#allocation2 + $0x7a] sm:$0xff] }
 0x394   : > { %10253 = vmatprep.subr.bf16.mxu1 %v10252_v34  ;;  %v12133_v37 = vld [vmem:[#allocation2 + $0x32] sm:$0xff] }
 0x396   : > { %9290 = vmatmul.mubr.f32.gmra.mrb[6].mxu1 %v12794_v43  ;;  %v12130_v43 = vld [vmem:[#allocation2 + $0x22] sm:$0xff] }
 0x397   : > { %9292 = vmatprep.mubr.f32.mxu1 %v12795_v14  ;;  %10255 = vmatpush3.bf16.msra.mxu1 %v10252_v34  ;;  %v4800_v34 = vld [vmem:[#allocation4 + $0x608] sm:$0xff]  ;;  %v4805_v14 = vld [vmem:[#allocation4 + $0x630] sm:$0xff] }
 0x398   : > { %10257 = vmatprep.subr.bf16.mxu1 %v10256_v31  ;;  %v10272_v36 = vpack.c.bf16 %v4800_v34, %v4799_v61  ;;  %v4810_v61 = vld [vmem:[#allocation4 + $0x658] sm:$0xff] }
 0x399   : > { %v12145_v34 = vld [vmem:[#allocation2 + $0x62] sm:$0xff] }
 0x39a   : > { %9293 = vmatmul.mubr.f32.gmra.mrb[8].mxu1 %v12796_v38  ;;  %v12136_v38 = vld [vmem:[#allocation2 + $0x3a] sm:$0xff] }
 0x39b   : > { %9295 = vmatprep.mubr.f32.mxu1 %v12797_v3  ;;  %10259 = vmatpush3.bf16.msra.mxu1 %v10256_v31  ;;  %v4804_v31 = vld [vmem:[#allocation4 + $0x628] sm:$0xff]  ;;  %v4807_v3 = vld [vmem:[#allocation4 + $0x640] sm:$0xff] }
 0x39c   : > { %10261 = vmatprep.subr.bf16.mxu1 %v10260_v53  ;;  %v10280_v62 = vpack.c.bf16 %v4804_v31, %v4803_v56  ;;  %v4813_v56 = vld [vmem:[#allocation4 + $0x670] sm:$0xff]  ;;  %v4814_v31 = vld [vmem:[#allocation4 + $0x678] sm:$0xff] }
 0x39e   : > { %9296 = vmatmul.mubr.f32.gmra.mrb[10].mxu1 %v12798_v23  ;;  %v12142_v23 = vld [vmem:[#allocation2 + $0x52] sm:$0xff] }
 0x39f   : > { %9298 = vmatprep.mubr.f32.mxu1 %v11924_v15  ;;  %10263 = vmatpush3.bf16.msra.mxu1 %v10260_v53  ;;  %v4806_v53 = vld [vmem:[#allocation4 + $0x638] sm:$0xff] }
 0x3a0   : > { %10265 = vmatprep.subr.bf16.mxu1 %v10264_v7  ;;  %v10284_v9 = vpack.c.bf16 %v4806_v53, %v4805_v14  ;;  %v10300_v14 = vpack.c.bf16 %v4814_v31, %v4813_v56  ;;  %v12160_v53 = vld [vmem:[#allocation2 + $0x9a] sm:$0xff]  ;;  %v12187_v31 = vld [vmem:[#allocation2 + $0x10a] sm:$0xff] }
 0x3a1   : > { %v12184_v56 = vld [vmem:[#allocation2 + $0xfa] sm:$0xff]  ;;  %12805 = vst [vmem:[#allocation27_spill] sm:$0xff] %v12187_v31 }
 0x3a2   : > { %9299 = vmatmul.mubr.f32.gmra.mrb[12].mxu1 %v12799_v30  ;;  %12804 = vst [vmem:[#allocation26_spill] sm:$0xff] %v12184_v56 }
 0x3a3   : > { %9301 = vmatprep.mubr.f32.mxu1 %v11939_v47  ;;  %10267 = vmatpush3.bf16.msra.mxu1 %v10264_v7  ;;  %v4808_v7 = vld [vmem:[#allocation4 + $0x648] sm:$0xff] }
 0x3a4   : > { %10269 = vmatprep.subr.bf16.mxu1 %v10268_v17  ;;  %v10288_v55 = vpack.c.bf16 %v4808_v7, %v4807_v3  ;;  %v5170_v3 = vld [vmem:[#allocation4 + $0x688] sm:$0xff]  ;;  %v12163_v7 = vld [vmem:[#allocation2 + $0xaa] sm:$0xff] }
 0x3a6   : > { %9302 = vmatmul.mubr.f32.gmra.mrb[14].mxu1 %v11936_v4 }
 0x3a7   : > { %9304 = vmatprep.mubr.f32.mxu1 %v11953_v20  ;;  %10271 = vmatpush3.bf16.msra.mxu1 %v10268_v17  ;;  %v4809_v17 = vld [vmem:[#allocation4 + $0x650] sm:$0xff] }
 0x3a8   : > { %10273 = vmatprep.subr.bf16.mxu1 %v10272_v36  ;;  %v10292_v30 = vpack.c.bf16 %v4810_v61, %v4809_v17  ;;  %v12166_v17 = vld [vmem:[#allocation2 + $0xb2] sm:$0xff]  ;;  %v12169_v61 = vld [vmem:[#allocation2 + $0xc2] sm:$0xff] }
 0x3aa   : > { %9305 = vmatmul.mubr.f32.gmra.mrb[16].mxu1 %v11950_v11 }
 0x3ab   : > { %9307 = vmatprep.mubr.f32.mxu1 %v11967_v5 }
 0x3ae   : > { %9308 = vmatmul.mubr.f32.gmra.mrb[18].mxu1 %v11964_v63 }
 0x3af   : > { %9310 = vmatprep.mubr.f32.mxu1 %v11981_v10 }
 0x3b2   : > { %9311 = vmatmul.mubr.f32.gmra.mrb[20].mxu1 %v11978_v39 }
 0x3b3   : > { %9313 = vmatprep.mubr.f32.mxu1 %v11995_v54 }
 0x3b6   : > { %9314 = vmatmul.mubr.f32.gmra.mrb[22].mxu1 %v11992_v49 }
 0x3b7   : > { %9316 = vmatprep.mubr.f32.mxu1 %v12009_v8 }
 0x3ba   : > { %9317 = vmatmul.mubr.f32.gmra.mrb[24].mxu1 %v12006_v2 }
 0x3bb   : > { %9319 = vmatprep.mubr.f32.mxu1 %v12023_v29 }
 0x3be   : > { %9320 = vmatmul.mubr.f32.gmra.mrb[26].mxu1 %v12020_v26 }
 0x3bf   : > { %9322 = vmatprep.mubr.f32.mxu1 %v12037_v1 }
 0x3c2   : > { %9323 = vmatmul.mubr.f32.gmra.mrb[28].mxu1 %v12034_v42 }
 0x3c3   : > { %9325 = vmatprep.mubr.f32.mxu1 %v12051_v25 }
 0x3c6   : > { %9326 = vmatmul.mubr.f32.gmra.mrb[30].mxu1 %v12048_v32 }
 0x3c7   : > { %9360 = vmatprep.mubr.f32.mxu1 %v4396_v28  ;;  %v4811_v28 = vld [vmem:[#allocation4 + $0x660] sm:$0xff] }
 0x3ca   : > { %9361 = vmatmul.mubr.f32.vlgmr.msra.gmra.mrb[0].mxu1 %v4397_v21  ;;  %v10296_v21 = vpack.c.bf16 %v4812_v40, %v4811_v28  ;;  %v12175_v28 = vld [vmem:[#allocation2 + $0xda] sm:$0xff]  ;;  %v12178_v40 = vld [vmem:[#allocation2 + $0xe2] sm:$0xff] }
 0x3cb   : > { %9363 = vmatprep.mubr.f32.mxu1 %v12127_v16  ;;  %10275 = vmatpush3.bf16.msra.mxu1 %v10272_v36  ;;  %v12148_v36 = vld [vmem:[#allocation2 + $0x6a] sm:$0xff]  ;;  %12801 = vst [vmem:[#allocation23_spill] sm:$0xff] %v12175_v28  ;;  %12802 = vst [vmem:[#allocation24_spill] sm:$0xff] %v12178_v40 }
 0x3cc   : > { %10277 = vmatprep.subr.bf16.mxu1 %v10276_v6 }
 0x3ce   : > { %9364 = vmatmul.mubr.f32.gmra.mrb[2].mxu1 %v12130_v43 }
 0x3cf   : > { %9366 = vmatprep.mubr.f32.mxu1 %v12133_v37  ;;  %10279 = vmatpush3.bf16.msra.mxu1 %v10276_v6  ;;  %v12154_v6 = vld [vmem:[#allocation2 + $0x82] sm:$0xff] }
 0x3d0   : > { %10281 = vmatprep.subr.bf16.mxu1 %v10280_v62 }
 0x3d2   : > { %9367 = vmatmul.mubr.f32.gmra.mrb[4].mxu1 %v12136_v38 }
 0x3d3   : > { %9369 = vmatprep.mubr.f32.mxu1 %v12139_v60  ;;  %10283 = vmatpush3.bf16.msra.mxu1 %v10280_v62  ;;  %v12157_v62 = vld [vmem:[#allocation2 + $0x92] sm:$0xff] }
 0x3d4   : > { %10285 = vmatprep.subr.bf16.mxu1 %v10284_v9 }
 0x3d6   : > { %9370 = vmatmul.mubr.f32.gmra.mrb[6].mxu1 %v12142_v23 }
 0x3d7   : > { %9372 = vmatprep.mubr.f32.mxu1 %v12145_v34  ;;  %10287 = vmatpush3.bf16.msra.mxu1 %v10284_v9  ;;  %v5169_v9 = vld [vmem:[#allocation4 + $0x680] sm:$0xff] }
 0x3d8   : > { %10289 = vmatprep.subr.bf16.mxu1 %v10288_v55 }
 0x3da   : > { %9373 = vmatmul.mubr.f32.gmra.mrb[8].mxu1 %v12148_v36 }
 0x3db   : > { %9375 = vmatprep.mubr.f32.mxu1 %v12151_v18  ;;  %10291 = vmatpush3.bf16.msra.mxu1 %v10288_v55  ;;  %v10304_v55 = vpack.c.bf16 %v5170_v3, %v5169_v9  ;;  %v12193_v9 = vld [vmem:[#allocation2 + $0x122] sm:$0xff]  ;;  %v12196_v3 = vld [vmem:[#allocation2 + $0x12a] sm:$0xff] }
 0x3dc   : > { %10293 = vmatprep.subr.bf16.mxu1 %v10292_v30  ;;  %12807 = vst [vmem:[#allocation29_spill] sm:$0xff] %v12193_v9  ;;  %12808 = vst [vmem:[#allocation30_spill] sm:$0xff] %v12196_v3 }
 0x3de   : > { %9376 = vmatmul.mubr.f32.gmra.mrb[10].mxu1 %v12154_v6 }
 0x3df   : > { %9378 = vmatprep.mubr.f32.mxu1 %v12157_v62  ;;  %10295 = vmatpush3.bf16.msra.mxu1 %v10292_v30  ;;  %v12172_v30 = vld [vmem:[#allocation2 + $0xca] sm:$0xff] }
 0x3e0   : > { %10297 = vmatprep.subr.bf16.mxu1 %v10296_v21  ;;  %12800 = vst [vmem:[#allocation22_spill] sm:$0xff] %v12172_v30 }
 0x3e2   : > { %9379 = vmatmul.mubr.f32.gmra.mrb[12].mxu1 %v12160_v53 }
 0x3e3   : > { %9381 = vmatprep.mubr.f32.mxu1 %v12163_v7  ;;  %10299 = vmatpush3.bf16.msra.mxu1 %v10296_v21  ;;  %v12181_v21 = vld [vmem:[#allocation2 + $0xf2] sm:$0xff] }
 0x3e4   : > { %10301 = vmatprep.subr.bf16.mxu1 %v10300_v14  ;;  %12803 = vst [vmem:[#allocation25_spill] sm:$0xff] %v12181_v21 }
 0x3e6   : > { %9382 = vmatmul.mubr.f32.gmra.mrb[14].mxu1 %v12166_v17 }
 0x3e7   : > { %9384 = vmatprep.mubr.f32.mxu1 %v12169_v61  ;;  %10303 = vmatpush3.bf16.msra.mxu1 %v10300_v14  ;;  %v12190_v14 = vld [vmem:[#allocation2 + $0x112] sm:$0xff] }
 0x3e8   : > { %10305 = vmatprep.subr.bf16.mxu1 %v10304_v55  ;;  %12806 = vst [vmem:[#allocation28_spill] sm:$0xff] %v12190_v14 }
 0x3ea   : > { %9385 = vmatmul.mubr.f32.gmra.mrb[16].mxu1 %v12172_v30  ;;  %v5174_v30 = vld [vmem:[#allocation4 + $0x6a8] sm:$0xff] }
 0x3eb   : > { %9387 = vmatprep.mubr.f32.mxu1 %v12175_v28  ;;  %v5173_v28 = vld [vmem:[#allocation4 + $0x6a0] sm:$0xff] }
 0x3ee   : > { %9388 = vmatmul.mubr.f32.gmra.mrb[18].mxu1 %v12178_v40  ;;  %v5171_v40 = vld [vmem:[#allocation4 + $0x690] sm:$0xff] }
 0x3ef   : > { %9390 = vmatprep.mubr.f32.mxu1 %v12181_v21  ;;  %v12199_v21 = vld [vmem:[#allocation2 + $0x13a] sm:$0xff] }
 0x3f0   : > { %12809 = vst [vmem:[#allocation31_spill] sm:$0xff] %v12199_v21 }
 0x3f2   : > { %9391 = vmatmul.mubr.f32.gmra.mrb[20].mxu1 %v12184_v56  ;;  %v12202_v56 = vld [vmem:[#allocation2 + $0x142] sm:$0xff] }
 0x3f3   : > { %9393 = vmatprep.mubr.f32.mxu1 %v12187_v31  ;;  %12810 = vst [vmem:[#allocation32_spill] sm:$0xff] %v12202_v56  ;;  %v12205_v31 = vld [vmem:[#allocation2 + $0x152] sm:$0xff] }
 0x3f4   : > { %12811 = vst [vmem:[#allocation33_spill] sm:$0xff] %v12205_v31 }
 0x3f6   : > { %9394 = vmatmul.mubr.f32.gmra.mrb[22].mxu1 %v12190_v14  ;;  %v12208_v14 = vld [vmem:[#allocation2 + $0x15a] sm:$0xff] }
 0x3f7   : > { %9396 = vmatprep.mubr.f32.mxu1 %v12193_v9  ;;  %12812 = vst [vmem:[#allocation34_spill] sm:$0xff] %v12208_v14  ;;  %v12211_v9 = vld [vmem:[#allocation2 + $0x16a] sm:$0xff] }
 0x3f8   : > { %12813 = vst [vmem:[#allocation35_spill] sm:$0xff] %v12211_v9 }
 0x3fa   : > { %9397 = vmatmul.mubr.f32.gmra.mrb[24].mxu1 %v12196_v3  ;;  %v12214_v3 = vld [vmem:[#allocation2 + $0x172] sm:$0xff] }
 0x3fb   : > { %9399 = vmatprep.mubr.f32.mxu1 %v12199_v21  ;;  %12814 = vst [vmem:[#allocation36_spill] sm:$0xff] %v12214_v3  ;;  %v5172_v21 = vld [vmem:[#allocation4 + $0x698] sm:$0xff] }
 0x3fe   : > { %9400 = vmatmul.mubr.f32.gmra.mrb[26].mxu1 %v12202_v56  ;;  %v10308_v56 = vpack.c.bf16 %v5172_v21, %v5171_v40  ;;  %v5178_v40 = vld [vmem:[#allocation4 + $0x6c8] sm:$0xff] }
 0x3ff   : > { %9402 = vmatprep.mubr.f32.mxu1 %v12205_v31  ;;  %v5175_v31 = vld [vmem:[#allocation4 + $0x6b0] sm:$0xff]  ;;  %v5540_v21 = vld [vmem:[#allocation4 + $0x708] sm:$0xff] }
 0x402   : > { %9403 = vmatmul.mubr.f32.gmra.mrb[28].mxu1 %v12208_v14  ;;  %v10312_v14 = vpack.c.bf16 %v5174_v30, %v5173_v28  ;;  %v5182_v30 = vld [vmem:[#allocation4 + $0x6e8] sm:$0xff]  ;;  %v5184_v28 = vld [vmem:[#allocation4 + $0x6f8] sm:$0xff] }
 0x403   : > { %9405 = vmatprep.mubr.f32.mxu1 %v12211_v9  ;;  %v5176_v9 = vld [vmem:[#allocation4 + $0x6b8] sm:$0xff] }
 0x406   : > { %9406 = vmatmul.mubr.f32.gmra.mrb[30].mxu1 %v12214_v3  ;;  %v10316_v3 = vpack.c.bf16 %v5176_v9, %v5175_v31  ;;  %v12250_v31 = vld [vmem:[#allocation2 + $0x188] sm:$0xff] }
 0x407   : > { %9440 = vmatprep.mubr.f32.mxu1 %v11878_v13  ;;  %v5177_v13 = vld [vmem:[#allocation4 + $0x6c0] sm:$0xff]  ;;  %v5542_v9 = vld [vmem:[#allocation4 + $0x718] sm:$0xff] }
 0x40a   : > { %9441 = vmatmul.mubr.f32.vlgmr.msra.gmra.mrb[0].mxu1 %v11880_v24  ;;  %v10320_v24 = vpack.c.bf16 %v5178_v40, %v5177_v13  ;;  %v5137_v40 = vld [vmem:[#allocation2 + $0x21] sm:$0xff] }
 0x40b   : > { %9443 = vmatprep.mubr.f32.mxu1 %v11896_v33  ;;  %10307 = vmatpush3.bf16.msra.mxu1 %v10304_v55  ;;  %v5179_v33 = vld [vmem:[#allocation4 + $0x6d0] sm:$0xff]  ;;  %v5180_v55 = vld [vmem:[#allocation4 + $0x6d8] sm:$0xff] }
 0x40c   : > { %10309 = vmatprep.subr.bf16.mxu1 %v10308_v56 }
 0x40e   : > { %9444 = vmatmul.mubr.f32.gmra.mrb[2].mxu1 %v11898_v35  ;;  %v10324_v35 = vpack.c.bf16 %v5180_v55, %v5179_v33  ;;  %v5544_v33 = vld [vmem:[#allocation4 + $0x728] sm:$0xff] }
 0x40f   : > { %9446 = vmatprep.mubr.f32.mxu1 %v11914_v41  ;;  %10311 = vmatpush3.bf16.msra.mxu1 %v10308_v56  ;;  %v5181_v41 = vld [vmem:[#allocation4 + $0x6e0] sm:$0xff]  ;;  %v12822_v56 = vld [vmem:[#allocation19_spill] sm:$0xff] }
 0x410   : > { %10313 = vmatprep.subr.bf16.mxu1 %v10312_v14  ;;  %v12253_v55 = vld [vmem:[#allocation2 + $0x31] sm:$0xff] }
 0x412   : > { %9447 = vmatmul.mubr.f32.gmra.mrb[4].mxu1 %v11916_v19  ;;  %v10328_v19 = vpack.c.bf16 %v5182_v30, %v5181_v41  ;;  %v12256_v41 = vld [vmem:[#allocation2 + $0x39] sm:$0xff] }
 0x413   : > { %9449 = vmatprep.mubr.f32.mxu1 %v11929_v0  ;;  %10315 = vmatpush3.bf16.msra.mxu1 %v10312_v14  ;;  %v5183_v0 = vld [vmem:[#allocation4 + $0x6f0] sm:$0xff] }
 0x414   : > { %10317 = vmatprep.subr.bf16.mxu1 %v10316_v3  ;;  %v5541_v14 = vld [vmem:[#allocation4 + $0x710] sm:$0xff] }
 0x415   : > { %v10340_v13 = vpack.c.bf16 %v5542_v9, %v5541_v14  ;;  %v5545_v30 = vld [vmem:[#allocation4 + $0x730] sm:$0xff] }
 0x416   : > { %9450 = vmatmul.mubr.f32.gmra.mrb[6].mxu1 %v11931_v45  ;;  %v10332_v45 = vpack.c.bf16 %v5184_v28, %v5183_v0  ;;  %v12259_v0 = vld [vmem:[#allocation2 + $0x49] sm:$0xff]  ;;  %v12278_v14 = vld [vmem:[#allocation2 + $0x99] sm:$0xff] }
 0x417   : > { %9452 = vmatprep.mubr.f32.mxu1 %v11943_v58  ;;  %10319 = vmatpush3.bf16.msra.mxu1 %v10316_v3  ;;  %v5539_v58 = vld [vmem:[#allocation4 + $0x700] sm:$0xff]  ;;  %v5136_v3 = vld [vmem:[#allocation2 + $0x19] sm:$0xff] }
 0x418   : > { %10321 = vmatprep.subr.bf16.mxu1 %v10320_v24  ;;  %v5553_v9 = vld [vmem:[#allocation4 + $0x770] sm:$0xff] }
 0x41a   : > { %9453 = vmatmul.mubr.f32.gmra.mrb[8].mxu1 %v11945_v59  ;;  %v10336_v59 = vpack.c.bf16 %v5540_v21, %v5539_v58  ;;  %v5547_v58 = vld [vmem:[#allocation4 + $0x740] sm:$0xff]  ;;  %v5548_v21 = vld [vmem:[#allocation4 + $0x748] sm:$0xff] }
 0x41b   : > { %9455 = vmatprep.mubr.f32.mxu1 %v11957_v51  ;;  %10323 = vmatpush3.bf16.msra.mxu1 %v10320_v24  ;;  %v12815_v51 = vld [vmem:[#allocation10_spill] sm:$0xff] }
 0x41c   : > { %10325 = vmatprep.subr.bf16.mxu1 %v10324_v35  ;;  %v5543_v24 = vld [vmem:[#allocation4 + $0x720] sm:$0xff] }
 0x41e   : > { %9456 = vmatmul.mubr.f32.gmra.mrb[10].mxu1 %v11959_v57  ;;  %v12816_v57 = vld [vmem:[#allocation11_spill] sm:$0xff] }
 0x41f   : > { %9458 = vmatprep.mubr.f32.mxu1 %v11971_v12  ;;  %10327 = vmatpush3.bf16.msra.mxu1 %v10324_v35  ;;  %v12817_v12 = vld [vmem:[#allocation12_spill] sm:$0xff]  ;;  %v10344_v35 = vpack.c.bf16 %v5544_v33, %v5543_v24  ;;  %v5910_v24 = vld [vmem:[#allocation4 + $0x788] sm:$0xff] }
 0x420   : > { %10329 = vmatprep.subr.bf16.mxu1 %v10328_v19  ;;  %v12830_v33 = vld [vmem:[#allocation23_spill] sm:$0xff] }
 0x422   : > { %9459 = vmatmul.mubr.f32.gmra.mrb[12].mxu1 %v11973_v22  ;;  %v12818_v22 = vld [vmem:[#allocation13_spill] sm:$0xff] }
 0x423   : > { %9461 = vmatprep.mubr.f32.mxu1 %v11985_v52  ;;  %10331 = vmatpush3.bf16.msra.mxu1 %v10328_v19  ;;  %v12819_v52 = vld [vmem:[#allocation15_spill] sm:$0xff]  ;;  %v5546_v19 = vld [vmem:[#allocation4 + $0x738] sm:$0xff] }
 0x424   : > { %10333 = vmatprep.subr.bf16.mxu1 %v10332_v45  ;;  %v10348_v28 = vpack.c.bf16 %v5546_v19, %v5545_v30  ;;  %v12834_v30 = vld [vmem:[#allocation27_spill] sm:$0xff]  ;;  %v12837_v19 = vld [vmem:[#allocation30_spill] sm:$0xff] }
 0x426   : > { %9462 = vmatmul.mubr.f32.gmra.mrb[14].mxu1 %v11987_v46  ;;  %v12820_v46 = vld [vmem:[#allocation16_spill] sm:$0xff] }
 0x427   : > { %9464 = vmatprep.mubr.f32.mxu1 %v11999_v50  ;;  %10335 = vmatpush3.bf16.msra.mxu1 %v10332_v45  ;;  %v12821_v50 = vld [vmem:[#allocation18_spill] sm:$0xff] }
 0x428   : > { %10337 = vmatprep.subr.bf16.mxu1 %v10336_v59  ;;  %v12262_v45 = vld [vmem:[#allocation2 + $0x51] sm:$0xff] }
 0x42a   : > { %9465 = vmatmul.mubr.f32.gmra.mrb[16].mxu1 %v12001_v27  ;;  %v12823_v27 = vld [vmem:[#allocation20_spill] sm:$0xff] }
 0x42b   : > { %9467 = vmatprep.mubr.f32.mxu1 %v12013_v44  ;;  %v12824_v44 = vld [vmem:[#allocation21_spill] sm:$0xff] }
 0x42e   : > { %9468 = vmatmul.mubr.f32.gmra.mrb[18].mxu1 %v12015_v48  ;;  %v12247_v48 = vld [vmem:[#allocation2 + $0x180] sm:$0xff] }
 0x42f   : > { %9470 = vmatprep.mubr.f32.mxu1 %v12815_v51  ;;  %v10352_v51 = vpack.c.bf16 %v5548_v21, %v5547_v58  ;;  %v12839_v58 = vld [vmem:[#allocation32_spill] sm:$0xff]  ;;  %v12840_v21 = vld [vmem:[#allocation33_spill] sm:$0xff] }
 0x432   : > { %9471 = vmatmul.mubr.f32.gmra.mrb[20].mxu1 %v12816_v57  ;;  %v12268_v57 = vld [vmem:[#allocation2 + $0x69] sm:$0xff] }
 0x433   : > { %9473 = vmatprep.mubr.f32.mxu1 %v12817_v12  ;;  %v5549_v12 = vld [vmem:[#allocation4 + $0x750] sm:$0xff] }
 0x436   : > { %9474 = vmatmul.mubr.f32.gmra.mrb[22].mxu1 %v12818_v22  ;;  %v5550_v22 = vld [vmem:[#allocation4 + $0x758] sm:$0xff] }
 0x437   : > { %9476 = vmatprep.mubr.f32.mxu1 %v12819_v52  ;;  %v12271_v52 = vld [vmem:[#allocation2 + $0x79] sm:$0xff] }
 0x43a   : > { %9477 = vmatmul.mubr.f32.gmra.mrb[24].mxu1 %v12820_v46  ;;  %v10356_v46 = vpack.c.bf16 %v5550_v22, %v5549_v12  ;;  %v12842_v12 = vld [vmem:[#allocation35_spill] sm:$0xff]  ;;  %v12843_v22 = vld [vmem:[#allocation36_spill] sm:$0xff] }
 0x43b   : > { %9479 = vmatprep.mubr.f32.mxu1 %v12821_v50  ;;  %v12274_v50 = vld [vmem:[#allocation2 + $0x81] sm:$0xff] }
 0x43e   : > { %9480 = vmatmul.mubr.f32.gmra.mrb[26].mxu1 %v12822_v56  ;;  %v5551_v56 = vld [vmem:[#allocation4 + $0x760] sm:$0xff] }
 0x43f   : > { %9482 = vmatprep.mubr.f32.mxu1 %v12823_v27  ;;  %v5552_v27 = vld [vmem:[#allocation4 + $0x768] sm:$0xff] }
 0x442   : > { %9483 = vmatmul.mubr.f32.gmra.mrb[28].mxu1 %v12824_v44  ;;  %v10360_v44 = vpack.c.bf16 %v5552_v27, %v5551_v56  ;;  %v12336_v56 = vld [vmem:[#allocation2 + $0x18a] sm:$0xff]  ;;  %v6281_v27 = vld [vmem:[#allocation4 + $0x810] sm:$0xff] }
 0x443   : > { %9485 = vmatprep.mubr.f32.mxu1 %v12247_v48 }
 0x446   : > { %9486 = vmatmul.mubr.f32.gmra.mrb[30].mxu1 %v12250_v31 }
 0x447   : > { %9520 = vmatprep.mubr.f32.mxu1 %v5136_v3  ;;  %v5554_v3 = vld [vmem:[#allocation4 + $0x778] sm:$0xff] }
 0x44a   : > { %9521 = vmatmul.mubr.f32.vlgmr.msra.gmra.mrb[0].mxu1 %v5137_v40  ;;  %v5909_v40 = vld [vmem:[#allocation4 + $0x780] sm:$0xff] }
 0x44b   : > { %9523 = vmatprep.mubr.f32.mxu1 %v12253_v55  ;;  %10339 = vmatpush3.bf16.msra.mxu1 %v10336_v59  ;;  %v12265_v59 = vld [vmem:[#allocation2 + $0x61] sm:$0xff] }
 0x44c   : > { %10341 = vmatprep.subr.bf16.mxu1 %v10340_v13 }
 0x44e   : > { %9524 = vmatmul.mubr.f32.gmra.mrb[2].mxu1 %v12256_v41 }
 0x44f   : > { %9526 = vmatprep.mubr.f32.mxu1 %v12259_v0  ;;  %10343 = vmatpush3.bf16.msra.mxu1 %v10340_v13  ;;  %v10364_v13 = vpack.c.bf16 %v5554_v3, %v5553_v9  ;;  %v5876_v9 = vld [vmem:[#allocation2 + $0x30] sm:$0xff] }
 0x450   : > { %10345 = vmatprep.subr.bf16.mxu1 %v10344_v35 }
 0x452   : > { %9527 = vmatmul.mubr.f32.gmra.mrb[4].mxu1 %v12262_v45 }
 0x453   : > { %9529 = vmatprep.mubr.f32.mxu1 %v12265_v59  ;;  %10347 = vmatpush3.bf16.msra.mxu1 %v10344_v35  ;;  %v12833_v35 = vld [vmem:[#allocation26_spill] sm:$0xff] }
 0x454   : > { %10349 = vmatprep.subr.bf16.mxu1 %v10348_v28 }
 0x456   : > { %9530 = vmatmul.mubr.f32.gmra.mrb[6].mxu1 %v12268_v57 }
 0x457   : > { %9532 = vmatprep.mubr.f32.mxu1 %v12271_v52  ;;  %10351 = vmatpush3.bf16.msra.mxu1 %v10348_v28  ;;  %v12838_v28 = vld [vmem:[#allocation31_spill] sm:$0xff] }
 0x458   : > { %10353 = vmatprep.subr.bf16.mxu1 %v10352_v51 }
 0x45a   : > { %9533 = vmatmul.mubr.f32.gmra.mrb[8].mxu1 %v12274_v50 }
 0x45b   : > { %9535 = vmatprep.mubr.f32.mxu1 %v11924_v15  ;;  %10355 = vmatpush3.bf16.msra.mxu1 %v10352_v51  ;;  %v10368_v15 = vpack.c.bf16 %v5910_v24, %v5909_v40  ;;  %v12841_v51 = vld [vmem:[#allocation34_spill] sm:$0xff] }
 0x45c   : > { %10357 = vmatprep.subr.bf16.mxu1 %v10356_v46  ;;  %v6283_v40 = vld [vmem:[#allocation4 + $0x820] sm:$0xff]  ;;  %v6284_v24 = vld [vmem:[#allocation4 + $0x828] sm:$0xff] }
 0x45e   : > { %9536 = vmatmul.mubr.f32.gmra.mrb[10].mxu1 %v12278_v14 }
 0x45f   : > { %9538 = vmatprep.mubr.f32.mxu1 %v11939_v47  ;;  %10359 = vmatpush3.bf16.msra.mxu1 %v10356_v46  ;;  %v12333_v46 = vld [vmem:[#allocation2 + $0x182] sm:$0xff] }
 0x460   : > { %10361 = vmatprep.subr.bf16.mxu1 %v10360_v44 }
 0x462   : > { %9539 = vmatmul.mubr.f32.gmra.mrb[12].mxu1 %v11936_v4  ;;  %v12825_v4 = vld [vmem:[#allocation17_spill] sm:$0xff] }
 0x463   : > { %9541 = vmatprep.mubr.f32.mxu1 %v11953_v20  ;;  %10363 = vmatpush3.bf16.msra.mxu1 %v10360_v44  ;;  %v12826_v47 = vmax.f32 %v12825_v4, 0.0  ;;  %v5912_v20 = vld [vmem:[#allocation4 + $0x798] sm:$0xff]  ;;  %v10408_v4 = vpack.c.bf16 %v6284_v24, %v6283_v40  ;;  %v6653_v24 = vld [vmem:[#allocation4 + $0x8a0] sm:$0xff] }
 0x464   : > { %10365 = vmatprep.subr.bf16.mxu1 %v10364_v13  ;;  %v6282_v44 = vld [vmem:[#allocation4 + $0x818] sm:$0xff] }
 0x465   : > { %v10404_v3 = vpack.c.bf16 %v6282_v44, %v6281_v27  ;;  %v5903_v27 = vld [vmem:[#allocation2 + $0x170] sm:$0xff]  ;;  %v5906_v44 = vld [vmem:[#allocation2 + $0x198] sm:$0xff] }
 0x466   : > { %9542 = vmatmul.mubr.f32.gmra.mrb[14].mxu1 %v11950_v11  ;;  %v5911_v11 = vld [vmem:[#allocation4 + $0x790] sm:$0xff] }
 0x467   : > { %9544 = vmatprep.mubr.f32.mxu1 %v11967_v5  ;;  %10367 = vmatpush3.bf16.msra.mxu1 %v10364_v13  ;;  %v5877_v13 = vld [vmem:[#allocation2 + $0x38] sm:$0xff] }
 0x468   : > { %10369 = vmatprep.subr.bf16.mxu1 %v10368_v15 }
 0x46a   : > { %9545 = vmatmul.mubr.f32.gmra.mrb[16].mxu1 %v11964_v63  ;;  %v12827_v63 = vld [vmem:[#allocation14_spill] sm:$0xff] }
 0x46b   : > { %9547 = vmatprep.mubr.f32.mxu1 %v11981_v10  ;;  %v12828_v5 = vmax.f32 %v12827_v63, 0.0  ;;  %v5913_v10 = vld [vmem:[#allocation4 + $0x7a0] sm:$0xff]  ;;  %v5880_v63 = vld [vmem:[#allocation2 + $0x60] sm:$0xff] }
 0x46e   : > { %9548 = vmatmul.mubr.f32.gmra.mrb[18].mxu1 %v11978_v39  ;;  %v10372_v39 = vpack.c.bf16 %v5912_v20, %v5911_v11  ;;  %v6285_v11 = vld [vmem:[#allocation4 + $0x830] sm:$0xff]  ;;  %v6286_v20 = vld [vmem:[#allocation4 + $0x838] sm:$0xff] }
 0x46f   : > { %9550 = vmatprep.mubr.f32.mxu1 %v11995_v54 }
 0x472   : > { %9551 = vmatmul.mubr.f32.gmra.mrb[20].mxu1 %v11992_v49  ;;  %v5914_v49 = vld [vmem:[#allocation4 + $0x7a8] sm:$0xff] }
 0x473   : > { %9553 = vmatprep.mubr.f32.mxu1 %v12009_v8  ;;  %v10376_v54 = vpack.c.bf16 %v5914_v49, %v5913_v10  ;;  %v5916_v8 = vld [vmem:[#allocation4 + $0x7b8] sm:$0xff]  ;;  %v6287_v10 = vld [vmem:[#allocation4 + $0x840] sm:$0xff]  ;;  %v6288_v49 = vld [vmem:[#allocation4 + $0x848] sm:$0xff] }
 0x476   : > { %9554 = vmatmul.mubr.f32.gmra.mrb[22].mxu1 %v12006_v2  ;;  %v5915_v2 = vld [vmem:[#allocation4 + $0x7b0] sm:$0xff] }
 0x477   : > { %9556 = vmatprep.mubr.f32.mxu1 %v12023_v29  ;;  %v5917_v29 = vld [vmem:[#allocation4 + $0x7c0] sm:$0xff] }
 0x47a   : > { %9557 = vmatmul.mubr.f32.gmra.mrb[24].mxu1 %v12020_v26  ;;  %v10380_v26 = vpack.c.bf16 %v5916_v8, %v5915_v2  ;;  %v10416_v2 = vpack.c.bf16 %v6288_v49, %v6287_v10  ;;  %v5883_v8 = vld [vmem:[#allocation2 + $0x80] sm:$0xff]  ;;  %v6664_v49 = vld [vmem:[#allocation4 + $0x8f8] sm:$0xff] }
 0x47b   : > { %9559 = vmatprep.mubr.f32.mxu1 %v12037_v1  ;;  %v6663_v10 = vld [vmem:[#allocation4 + $0x8f0] sm:$0xff] }
 0x47e   : > { %9560 = vmatmul.mubr.f32.gmra.mrb[26].mxu1 %v12034_v42  ;;  %v5918_v42 = vld [vmem:[#allocation4 + $0x7c8] sm:$0xff] }
 0x47f   : > { %9562 = vmatprep.mubr.f32.mxu1 %v12051_v25  ;;  %v10384_v1 = vpack.c.bf16 %v5918_v42, %v5917_v29  ;;  %v5920_v25 = vld [vmem:[#allocation4 + $0x7d8] sm:$0xff]  ;;  %v5884_v42 = vld [vmem:[#allocation2 + $0x90] sm:$0xff] }
 0x480   : > { %v6290_v29 = vld [vmem:[#allocation4 + $0x858] sm:$0xff] }
 0x482   : > { %9563 = vmatmul.mubr.f32.gmra.mrb[28].mxu1 %v12048_v32  ;;  %v5919_v32 = vld [vmem:[#allocation4 + $0x7d0] sm:$0xff] }
 0x483   : > { %9565 = vmatprep.mubr.f32.mxu1 %v12826_v47  ;;  %v5879_v47 = vld [vmem:[#allocation2 + $0x50] sm:$0xff] }
 0x486   : > { %9566 = vmatmul.mubr.f32.gmra.mrb[30].mxu1 %v12828_v5  ;;  %v10412_v5 = vpack.c.bf16 %v6286_v20, %v6285_v11  ;;  %v6658_v11 = vld [vmem:[#allocation4 + $0x8c8] sm:$0xff]  ;;  %v6660_v20 = vld [vmem:[#allocation4 + $0x8d8] sm:$0xff] }
 0x487   : > { %9600 = vmatprep.mubr.f32.mxu1 %v12127_v16  ;;  %v10388_v16 = vpack.c.bf16 %v5920_v25, %v5919_v32  ;;  %v5885_v32 = vld [vmem:[#allocation2 + $0x98] sm:$0xff]  ;;  %v6291_v25 = vld [vmem:[#allocation4 + $0x860] sm:$0xff] }
 0x48a   : > { %9601 = vmatmul.mubr.f32.vlgmr.msra.gmra.mrb[0].mxu1 %v12130_v43  ;;  %v5921_v43 = vld [vmem:[#allocation4 + $0x7e0] sm:$0xff] }
 0x48b   : > { %9603 = vmatprep.mubr.f32.mxu1 %v12133_v37  ;;  %10371 = vmatpush3.bf16.msra.mxu1 %v10368_v15  ;;  %v5922_v37 = vld [vmem:[#allocation4 + $0x7e8] sm:$0xff]  ;;  %v5878_v15 = vld [vmem:[#allocation2 + $0x48] sm:$0xff] }
 0x48c   : > { %10373 = vmatprep.subr.bf16.mxu1 %v10372_v39 }
 0x48e   : > { %9604 = vmatmul.mubr.f32.gmra.mrb[2].mxu1 %v12136_v38  ;;  %v10392_v38 = vpack.c.bf16 %v5922_v37, %v5921_v43  ;;  %v5886_v43 = vld [vmem:[#allocation2 + $0xa8] sm:$0xff] }
 0x48f   : > { %9606 = vmatprep.mubr.f32.mxu1 %v12139_v60  ;;  %10375 = vmatpush3.bf16.msra.mxu1 %v10372_v39  ;;  %v5923_v60 = vld [vmem:[#allocation4 + $0x7f0] sm:$0xff]  ;;  %v5881_v39 = vld [vmem:[#allocation2 + $0x68] sm:$0xff] }
 0x490   : > { %10377 = vmatprep.subr.bf16.mxu1 %v10376_v54 }
 0x492   : > { %9607 = vmatmul.mubr.f32.gmra.mrb[4].mxu1 %v12142_v23  ;;  %v5924_v23 = vld [vmem:[#allocation4 + $0x7f8] sm:$0xff] }
 0x493   : > { %9609 = vmatprep.mubr.f32.mxu1 %v12145_v34  ;;  %10379 = vmatpush3.bf16.msra.mxu1 %v10376_v54  ;;  %v10396_v34 = vpack.c.bf16 %v5924_v23, %v5923_v60  ;;  %v5882_v54 = vld [vmem:[#allocation2 + $0x78] sm:$0xff]  ;;  %v6293_v60 = vld [vmem:[#allocation4 + $0x870] sm:$0xff]  ;;  %v6294_v23 = vld [vmem:[#allocation4 + $0x878] sm:$0xff] }
 0x494   : > { %10381 = vmatprep.subr.bf16.mxu1 %v10380_v26 }
 0x496   : > { %9610 = vmatmul.mubr.f32.gmra.mrb[6].mxu1 %v12148_v36  ;;  %v6279_v36 = vld [vmem:[#allocation4 + $0x800] sm:$0xff] }
 0x497   : > { %9612 = vmatprep.mubr.f32.mxu1 %v12151_v18  ;;  %10383 = vmatpush3.bf16.msra.mxu1 %v10380_v26  ;;  %v6280_v18 = vld [vmem:[#allocation4 + $0x808] sm:$0xff]  ;;  %v6289_v26 = vld [vmem:[#allocation4 + $0x850] sm:$0xff] }
 0x498   : > { %10385 = vmatprep.subr.bf16.mxu1 %v10384_v1 }
 0x49a   : > { %9613 = vmatmul.mubr.f32.gmra.mrb[8].mxu1 %v12154_v6  ;;  %v10400_v6 = vpack.c.bf16 %v6280_v18, %v6279_v36  ;;  %v10428_v36 = vpack.c.bf16 %v6294_v23, %v6293_v60  ;;  %v5889_v18 = vld [vmem:[#allocation2 + $0xc8] sm:$0xff]  ;;  %v6273_v23 = vld [vmem:[#allocation2 + $0x171] sm:$0xff] }
 0x49b   : > { %9615 = vmatprep.mubr.f32.mxu1 %v12157_v62  ;;  %10387 = vmatpush3.bf16.msra.mxu1 %v10384_v1  ;;  %v12829_v62 = vld [vmem:[#allocation22_spill] sm:$0xff]  ;;  %v10420_v1 = vpack.c.bf16 %v6290_v29, %v6289_v26  ;;  %v6272_v60 = vld [vmem:[#allocation2 + $0x169] sm:$0xff] }
 0x49c   : > { %10389 = vmatprep.subr.bf16.mxu1 %v10388_v16  ;;  %v6262_v26 = vld [vmem:[#allocation2 + $0xf1] sm:$0xff]  ;;  %v6263_v29 = vld [vmem:[#allocation2 + $0xf9] sm:$0xff] }
 0x49e   : > { %9616 = vmatmul.mubr.f32.gmra.mrb[10].mxu1 %v12160_v53  ;;  %v12831_v53 = vld [vmem:[#allocation24_spill] sm:$0xff] }
 0x49f   : > { %9618 = vmatprep.mubr.f32.mxu1 %v12163_v7  ;;  %10391 = vmatpush3.bf16.msra.mxu1 %v10388_v16  ;;  %v12832_v7 = vld [vmem:[#allocation25_spill] sm:$0xff]  ;;  %v6292_v16 = vld [vmem:[#allocation4 + $0x868] sm:$0xff] }
 0x4a0   : > { %10393 = vmatprep.subr.bf16.mxu1 %v10392_v38  ;;  %v10424_v37 = vpack.c.bf16 %v6292_v16, %v6291_v25  ;;  %v6267_v25 = vld [vmem:[#allocation2 + $0x129] sm:$0xff]  ;;  %v6268_v16 = vld [vmem:[#allocation2 + $0x139] sm:$0xff] }
 0x4a2   : > { %9619 = vmatmul.mubr.f32.gmra.mrb[12].mxu1 %v12166_v17  ;;  %v12835_v17 = vld [vmem:[#allocation28_spill] sm:$0xff] }
 0x4a3   : > { %9621 = vmatprep.mubr.f32.mxu1 %v12169_v61  ;;  %10395 = vmatpush3.bf16.msra.mxu1 %v10392_v38  ;;  %v12836_v61 = vld [vmem:[#allocation29_spill] sm:$0xff] }
 0x4a4   : > { %10397 = vmatprep.subr.bf16.mxu1 %v10396_v34  ;;  %v5887_v38 = vld [vmem:[#allocation2 + $0xb0] sm:$0xff] }
 0x4a6   : > { %9622 = vmatmul.mubr.f32.gmra.mrb[14].mxu1 %v12829_v62  ;;  %v6650_v62 = vld [vmem:[#allocation4 + $0x888] sm:$0xff] }
 0x4a7   : > { %9624 = vmatprep.mubr.f32.mxu1 %v12830_v33  ;;  %10399 = vmatpush3.bf16.msra.mxu1 %v10396_v34  ;;  %v5888_v34 = vld [vmem:[#allocation2 + $0xc0] sm:$0xff]  ;;  %v5890_v33 = vld [vmem:[#allocation2 + $0xd8] sm:$0xff] }
 0x4a8   : > { %10401 = vmatprep.subr.bf16.mxu1 %v10400_v6 }
 0x4aa   : > { %9625 = vmatmul.mubr.f32.gmra.mrb[16].mxu1 %v12831_v53 }
 0x4ab   : > { %9627 = vmatprep.mubr.f32.mxu1 %v12832_v7  ;;  %v5891_v7 = vld [vmem:[#allocation2 + $0xe0] sm:$0xff] }
 0x4ae   : > { %9628 = vmatmul.mubr.f32.gmra.mrb[18].mxu1 %v12833_v35  ;;  %v5892_v35 = vld [vmem:[#allocation2 + $0xf0] sm:$0xff] }
 0x4af   : > { %9630 = vmatprep.mubr.f32.mxu1 %v12834_v30  ;;  %v5893_v30 = vld [vmem:[#allocation2 + $0xf8] sm:$0xff] }
 0x4b2   : > { %9631 = vmatmul.mubr.f32.gmra.mrb[20].mxu1 %v12835_v17  ;;  %v5894_v17 = vld [vmem:[#allocation2 + $0x108] sm:$0xff] }
 0x4b3   : > { %9633 = vmatprep.mubr.f32.mxu1 %v12836_v61  ;;  %v5895_v61 = vld [vmem:[#allocation2 + $0x110] sm:$0xff] }
 0x4b6   : > { %9634 = vmatmul.mubr.f32.gmra.mrb[22].mxu1 %v12837_v19  ;;  %v5896_v19 = vld [vmem:[#allocation2 + $0x120] sm:$0xff] }
 0x4b7   : > { %9636 = vmatprep.mubr.f32.mxu1 %v12838_v28  ;;  %v5897_v28 = vld [vmem:[#allocation2 + $0x128] sm:$0xff] }
 0x4ba   : > { %9637 = vmatmul.mubr.f32.gmra.mrb[24].mxu1 %v12839_v58  ;;  %v5898_v58 = vld [vmem:[#allocation2 + $0x138] sm:$0xff] }
 0x4bb   : > { %9639 = vmatprep.mubr.f32.mxu1 %v12840_v21  ;;  %v5899_v21 = vld [vmem:[#allocation2 + $0x140] sm:$0xff] }
 0x4be   : > { %9640 = vmatmul.mubr.f32.gmra.mrb[26].mxu1 %v12841_v51  ;;  %v5900_v51 = vld [vmem:[#allocation2 + $0x150] sm:$0xff] }
 0x4bf   : > { %9642 = vmatprep.mubr.f32.mxu1 %v12842_v12  ;;  %v5901_v12 = vld [vmem:[#allocation2 + $0x158] sm:$0xff] }
 0x4c2   : > { %9643 = vmatmul.mubr.f32.gmra.mrb[28].mxu1 %v12843_v22  ;;  %v5902_v22 = vld [vmem:[#allocation2 + $0x168] sm:$0xff] }
 0x4c3   : > { %9645 = vmatprep.mubr.f32.mxu1 %v12333_v46 }
 0x4c6   : > { %9646 = vmatmul.mubr.f32.gmra.mrb[30].mxu1 %v12336_v56 }
 0x4c7   : > { %9680 = vmatprep.mubr.f32.mxu1 %v5876_v9  ;;  %v6651_v9 = vld [vmem:[#allocation4 + $0x890] sm:$0xff] }
 0x4ca   : > { %9681 = vmatmul.mubr.f32.vlgmr.msra.gmra.mrb[0].mxu1 %v5877_v13  ;;  %v12341_v13 = vld [vmem:[#allocation2 + $0x8] sm:$0xff] }
 0x4cb   : > { %9683 = vmatprep.mubr.f32.mxu1 %v5878_v15  ;;  %10403 = vmatpush3.bf16.msra.mxu1 %v10400_v6  ;;  %v6649_v6 = vld [vmem:[#allocation4 + $0x880] sm:$0xff]  ;;  %v6654_v15 = vld [vmem:[#allocation4 + $0x8a8] sm:$0xff] }
 0x4cc   : > { %10405 = vmatprep.subr.bf16.mxu1 %v10404_v3  ;;  %v10432_v53 = vpack.c.bf16 %v6650_v62, %v6649_v6  ;;  %v6277_v6 = vld [vmem:[#allocation2 + $0x1a1] sm:$0xff]  ;;  %v6616_v62 = vld [vmem:[#allocation2 + $0x32] sm:$0xff] }
 0x4ce   : > { %9684 = vmatmul.mubr.f32.gmra.mrb[2].mxu1 %v5879_v47 }
 0x4cf   : > { %9686 = vmatprep.mubr.f32.mxu1 %v5880_v63  ;;  %10407 = vmatpush3.bf16.msra.mxu1 %v10404_v3  ;;  %v6652_v3 = vld [vmem:[#allocation4 + $0x898] sm:$0xff]  ;;  %v6254_v63 = vld [vmem:[#allocation2 + $0x91] sm:$0xff] }
 0x4d0   : > { %10409 = vmatprep.subr.bf16.mxu1 %v10408_v4  ;;  %v10436_v40 = vpack.c.bf16 %v6652_v3, %v6651_v9  ;;  %v6633_v9 = vld [vmem:[#allocation2 + $0xfa] sm:$0xff]  ;;  %v6634_v3 = vld [vmem:[#allocation2 + $0x10a] sm:$0xff] }
 0x4d2   : > { %9687 = vmatmul.mubr.f32.gmra.mrb[4].mxu1 %v5881_v39  ;;  %v6256_v39 = vld [vmem:[#allocation2 + $0xa9] sm:$0xff] }
 0x4d3   : > { %9689 = vmatprep.mubr.f32.mxu1 %v5882_v54  ;;  %10411 = vmatpush3.bf16.msra.mxu1 %v10408_v4  ;;  %v6656_v4 = vld [vmem:[#allocation4 + $0x8b8] sm:$0xff] }
 0x4d4   : > { %10413 = vmatprep.subr.bf16.mxu1 %v10412_v5  ;;  %v6258_v54 = vld [vmem:[#allocation2 + $0xc1] sm:$0xff] }
 0x4d6   : > { %9690 = vmatmul.mubr.f32.gmra.mrb[6].mxu1 %v5883_v8  ;;  %v6260_v8 = vld [vmem:[#allocation2 + $0xd9] sm:$0xff] }
 0x4d7   : > { %9692 = vmatprep.mubr.f32.mxu1 %v5884_v42  ;;  %10415 = vmatpush3.bf16.msra.mxu1 %v10412_v5  ;;  %v6662_v5 = vld [vmem:[#allocation4 + $0x8e8] sm:$0xff]  ;;  %v6264_v42 = vld [vmem:[#allocation2 + $0x109] sm:$0xff] }
 0x4d8   : > { %10417 = vmatprep.subr.bf16.mxu1 %v10416_v2 }
 0x4da   : > { %9693 = vmatmul.mubr.f32.gmra.mrb[8].mxu1 %v5885_v32  ;;  %v6266_v32 = vld [vmem:[#allocation2 + $0x121] sm:$0xff] }
 0x4db   : > { %9695 = vmatprep.mubr.f32.mxu1 %v5886_v43  ;;  %10419 = vmatpush3.bf16.msra.mxu1 %v10416_v2  ;;  %v6259_v2 = vld [vmem:[#allocation2 + $0xc9] sm:$0xff]  ;;  %v6269_v43 = vld [vmem:[#allocation2 + $0x141] sm:$0xff] }
 0x4dc   : > { %10421 = vmatprep.subr.bf16.mxu1 %v10420_v1 }
 0x4de   : > { %9696 = vmatmul.mubr.f32.gmra.mrb[10].mxu1 %v5887_v38  ;;  %v6271_v38 = vld [vmem:[#allocation2 + $0x159] sm:$0xff] }
 0x4df   : > { %9698 = vmatprep.mubr.f32.mxu1 %v5888_v34  ;;  %10423 = vmatpush3.bf16.msra.mxu1 %v10420_v1  ;;  %v6265_v1 = vld [vmem:[#allocation2 + $0x111] sm:$0xff]  ;;  %v6274_v34 = vld [vmem:[#allocation2 + $0x181] sm:$0xff] }
 0x4e0   : > { %10425 = vmatprep.subr.bf16.mxu1 %v10424_v37 }
 0x4e2   : > { %9699 = vmatmul.mubr.f32.gmra.mrb[12].mxu1 %v5889_v18  ;;  %v6275_v18 = vld [vmem:[#allocation2 + $0x189] sm:$0xff] }
 0x4e3   : > { %9701 = vmatprep.mubr.f32.mxu1 %v5890_v33  ;;  %10427 = vmatpush3.bf16.msra.mxu1 %v10424_v37  ;;  %v6270_v37 = vld [vmem:[#allocation2 + $0x151] sm:$0xff]  ;;  %v6617_v33 = vld [vmem:[#allocation2 + $0x3a] sm:$0xff] }
 0x4e4   : > { %10429 = vmatprep.subr.bf16.mxu1 %v10428_v36 }
 0x4e6   : > { %9702 = vmatmul.mubr.f32.gmra.mrb[14].mxu1 %v5891_v7  ;;  %v6619_v7 = vld [vmem:[#allocation2 + $0x52] sm:$0xff] }
 0x4e7   : > { %9704 = vmatprep.mubr.f32.mxu1 %v5892_v35  ;;  %10431 = vmatpush3.bf16.msra.mxu1 %v10428_v36  ;;  %v6276_v36 = vld [vmem:[#allocation2 + $0x199] sm:$0xff]  ;;  %v6620_v35 = vld [vmem:[#allocation2 + $0x62] sm:$0xff] }
 0x4e8   : > { %10433 = vmatprep.subr.bf16.mxu1 %v10432_v53 }
 0x4ea   : > { %9705 = vmatmul.mubr.f32.gmra.mrb[16].mxu1 %v5893_v30  ;;  %v6621_v30 = vld [vmem:[#allocation2 + $0x6a] sm:$0xff] }
 0x4eb   : > { %9707 = vmatprep.mubr.f32.mxu1 %v5894_v17  ;;  %v6622_v17 = vld [vmem:[#allocation2 + $0x7a] sm:$0xff] }
 0x4ee   : > { %9708 = vmatmul.mubr.f32.gmra.mrb[18].mxu1 %v5895_v61  ;;  %v6623_v61 = vld [vmem:[#allocation2 + $0x82] sm:$0xff] }
 0x4ef   : > { %9710 = vmatprep.mubr.f32.mxu1 %v5896_v19  ;;  %v6624_v19 = vld [vmem:[#allocation2 + $0x92] sm:$0xff] }
 0x4f2   : > { %9711 = vmatmul.mubr.f32.gmra.mrb[20].mxu1 %v5897_v28  ;;  %v6625_v28 = vld [vmem:[#allocation2 + $0x9a] sm:$0xff] }
 0x4f3   : > { %9713 = vmatprep.mubr.f32.mxu1 %v5898_v58  ;;  %v6626_v58 = vld [vmem:[#allocation2 + $0xaa] sm:$0xff] }
 0x4f6   : > { %9714 = vmatmul.mubr.f32.gmra.mrb[22].mxu1 %v5899_v21  ;;  %v6627_v21 = vld [vmem:[#allocation2 + $0xb2] sm:$0xff] }
 0x4f7   : > { %9716 = vmatprep.mubr.f32.mxu1 %v5900_v51  ;;  %v6628_v51 = vld [vmem:[#allocation2 + $0xc2] sm:$0xff] }
 0x4fa   : > { %9717 = vmatmul.mubr.f32.gmra.mrb[24].mxu1 %v5901_v12  ;;  %v6629_v12 = vld [vmem:[#allocation2 + $0xca] sm:$0xff] }
 0x4fb   : > { %9719 = vmatprep.mubr.f32.mxu1 %v5902_v22  ;;  %v6630_v22 = vld [vmem:[#allocation2 + $0xda] sm:$0xff] }
 0x4fe   : > { %9720 = vmatmul.mubr.f32.gmra.mrb[26].mxu1 %v5903_v27  ;;  %v6631_v27 = vld [vmem:[#allocation2 + $0xe2] sm:$0xff] }
 0x4ff   : > { %9722 = vmatprep.mubr.f32.mxu1 %v12247_v48  ;;  %v10440_v48 = vpack.c.bf16 %v6654_v15, %v6653_v24  ;;  %v6636_v24 = vld [vmem:[#allocation2 + $0x122] sm:$0xff]  ;;  %v6637_v15 = vld [vmem:[#allocation2 + $0x12a] sm:$0xff] }
 0x502   : > { %9723 = vmatmul.mubr.f32.gmra.mrb[28].mxu1 %v12250_v31  ;;  %v6655_v31 = vld [vmem:[#allocation4 + $0x8b0] sm:$0xff] }
 0x503   : > { %9725 = vmatprep.mubr.f32.mxu1 %v5906_v44  ;;  %v10444_v47 = vpack.c.bf16 %v6656_v4, %v6655_v31  ;;  %v6632_v44 = vld [vmem:[#allocation2 + $0xf2] sm:$0xff]  ;;  %v6639_v31 = vld [vmem:[#allocation2 + $0x142] sm:$0xff] }
 0x504   : > { %v6640_v4 = vld [vmem:[#allocation2 + $0x152] sm:$0xff] }
 0x506   : > { %9726 = vmatmul.mubr.f32.gmra.mrb[30].mxu1 %v12341_v13 }
 0x507   : > { %9760 = vmatprep.mubr.f32.mxu1 %v12253_v55  ;;  %v6657_v55 = vld [vmem:[#allocation4 + $0x8c0] sm:$0xff] }
 0x50a   : > { %9761 = vmatmul.mubr.f32.vlgmr.msra.gmra.mrb[0].mxu1 %v12256_v41  ;;  %v10448_v41 = vpack.c.bf16 %v6658_v11, %v6657_v55  ;;  %v6642_v55 = vld [vmem:[#allocation2 + $0x16a] sm:$0xff]  ;;  %v6643_v11 = vld [vmem:[#allocation2 + $0x172] sm:$0xff] }
 0x50b   : > { %9763 = vmatprep.mubr.f32.mxu1 %v12259_v0  ;;  %10435 = vmatpush3.bf16.msra.mxu1 %v10432_v53  ;;  %v6659_v0 = vld [vmem:[#allocation4 + $0x8d0] sm:$0xff]  ;;  %v6618_v53 = vld [vmem:[#allocation2 + $0x4a] sm:$0xff] }
 0x50c   : > { %10437 = vmatprep.subr.bf16.mxu1 %v10436_v40 }
 0x50e   : > { %9764 = vmatmul.mubr.f32.gmra.mrb[2].mxu1 %v12262_v45  ;;  %v10452_v45 = vpack.c.bf16 %v6660_v20, %v6659_v0  ;;  %v6647_v0 = vld [vmem:[#allocation2 + $0x1a2] sm:$0xff]  ;;  %v12355_v20 = vld [vmem:[#allocation6 + $0x1] ss:$0 sm:$0xff] }
 0x50f   : > { %9766 = vmatprep.mubr.f32.mxu1 %v12265_v59  ;;  %10439 = vmatpush3.bf16.msra.mxu1 %v10436_v40  ;;  %v6661_v59 = vld [vmem:[#allocation4 + $0x8e0] sm:$0xff] }
 0x510   : > { %10441 = vmatprep.subr.bf16.mxu1 %v10440_v48  ;;  %v6635_v40 = vld [vmem:[#allocation2 + $0x112] sm:$0xff] }
 0x512   : > { %9767 = vmatmul.mubr.f32.gmra.mrb[4].mxu1 %v12268_v57  ;;  %v10456_v57 = vpack.c.bf16 %v6662_v5, %v6661_v59 }
 0x513   : > { %9769 = vmatprep.mubr.f32.mxu1 %v12271_v52  ;;  %10443 = vmatpush3.bf16.msra.mxu1 %v10440_v48  ;;  %v6257_v52 = vld [vmem:[#allocation2 + $0xb1] sm:$0xff]  ;;  %v6638_v48 = vld [vmem:[#allocation2 + $0x13a] sm:$0xff] }
 0x514   : > { %10445 = vmatprep.subr.bf16.mxu1 %v10444_v47 }
 0x516   : > { %9770 = vmatmul.mubr.f32.gmra.mrb[6].mxu1 %v12274_v50  ;;  %v10460_v50 = vpack.c.bf16 %v6664_v49, %v6663_v10 }
 0x517   : > { %9772 = vmatprep.mubr.f32.mxu1 %v6254_v63  ;;  %10447 = vmatpush3.bf16.msra.mxu1 %v10444_v47  ;;  %v6641_v47 = vld [vmem:[#allocation2 + $0x15a] sm:$0xff] }
 0x518   : > { %10449 = vmatprep.subr.bf16.mxu1 %v10448_v41 }
 0x51a   : > { %9773 = vmatmul.mubr.f32.gmra.mrb[8].mxu1 %v12278_v14  ;;  %v6261_v14 = vld [vmem:[#allocation2 + $0xe1] sm:$0xff] }
 0x51b   : > { %9775 = vmatprep.mubr.f32.mxu1 %v6256_v39  ;;  %10451 = vmatpush3.bf16.msra.mxu1 %v10448_v41  ;;  %v6646_v41 = vld [vmem:[#allocation2 + $0x19a] sm:$0xff] }
 0x51c   : > { %10453 = vmatprep.subr.bf16.mxu1 %v10452_v45 }
 0x51e   : > { %9776 = vmatmul.mubr.f32.gmra.mrb[10].mxu1 %v6257_v52 }
 0x51f   : > { %9778 = vmatprep.mubr.f32.mxu1 %v6258_v54  ;;  %10455 = vmatpush3.bf16.msra.mxu1 %v10452_v45  ;;  %v7084_v54 = vld [vmem:[#allocation2 + $0x10] sm:$0x1] }
 0x520   : > { %10457 = vmatprep.subr.bf16.mxu1 %v10456_v57 }
 0x522   : > { %9779 = vmatmul.mubr.f32.gmra.mrb[12].mxu1 %v6259_v2 }
 0x523   : > { %9781 = vmatprep.mubr.f32.mxu1 %v6260_v8  ;;  %10459 = vmatpush3.bf16.msra.mxu1 %v10456_v57 }
 0x524   : > { %10461 = vmatprep.subr.bf16.mxu1 %v10460_v50 }
 0x526   : > { %9782 = vmatmul.mubr.f32.gmra.mrb[14].mxu1 %v6261_v14 }
 0x527   : > { %9784 = vmatprep.mubr.f32.mxu1 %v6262_v26  ;;  %10463 = vmatpush3.bf16.msra.mxu1 %v10460_v50  ;;  %v7135_v50 = vld [vmem:[#allocation2 + $0x11] sm:$0x1] }
 0x52a   : > { %9785 = vmatmul.mubr.f32.gmra.mrb[16].mxu1 %v6263_v29  ;;  %v7288_v29 = vld [vmem:[#allocation2 + $0x29] sm:$0x1] }
 0x52b   : > { %9787 = vmatprep.mubr.f32.mxu1 %v6264_v42 }
 0x52e   : > { %9788 = vmatmul.mubr.f32.gmra.mrb[18].mxu1 %v6265_v1  ;;  %v7186_v1 = vmax.f32 %v7084_v54, %v7135_v50 }
 0x52f   : > { %9790 = vmatprep.mubr.f32.mxu1 %v6266_v32 }
 0x532   : > { %9791 = vmatmul.mubr.f32.gmra.mrb[20].mxu1 %v6267_v25  ;;  %v11077_v25 = vld [vmem:[#allocation2] sm:$0xff] }
 0x533   : > { %9793 = vmatprep.mubr.f32.mxu1 %v6268_v16  ;;  %v11078_v16 = vld [vmem:[#allocation2 + $0x1] sm:$0xff] }
 0x536   : > { %9794 = vmatmul.mubr.f32.gmra.mrb[22].mxu1 %v6269_v43  ;;  %v7184_v43 = vmax.f32 %v11077_v25, %v11078_v16 }
 0x537   : > { %9796 = vmatprep.mubr.f32.mxu1 %v6270_v37  ;;  %v11079_v37 = vld [vmem:[#allocation2 + $0x9] sm:$0xff] }
 0x53a   : > { %9797 = vmatmul.mubr.f32.gmra.mrb[24].mxu1 %v6271_v38  ;;  %v7185_v38 = vmax.f32 %v12341_v13, %v11079_v37  ;;  %v7138_v13 = vld [vmem:[#allocation2 + $0x29] sm:$0x1] }
 0x53b   : > { %9799 = vmatprep.mubr.f32.mxu1 %v6272_v60 }
 0x53e   : > { %9800 = vmatmul.mubr.f32.gmra.mrb[26].mxu1 %v6273_v23 }
 0x53f   : > { %9802 = vmatprep.mubr.f32.mxu1 %v6274_v34 }
 0x542   : > { %9803 = vmatmul.mubr.f32.gmra.mrb[28].mxu1 %v6275_v18 }
 0x543   : > { %9805 = vmatprep.mubr.f32.mxu1 %v6276_v36 }
 0x546   : > { %9806 = vmatmul.mubr.f32.gmra.mrb[30].mxu1 %v6277_v6 }
 0x547   : > { %9840 = vmatprep.mubr.f32.mxu1 %v6616_v62 }
 0x54a   : > { %9841 = vmatmul.mubr.f32.vlgmr.msra.gmra.mrb[0].mxu1 %v6617_v33 }
 0x54b   : > { %9843 = vmatprep.mubr.f32.mxu1 %v6618_v53  ;;  %v7291_v53 = vld [vmem:[#allocation2 + $0x41] sm:$0x1] }
 0x54e   : > { %9844 = vmatmul.mubr.f32.gmra.mrb[2].mxu1 %v6619_v7 }
 0x54f   : > { %9846 = vmatprep.mubr.f32.mxu1 %v6620_v35 }
 0x552   : > { %9847 = vmatmul.mubr.f32.gmra.mrb[4].mxu1 %v6621_v30 }
 0x553   : > { %9849 = vmatprep.mubr.f32.mxu1 %v6622_v17 }
 0x556   : > { %9850 = vmatmul.mubr.f32.gmra.mrb[6].mxu1 %v6623_v61 }
 0x557   : > { %9852 = vmatprep.mubr.f32.mxu1 %v6624_v19 }
 0x55a   : > { %9853 = vmatmul.mubr.f32.gmra.mrb[8].mxu1 %v6625_v28 }
 0x55b   : > { %9855 = vmatprep.mubr.f32.mxu1 %v6626_v58 }
 0x55e   : > { %9856 = vmatmul.mubr.f32.gmra.mrb[10].mxu1 %v6627_v21 }
 0x55f   : > { %9858 = vmatprep.mubr.f32.mxu1 %v6628_v51 }
 0x562   : > { %9859 = vmatmul.mubr.f32.gmra.mrb[12].mxu1 %v6629_v12 }
 0x563   : > { %9861 = vmatprep.mubr.f32.mxu1 %v6630_v22 }
 0x566   : > { %9862 = vmatmul.mubr.f32.gmra.mrb[14].mxu1 %v6631_v27 }
 0x567   : > { %9864 = vmatprep.mubr.f32.mxu1 %v6632_v44 }
 0x56a   : > { %9865 = vmatmul.mubr.f32.gmra.mrb[16].mxu1 %v6633_v9 }
 0x56b   : > { %9867 = vmatprep.mubr.f32.mxu1 %v6634_v3 }
 0x56e   : > { %9868 = vmatmul.mubr.f32.gmra.mrb[18].mxu1 %v6635_v40 }
 0x56f   : > { %9870 = vmatprep.mubr.f32.mxu1 %v6636_v24  ;;  %v7141_v24 = vld [vmem:[#allocation2 + $0x41] sm:$0x1] }
 0x572   : > { %9871 = vmatmul.mubr.f32.gmra.mrb[20].mxu1 %v6637_v15  ;;  %v7294_v15 = vld [vmem:[#allocation2 + $0x59] sm:$0x1] }
 0x573   : > { %9873 = vmatprep.mubr.f32.mxu1 %v6638_v48 }
 0x576   : > { %9874 = vmatmul.mubr.f32.gmra.mrb[22].mxu1 %v6639_v31 }
 0x577   : > { %9876 = vmatprep.mubr.f32.mxu1 %v6640_v4 }
 0x57a   : > { %9877 = vmatmul.mubr.f32.gmra.mrb[24].mxu1 %v6641_v47 }
 0x57b   : > { %9879 = vmatprep.mubr.f32.mxu1 %v6642_v55 }
 0x57e   : > { %9880 = vmatmul.mubr.f32.gmra.mrb[26].mxu1 %v6643_v11 }
 0x57f   : > { %9882 = vmatprep.mubr.f32.mxu1 %v12333_v46 }
 0x582   : > { %9883 = vmatmul.mubr.f32.gmra.mrb[28].mxu1 %v12336_v56 }
 0x583   : > { %9885 = vmatprep.mubr.f32.mxu1 %v6646_v41 }
 0x586   : > { %9886 = vmatmul.mubr.f32.gmra.mrb[30].mxu1 %v6647_v0 }
 0x61d   : > { %v9842_v63 = vpop.f32.mrb[0].mxu1 }
 0x61e   : > { %v10496_v45 = vadd.f32 %v9842_v63, %v12355_v20  ;;  %v6731_v59 = vpop.f32.mrb[1].mxu1 }
 0x61f   : > { %v10497_v5 = vadd.f32 %v12355_v20, %v6731_v59 }
 0x620   : > { %v7019_v39 = vmax.f32 %v10496_v45, 0.0 }
 0x621   : > { %v7018_v57 = vmax.f32 %v10497_v5, 0.0  ;;  %v9845_v52 = vpop.f32.mrb[2].mxu1 }
 0x622   : > { %7051 = vst [vmem:[#allocation2 + $0x21] sm:$0xff] %v7019_v39  ;;  %v10498_v46 = vadd.f32 %v9845_v52, %v12355_v20  ;;  %v6741_v10 = vpop.f32.mrb[3].mxu1 }
 0x623   : > { %7050 = vst [vmem:[#allocation2 + $0x19] sm:$0xff] %v7018_v57  ;;  %v10499_v56 = vadd.f32 %v12355_v20, %v6741_v10 }
 0x624   : > { %v7021_v49 = vmax.f32 %v10498_v46, 0.0 }
 0x625   : > { %v7020_v2 = vmax.f32 %v10499_v56, 0.0  ;;  %v9848_v8 = vpop.f32.mrb[4].mxu1  ;;  %v7144_v56 = vld [vmem:[#allocation2 + $0x59] sm:$0x1] }
 0x626   : > { %7053 = vst [vmem:[#allocation2 + $0x39] sm:$0xff] %v7021_v49  ;;  %v12362_v14 = vadd.f32 %v9848_v8, %v12355_v20  ;;  %v6751_v26 = vpop.f32.mrb[5].mxu1 }
 0x627   : > { %7052 = vst [vmem:[#allocation2 + $0x31] sm:$0xff] %v7020_v2  ;;  %v12366_v42 = vadd.f32 %v12355_v20, %v6751_v26 }
 0x628   : > { %v7023_v32 = vmax.f32 %v12362_v14, 0.0 }
 0x629   : > { %v7237_v60 = vld [vmem:[#allocation2 + $0x28] sm:$0x1]  ;;  %v7022_v23 = vmax.f32 %v12366_v42, 0.0  ;;  %v9851_v34 = vpop.f32.mrb[6].mxu1 }
 0x62a   : > { %v7339_v36 = vmax.f32 %v7237_v60, %v7288_v29  ;;  %v7085_v18 = vld [vmem:[#allocation2 + $0x18] sm:$0xff]  ;;  %v7086_v6 = vld [vmem:[#allocation2 + $0x20] sm:$0xff]  ;;  %7055 = vst [vmem:[#allocation2 + $0x51] sm:$0xff] %v7023_v32  ;;  %v12374_v62 = vadd.f32 %v9851_v34, %v12355_v20  ;;  %v6761_v33 = vpop.f32.mrb[7].mxu1  ;;  %v7087_v7 = vld [vmem:[#allocation2 + $0x28] sm:$0x1] }
 0x62b   : > { %v7187_v35 = vmax.f32 %v7085_v18, %v7018_v57  ;;  %v7188_v30 = vmax.f32 %v7086_v6, %v7019_v39  ;;  %7054 = vst [vmem:[#allocation2 + $0x49] sm:$0xff] %v7022_v23  ;;  %v12382_v17 = vadd.f32 %v12355_v20, %v6761_v33  ;;  %v7189_v22 = vmax.f32 %v7087_v7, %v7138_v13  ;;  %v7147_v34 = vld [vmem:[#allocation2 + $0x71] sm:$0x1] }
 0x62c   : > { %v7390_v61 = vmax.f32 %v7186_v1, %v7339_v36  ;;  %v7025_v19 = vmax.f32 %v12374_v62, 0.0  ;;  %v7300_v36 = vld [vmem:[#allocation2 + $0x89] sm:$0x1] }
 0x62d   : > { %v7388_v28 = vmax.f32 %v7184_v43, %v7187_v35  ;;  %v7389_v58 = vmax.f32 %v7185_v38, %v7188_v30  ;;  %v7240_v21 = vld [vmem:[#allocation2 + $0x40] sm:$0x1]  ;;  %v7024_v51 = vmax.f32 %v12382_v17, 0.0  ;;  %v9854_v12 = vpop.f32.mrb[8].mxu1 }
 0x62e   : > { %7441 = vst [vmem:[%s12379_s25 + $0x10] sm:$0x1] %v7390_v61  ;;  %v7342_v27 = vmax.f32 %v7240_v21, %v7291_v53  ;;  %v7088_v44 = vld [vmem:[#allocation2 + $0x30] sm:$0xff]  ;;  %v7089_v9 = vld [vmem:[#allocation2 + $0x38] sm:$0xff]  ;;  %7057 = vst [vmem:[#allocation2 + $0x69] sm:$0xff] %v7025_v19  ;;  %v12390_v3 = vadd.f32 %v9854_v12, %v12355_v20  ;;  %v6771_v40 = vpop.f32.mrb[9].mxu1 }
 0x62f   : > { %7439 = vst [vmem:[%s12379_s25] sm:$0xff] %v7388_v28  ;;  %7440 = vst [vmem:[%s12379_s25 + $0x8] sm:$0xff] %v7389_v58  ;;  %v7090_v48 = vld [vmem:[#allocation2 + $0x40] sm:$0x1]  ;;  %v7190_v31 = vmax.f32 %v7088_v44, %v7020_v2  ;;  %v7191_v4 = vmax.f32 %v7089_v9, %v7021_v49  ;;  %v12397_v47 = vadd.f32 %v12355_v20, %v6771_v40  ;;  %v7297_v49 = vld [vmem:[#allocation2 + $0x71] sm:$0x1] }
 0x630   : > { %7056 = vst [vmem:[#allocation2 + $0x61] sm:$0xff] %v7024_v51  ;;  %v7393_v55 = vmax.f32 %v7189_v22, %v7342_v27  ;;  %v7027_v11 = vmax.f32 %v12390_v3, 0.0  ;;  %v7192_v5 = vmax.f32 %v7090_v48, %v7141_v24  ;;  %v7150_v22 = vld [vmem:[#allocation2 + $0x89] sm:$0x1]  ;;  %v7303_v27 = vld [vmem:[#allocation2 + $0xa1] sm:$0x1] }
 0x631   : > { %v7391_v41 = vmax.f32 %v7187_v35, %v7190_v31  ;;  %v7392_v0 = vmax.f32 %v7188_v30, %v7191_v4  ;;  %v7243_v63 = vld [vmem:[#allocation2 + $0x58] sm:$0x1]  ;;  %v7026_v45 = vmax.f32 %v12397_v47, 0.0  ;;  %v9857_v59 = vpop.f32.mrb[10].mxu1 }
 0x632   : > { %7444 = vst [vmem:[%s12379_s25 + $0x28] sm:$0x1] %v7393_v55  ;;  %v7345_v39 = vmax.f32 %v7243_v63, %v7294_v15  ;;  %v7091_v57 = vld [vmem:[#allocation2 + $0x48] sm:$0xff]  ;;  %v7092_v52 = vld [vmem:[#allocation2 + $0x50] sm:$0xff]  ;;  %7059 = vst [vmem:[#allocation2 + $0x81] sm:$0xff] %v7027_v11  ;;  %v12405_v46 = vadd.f32 %v9857_v59, %v12355_v20  ;;  %v6781_v10 = vpop.f32.mrb[11].mxu1 }
 0x633   : > { %7442 = vst [vmem:[%s12379_s25 + $0x18] sm:$0xff] %v7391_v41  ;;  %7443 = vst [vmem:[%s12379_s25 + $0x20] sm:$0xff] %v7392_v0  ;;  %v7093_v54 = vld [vmem:[#allocation2 + $0x58] sm:$0x1]  ;;  %v7193_v50 = vmax.f32 %v7091_v57, %v7022_v23  ;;  %v7194_v2 = vmax.f32 %v7092_v52, %v7023_v32  ;;  %v12414_v8 = vadd.f32 %v12355_v20, %v6781_v10 }
 0x634   : > { %7058 = vst [vmem:[#allocation2 + $0x79] sm:$0xff] %v7026_v45  ;;  %v7396_v26 = vmax.f32 %v7192_v5, %v7345_v39  ;;  %v7029_v29 = vmax.f32 %v12405_v46, 0.0  ;;  %v7195_v37 = vmax.f32 %v7093_v54, %v7144_v56  ;;  %v7153_v5 = vld [vmem:[#allocation2 + $0xa1] sm:$0x1]  ;;  %v7306_v39 = vld [vmem:[#allocation2 + $0xb9] sm:$0x1] }
 0x635   : > { %v7394_v42 = vmax.f32 %v7190_v31, %v7193_v50  ;;  %v7395_v1 = vmax.f32 %v7191_v4, %v7194_v2  ;;  %v7246_v25 = vld [vmem:[#allocation2 + $0x70] sm:$0x1]  ;;  %v7028_v16 = vmax.f32 %v12414_v8, 0.0  ;;  %v9860_v43 = vpop.f32.mrb[12].mxu1 }
 0x636   : > { %7447 = vst [vmem:[%s12379_s25 + $0x40] sm:$0x1] %v7396_v26  ;;  %v7348_v14 = vmax.f32 %v7246_v25, %v7297_v49  ;;  %7061 = vst [vmem:[#allocation2 + $0x99] sm:$0xff] %v7029_v29  ;;  %v12422_v60 = vadd.f32 %v9860_v43, %v12355_v20  ;;  %v6791_v23 = vpop.f32.mrb[13].mxu1  ;;  %v7096_v18 = vld [vmem:[#allocation2 + $0x70] sm:$0x1] }
 0x637   : > { %v7094_v32 = vld [vmem:[#allocation2 + $0x60] sm:$0xff]  ;;  %v7095_v38 = vld [vmem:[#allocation2 + $0x68] sm:$0xff]  ;;  %7445 = vst [vmem:[%s12379_s25 + $0x30] sm:$0xff] %v7394_v42  ;;  %7446 = vst [vmem:[%s12379_s25 + $0x38] sm:$0xff] %v7395_v1  ;;  %v12433_v13 = vadd.f32 %v12355_v20, %v6791_v23  ;;  %v7198_v58 = vmax.f32 %v7096_v18, %v7147_v34 }
 0x638   : > { %v7196_v6 = vmax.f32 %v7094_v32, %v7024_v51  ;;  %v7197_v33 = vmax.f32 %v7095_v38, %v7025_v19  ;;  %7060 = vst [vmem:[#allocation2 + $0x91] sm:$0xff] %v7028_v16  ;;  %v7399_v53 = vmax.f32 %v7195_v37, %v7348_v14  ;;  %v7031_v7 = vmax.f32 %v12422_v60, 0.0  ;;  %v7156_v37 = vld [vmem:[#allocation2 + $0xb9] sm:$0x1]  ;;  %v7309_v14 = vld [vmem:[#allocation2 + $0xd1] sm:$0x1] }
 0x639   : > { %v7249_v61 = vld [vmem:[#allocation2 + $0x88] sm:$0x1]  ;;  %v7030_v17 = vmax.f32 %v12433_v13, 0.0  ;;  %v9863_v28 = vpop.f32.mrb[14].mxu1 }
 0x63a   : > { %v7397_v35 = vmax.f32 %v7193_v50, %v7196_v6  ;;  %v7398_v30 = vmax.f32 %v7194_v2, %v7197_v33  ;;  %7450 = vst [vmem:[%s12379_s25 + $0x58] sm:$0x1] %v7399_v53  ;;  %v7351_v62 = vmax.f32 %v7249_v61, %v7300_v36  ;;  %7063 = vst [vmem:[#allocation2 + $0xb1] sm:$0xff] %v7031_v7  ;;  %v6801_v12 = vpop.f32.mrb[15].mxu1  ;;  %v7099_v44 = vld [vmem:[#allocation2 + $0x88] sm:$0x1] }
 0x63b   : > { %v7097_v19 = vld [vmem:[#allocation2 + $0x78] sm:$0xff]  ;;  %v7098_v21 = vld [vmem:[#allocation2 + $0x80] sm:$0xff]  ;;  %v12441_v51 = vadd.f32 %v9863_v28, %v12355_v20  ;;  %7062 = vst [vmem:[#allocation2 + $0xa9] sm:$0xff] %v7030_v17  ;;  %v12452_v24 = vadd.f32 %v12355_v20, %v6801_v12  ;;  %v7201_v0 = vmax.f32 %v7099_v44, %v7150_v22 }
 0x63c   : > { %7448 = vst [vmem:[%s12379_s25 + $0x48] sm:$0xff] %v7397_v35  ;;  %7449 = vst [vmem:[%s12379_s25 + $0x50] sm:$0xff] %v7398_v30  ;;  %v7199_v9 = vmax.f32 %v7097_v19, %v7026_v45  ;;  %v7200_v40 = vmax.f32 %v7098_v21, %v7027_v11  ;;  %v7402_v15 = vmax.f32 %v7198_v58, %v7351_v62  ;;  %v7159_v58 = vld [vmem:[#allocation2 + $0xd1] sm:$0x1]  ;;  %v7312_v62 = vld [vmem:[#allocation2 + $0xe9] sm:$0x1] }
 0x63d   : > { %v7033_v48 = vmax.f32 %v12441_v51, 0.0  ;;  %v7252_v55 = vld [vmem:[#allocation2 + $0xa0] sm:$0x1]  ;;  %v7032_v47 = vmax.f32 %v12452_v24, 0.0  ;;  %v9866_v41 = vpop.f32.mrb[16].mxu1 }
 0x63e   : > { %v7400_v31 = vmax.f32 %v7196_v6, %v7199_v9  ;;  %v7401_v4 = vmax.f32 %v7197_v33, %v7200_v40  ;;  %7453 = vst [vmem:[%s12379_s25 + $0x70] sm:$0x1] %v7402_v15  ;;  %v7354_v3 = vmax.f32 %v7252_v55, %v7303_v27  ;;  %v12460_v45 = vadd.f32 %v9866_v41, %v12355_v20  ;;  %v6811_v59 = vpop.f32.mrb[17].mxu1  ;;  %v7102_v57 = vld [vmem:[#allocation2 + $0xa0] sm:$0x1] }
 0x63f   : > { %v7100_v11 = vld [vmem:[#allocation2 + $0x90] sm:$0xff]  ;;  %v7101_v63 = vld [vmem:[#allocation2 + $0x98] sm:$0xff]  ;;  %7065 = vst [vmem:[#allocation2 + $0xc9] sm:$0xff] %v7033_v48  ;;  %7064 = vst [vmem:[#allocation2 + $0xc1] sm:$0xff] %v7032_v47  ;;  %v12471_v56 = vadd.f32 %v12355_v20, %v6811_v59  ;;  %v7204_v1 = vmax.f32 %v7102_v57, %v7153_v5 }
 0x640   : > { %7451 = vst [vmem:[%s12379_s25 + $0x60] sm:$0xff] %v7400_v31  ;;  %7452 = vst [vmem:[%s12379_s25 + $0x68] sm:$0xff] %v7401_v4  ;;  %v7202_v52 = vmax.f32 %v7100_v11, %v7028_v16  ;;  %v7203_v10 = vmax.f32 %v7101_v63, %v7029_v29  ;;  %v7405_v49 = vmax.f32 %v7201_v0, %v7354_v3  ;;  %v7035_v54 = vmax.f32 %v12460_v45, 0.0  ;;  %v7162_v0 = vld [vmem:[#allocation2 + $0xe9] sm:$0x1] }
 0x641   : > { %v7255_v26 = vld [vmem:[#allocation2 + $0xb8] sm:$0x1]  ;;  %v7034_v8 = vmax.f32 %v12471_v56, 0.0  ;;  %v9869_v42 = vpop.f32.mrb[18].mxu1  ;;  %v7315_v3 = vld [vmem:[#allocation2 + $0x101] sm:$0x1] }
 0x642   : > { %v7403_v50 = vmax.f32 %v7199_v9, %v7202_v52  ;;  %v7404_v2 = vmax.f32 %v7200_v40, %v7203_v10  ;;  %7456 = vst [vmem:[%s12379_s25 + $0x88] sm:$0x1] %v7405_v49  ;;  %v7357_v46 = vmax.f32 %v7255_v26, %v7306_v39  ;;  %v7103_v29 = vld [vmem:[#allocation2 + $0xa8] sm:$0xff]  ;;  %v7104_v25 = vld [vmem:[#allocation2 + $0xb0] sm:$0xff]  ;;  %7067 = vst [vmem:[#allocation2 + $0xe1] sm:$0xff] %v7035_v54  ;;  %v6821_v43 = vpop.f32.mrb[19].mxu1 }
 0x643   : > { %v12479_v16 = vadd.f32 %v9869_v42, %v12355_v20  ;;  %v7105_v32 = vld [vmem:[#allocation2 + $0xb8] sm:$0x1]  ;;  %v7205_v38 = vmax.f32 %v7103_v29, %v7030_v17  ;;  %v7206_v23 = vmax.f32 %v7104_v25, %v7031_v7  ;;  %7066 = vst [vmem:[#allocation2 + $0xd9] sm:$0xff] %v7034_v8  ;;  %v12490_v34 = vadd.f32 %v12355_v20, %v6821_v43 }
 0x644   : > { %7454 = vst [vmem:[%s12379_s25 + $0x78] sm:$0xff] %v7403_v50  ;;  %7455 = vst [vmem:[%s12379_s25 + $0x80] sm:$0xff] %v7404_v2  ;;  %v7408_v36 = vmax.f32 %v7204_v1, %v7357_v46  ;;  %v7207_v30 = vmax.f32 %v7105_v32, %v7156_v37  ;;  %v7165_v1 = vld [vmem:[#allocation2 + $0x101] sm:$0x1]  ;;  %v7318_v46 = vld [vmem:[#allocation2 + $0x119] sm:$0x1] }
 0x645   : > { %v7037_v18 = vmax.f32 %v12479_v16, 0.0  ;;  %v7406_v6 = vmax.f32 %v7202_v52, %v7205_v38  ;;  %v7407_v33 = vmax.f32 %v7203_v10, %v7206_v23  ;;  %v7036_v13 = vmax.f32 %v12490_v34, 0.0  ;;  %v9872_v35 = vpop.f32.mrb[20].mxu1 }
 0x646   : > { %v7258_v53 = vld [vmem:[#allocation2 + $0xd0] sm:$0x1]  ;;  %7459 = vst [vmem:[%s12379_s25 + $0xa0] sm:$0x1] %v7408_v36  ;;  %v7106_v7 = vld [vmem:[#allocation2 + $0xc0] sm:$0xff]  ;;  %v7107_v61 = vld [vmem:[#allocation2 + $0xc8] sm:$0xff]  ;;  %v12498_v17 = vadd.f32 %v9872_v35, %v12355_v20 }
 0x647   : > { %v7360_v60 = vmax.f32 %v7258_v53, %v7309_v14  ;;  %7069 = vst [vmem:[#allocation2 + $0xf9] sm:$0xff] %v7037_v18  ;;  %v6831_v28 = vpop.f32.mrb[21].mxu1  ;;  %7457 = vst [vmem:[%s12379_s25 + $0x90] sm:$0xff] %v7406_v6  ;;  %v7108_v19 = vld [vmem:[#allocation2 + $0xd0] sm:$0x1]  ;;  %v7208_v21 = vmax.f32 %v7106_v7, %v7032_v47  ;;  %v7209_v12 = vmax.f32 %v7107_v61, %v7033_v48 }
 0x648   : > { %7458 = vst [vmem:[%s12379_s25 + $0x98] sm:$0xff] %v7407_v33  ;;  %7068 = vst [vmem:[#allocation2 + $0xf1] sm:$0xff] %v7036_v13  ;;  %v12509_v22 = vadd.f32 %v12355_v20, %v6831_v28  ;;  %v7039_v44 = vmax.f32 %v12498_v17, 0.0  ;;  %v7210_v4 = vmax.f32 %v7108_v19, %v7159_v58 }
 0x649   : > { %v7411_v27 = vmax.f32 %v7207_v30, %v7360_v60  ;;  %v7409_v9 = vmax.f32 %v7205_v38, %v7208_v21  ;;  %v7410_v40 = vmax.f32 %v7206_v23, %v7209_v12  ;;  %v7261_v15 = vld [vmem:[#allocation2 + $0xe8] sm:$0x1]  ;;  %v9875_v31 = vpop.f32.mrb[22].mxu1  ;;  %v7168_v30 = vld [vmem:[#allocation2 + $0x119] sm:$0x1] }
 0x64a   : > { %v7038_v24 = vmax.f32 %v12509_v22, 0.0  ;;  %v7363_v51 = vmax.f32 %v7261_v15, %v7312_v62  ;;  %v7109_v48 = vld [vmem:[#allocation2 + $0xd8] sm:$0xff]  ;;  %v7110_v55 = vld [vmem:[#allocation2 + $0xe0] sm:$0xff]  ;;  %7071 = vst [vmem:[#allocation2 + $0x111] sm:$0xff] %v7039_v44  ;;  %v12517_v47 = vadd.f32 %v9875_v31, %v12355_v20  ;;  %v6841_v41 = vpop.f32.mrb[23].mxu1 }
 0x64b   : > { %7462 = vst [vmem:[%s12379_s25 + $0xb8] sm:$0x1] %v7411_v27  ;;  %7460 = vst [vmem:[%s12379_s25 + $0xa8] sm:$0xff] %v7409_v9  ;;  %v7111_v11 = vld [vmem:[#allocation2 + $0xe8] sm:$0x1]  ;;  %v7211_v63 = vmax.f32 %v7109_v48, %v7034_v8  ;;  %v7212_v59 = vmax.f32 %v7110_v55, %v7035_v54  ;;  %v12528_v5 = vadd.f32 %v12355_v20, %v6841_v41 }
 0x64c   : > { %7461 = vst [vmem:[%s12379_s25 + $0xb0] sm:$0xff] %v7410_v40  ;;  %7070 = vst [vmem:[#allocation2 + $0x109] sm:$0xff] %v7038_v24  ;;  %v7414_v39 = vmax.f32 %v7210_v4, %v7363_v51  ;;  %v7041_v57 = vmax.f32 %v12517_v47, 0.0  ;;  %v7213_v2 = vmax.f32 %v7111_v11, %v7162_v0  ;;  %v7321_v60 = vld [vmem:[#allocation2 + $0x131] sm:$0x1] }
 0x64d   : > { %v7412_v52 = vmax.f32 %v7208_v21, %v7211_v63  ;;  %v7413_v10 = vmax.f32 %v7209_v12, %v7212_v59  ;;  %v7040_v56 = vmax.f32 %v12528_v5, 0.0  ;;  %v9878_v50 = vpop.f32.mrb[24].mxu1  ;;  %v7171_v4 = vld [vmem:[#allocation2 + $0x131] sm:$0x1]  ;;  %v7324_v51 = vld [vmem:[#allocation2 + $0x149] sm:$0x1] }
 0x64e   : > { %v7264_v49 = vld [vmem:[#allocation2 + $0x100] sm:$0x1]  ;;  %7465 = vst [vmem:[%s12379_s25 + $0xd0] sm:$0x1] %v7414_v39  ;;  %7073 = vst [vmem:[#allocation2 + $0x129] sm:$0xff] %v7041_v57  ;;  %v12536_v8 = vadd.f32 %v9878_v50, %v12355_v20  ;;  %v6851_v42 = vpop.f32.mrb[25].mxu1 }
 0x64f   : > { %v7366_v45 = vmax.f32 %v7264_v49, %v7315_v3  ;;  %v7112_v54 = vld [vmem:[#allocation2 + $0xf0] sm:$0xff]  ;;  %v7113_v26 = vld [vmem:[#allocation2 + $0xf8] sm:$0xff]  ;;  %7463 = vst [vmem:[%s12379_s25 + $0xc0] sm:$0xff] %v7412_v52  ;;  %7464 = vst [vmem:[%s12379_s25 + $0xc8] sm:$0xff] %v7413_v10  ;;  %v12547_v37 = vadd.f32 %v12355_v20, %v6851_v42 }
 0x650   : > { %v7114_v29 = vld [vmem:[#allocation2 + $0x100] sm:$0x1]  ;;  %v7214_v25 = vmax.f32 %v7112_v54, %v7036_v13  ;;  %v7215_v43 = vmax.f32 %v7113_v26, %v7037_v18  ;;  %7072 = vst [vmem:[#allocation2 + $0x121] sm:$0xff] %v7040_v56  ;;  %v7043_v32 = vmax.f32 %v12536_v8, 0.0  ;;  %v7177_v8 = vld [vmem:[#allocation2 + $0x161] sm:$0x1] }
 0x651   : > { %v7417_v14 = vmax.f32 %v7213_v2, %v7366_v45  ;;  %v7267_v36 = vld [vmem:[#allocation2 + $0x118] sm:$0x1]  ;;  %v7042_v34 = vmax.f32 %v12547_v37, 0.0  ;;  %v9881_v6 = vpop.f32.mrb[26].mxu1  ;;  %v7216_v33 = vmax.f32 %v7114_v29, %v7165_v1  ;;  %v7174_v2 = vld [vmem:[#allocation2 + $0x149] sm:$0x1] }
 0x652   : > { %v7415_v38 = vmax.f32 %v7211_v63, %v7214_v25  ;;  %v7416_v23 = vmax.f32 %v7212_v59, %v7215_v43  ;;  %v7369_v16 = vmax.f32 %v7267_v36, %v7318_v46  ;;  %7075 = vst [vmem:[#allocation2 + $0x141] sm:$0xff] %v7043_v32  ;;  %v12555_v13 = vadd.f32 %v9881_v6, %v12355_v20  ;;  %v6861_v35 = vpop.f32.mrb[27].mxu1  ;;  %v7117_v7 = vld [vmem:[#allocation2 + $0x118] sm:$0x1]  ;;  %v7327_v45 = vld [vmem:[#allocation2 + $0x161] sm:$0x1] }
 0x653   : > { %7468 = vst [vmem:[%s12379_s25 + $0xe8] sm:$0x1] %v7417_v14  ;;  %v7115_v18 = vld [vmem:[#allocation2 + $0x108] sm:$0xff]  ;;  %v7116_v53 = vld [vmem:[#allocation2 + $0x110] sm:$0xff]  ;;  %7074 = vst [vmem:[#allocation2 + $0x139] sm:$0xff] %v7042_v34  ;;  %v12566_v58 = vadd.f32 %v12355_v20, %v6861_v35  ;;  %v7219_v40 = vmax.f32 %v7117_v7, %v7168_v30 }
 0x654   : > { %7466 = vst [vmem:[%s12379_s25 + $0xd8] sm:$0xff] %v7415_v38  ;;  %7467 = vst [vmem:[%s12379_s25 + $0xe0] sm:$0xff] %v7416_v23  ;;  %v7217_v61 = vmax.f32 %v7115_v18, %v7038_v24  ;;  %v7218_v28 = vmax.f32 %v7116_v53, %v7039_v44  ;;  %v7420_v62 = vmax.f32 %v7216_v33, %v7369_v16  ;;  %v7045_v19 = vmax.f32 %v12555_v13, 0.0  ;;  %v7285_v18 = vld [vmem:[#allocation2 + $0x1a8] sm:$0x1] }
 0x655   : > { %v7270_v27 = vld [vmem:[#allocation2 + $0x130] sm:$0x1]  ;;  %v7044_v22 = vmax.f32 %v12566_v58, 0.0  ;;  %v9884_v9 = vpop.f32.mrb[28].mxu1  ;;  %v7336_v53 = vld [vmem:[#allocation2 + $0x1a9] sm:$0x1] }
 0x656   : > { %v7418_v21 = vmax.f32 %v7214_v25, %v7217_v61  ;;  %v7419_v12 = vmax.f32 %v7215_v43, %v7218_v28  ;;  %7471 = vst [vmem:[%s12379_s25 + $0x100] sm:$0x1] %v7420_v62  ;;  %v7372_v17 = vmax.f32 %v7270_v27, %v7321_v60  ;;  %7077 = vst [vmem:[#allocation2 + $0x159] sm:$0xff] %v7045_v19  ;;  %v6871_v31 = vpop.f32.mrb[29].mxu1  ;;  %v7120_v48 = vld [vmem:[#allocation2 + $0x130] sm:$0x1] }
 0x657   : > { %v7118_v44 = vld [vmem:[#allocation2 + $0x120] sm:$0xff]  ;;  %v7119_v15 = vld [vmem:[#allocation2 + $0x128] sm:$0xff]  ;;  %v12574_v24 = vadd.f32 %v9884_v9, %v12355_v20  ;;  %7076 = vst [vmem:[#allocation2 + $0x151] sm:$0xff] %v7044_v22  ;;  %v10525_v0 = vadd.f32 %v12355_v20, %v6871_v31  ;;  %v7222_v49 = vmax.f32 %v7120_v48, %v7171_v4  ;;  %v7180_v7 = vld [vmem:[#allocation2 + $0x179] sm:$0x1] }
 0x658   : > { %7469 = vst [vmem:[%s12379_s25 + $0xf0] sm:$0xff] %v7418_v21  ;;  %7470 = vst [vmem:[%s12379_s25 + $0xf8] sm:$0xff] %v7419_v12  ;;  %v7220_v55 = vmax.f32 %v7118_v44, %v7040_v56  ;;  %v7221_v41 = vmax.f32 %v7119_v15, %v7041_v57  ;;  %v7423_v3 = vmax.f32 %v7219_v40, %v7372_v17  ;;  %v7183_v21 = vld [vmem:[#allocation2 + $0x191] sm:$0x1]  ;;  %v11080_v40 = vld [vmem:[#allocation2 + $0x198] sm:$0xff] }
 0x659   : > { %v7047_v11 = vmax.f32 %v12574_v24, 0.0  ;;  %v7273_v39 = vld [vmem:[#allocation2 + $0x148] sm:$0x1]  ;;  %v7046_v52 = vmax.f32 %v10525_v0, 0.0  ;;  %v9887_v10 = vpop.f32.mrb[30].mxu1  ;;  %v11081_v17 = vld [vmem:[#allocation2 + $0x199] sm:$0xff] }
 0x65a   : > { %v7421_v63 = vmax.f32 %v7217_v61, %v7220_v55  ;;  %v7422_v59 = vmax.f32 %v7218_v28, %v7221_v41  ;;  %7474 = vst [vmem:[%s12379_s25 + $0x118] sm:$0x1] %v7423_v3  ;;  %v7375_v5 = vmax.f32 %v7273_v39, %v7324_v51  ;;  %v7121_v56 = vld [vmem:[#allocation2 + $0x138] sm:$0xff]  ;;  %v7122_v50 = vld [vmem:[#allocation2 + $0x140] sm:$0xff]  ;;  %v12586_v47 = vadd.f32 %v9887_v10, %v12355_v20  ;;  %v6881_v57 = vpop.f32.mrb[31].mxu1  ;;  %v11082_v15 = vld [vmem:[#allocation2 + $0x8] sm:$0xff] }
 0x65b   : > { %7079 = vst [vmem:[#allocation2 + $0x171] sm:$0xff] %v7047_v11  ;;  %v7123_v54 = vld [vmem:[#allocation2 + $0x148] sm:$0x1]  ;;  %v7223_v26 = vmax.f32 %v7121_v56, %v7042_v34  ;;  %v7224_v42 = vmax.f32 %v7122_v50, %v7043_v32  ;;  %7078 = vst [vmem:[#allocation2 + $0x169] sm:$0xff] %v7046_v52  ;;  %v10527_v1 = vadd.f32 %v12355_v20, %v6881_v57  ;;  %v7330_v32 = vld [vmem:[#allocation2 + $0x179] sm:$0x1] }
 0x65c   : > { %7472 = vst [vmem:[%s12379_s25 + $0x108] sm:$0xff] %v7421_v63  ;;  %7473 = vst [vmem:[%s12379_s25 + $0x110] sm:$0xff] %v7422_v59  ;;  %v7426_v46 = vmax.f32 %v7222_v49, %v7375_v5  ;;  %v7049_v29 = vmax.f32 %v12586_v47, 0.0  ;;  %v7225_v23 = vmax.f32 %v7123_v54, %v7174_v2  ;;  %v7333_v12 = vld [vmem:[#allocation2 + $0x191] sm:$0x1]  ;;  %v7385_v44 = vmax.f32 %v11080_v40, %v11081_v17  ;;  %v11083_v24 = vld [vmem:[#allocation2 + $0x1a1] sm:$0xff] }
 0x65d   : > { %v7424_v25 = vmax.f32 %v7220_v55, %v7223_v26  ;;  %v7425_v43 = vmax.f32 %v7221_v41, %v7224_v42  ;;  %v7276_v14 = vld [vmem:[#allocation2 + $0x160] sm:$0x1]  ;;  %v7048_v38 = vmax.f32 %v10527_v1, 0.0  ;;  %v7386_v31 = vmax.f32 %v11082_v15, %v11083_v24 }
 0x65e   : > { %7477 = vst [vmem:[%s12379_s25 + $0x130] sm:$0x1] %v7426_v46  ;;  %v7378_v36 = vmax.f32 %v7276_v14, %v7327_v45  ;;  %v7124_v37 = vld [vmem:[#allocation2 + $0x150] sm:$0xff]  ;;  %v7125_v34 = vld [vmem:[#allocation2 + $0x158] sm:$0xff]  ;;  %7081 = vst [vmem:[#allocation2 + $0x189] sm:$0xff] %v7049_v29 }
 0x65f   : > { %7475 = vst [vmem:[%s12379_s25 + $0x120] sm:$0xff] %v7424_v25  ;;  %7476 = vst [vmem:[%s12379_s25 + $0x128] sm:$0xff] %v7425_v43  ;;  %v7126_v20 = vld [vmem:[#allocation2 + $0x160] sm:$0x1]  ;;  %v7226_v6 = vmax.f32 %v7124_v37, %v7044_v22  ;;  %v7227_v33 = vmax.f32 %v7125_v34, %v7045_v19  ;;  %v7387_v22 = vmax.f32 %v7285_v18, %v7336_v53 }
 0x660   : > { %7080 = vst [vmem:[#allocation2 + $0x181] sm:$0xff] %v7048_v38  ;;  %v7429_v16 = vmax.f32 %v7225_v23, %v7378_v36  ;;  %v7228_v61 = vmax.f32 %v7126_v20, %v7177_v8 }
 0x661   : > { %v7427_v35 = vmax.f32 %v7223_v26, %v7226_v6  ;;  %v7428_v30 = vmax.f32 %v7224_v42, %v7227_v33 }
 0x662   : > { %v7279_v60 = vld [vmem:[#allocation2 + $0x178] sm:$0x1]  ;;  %7480 = vst [vmem:[%s12379_s25 + $0x148] sm:$0x1] %v7429_v16  ;;  %v7277_v58 = vld [vmem:[#allocation2 + $0x168] sm:$0xff]  ;;  %v7278_v62 = vld [vmem:[#allocation2 + $0x170] sm:$0xff] }
 0x663   : > { %v7381_v28 = vmax.f32 %v7279_v60, %v7330_v32  ;;  %7478 = vst [vmem:[%s12379_s25 + $0x138] sm:$0xff] %v7427_v35  ;;  %7479 = vst [vmem:[%s12379_s25 + $0x140] sm:$0xff] %v7428_v30  ;;  %v7379_v13 = vmax.f32 %v7277_v58, %v7046_v52  ;;  %v7380_v19 = vmax.f32 %v7278_v62, %v7047_v11  ;;  %v7129_v27 = vld [vmem:[#allocation2 + $0x178] sm:$0x1] }
 0x664   : > { %v7231_v41 = vmax.f32 %v7129_v27, %v7180_v7 }
 0x665   : > { %v7432_v9 = vmax.f32 %v7228_v61, %v7381_v28  ;;  %v7430_v4 = vmax.f32 %v7226_v6, %v7379_v13  ;;  %v7431_v51 = vmax.f32 %v7227_v33, %v7380_v19  ;;  %v7132_v48 = vld [vmem:[#allocation2 + $0x190] sm:$0x1] }
 0x666   : > { %v7282_v55 = vld [vmem:[#allocation2 + $0x190] sm:$0x1]  ;;  %v7234_v0 = vmax.f32 %v7132_v48, %v7183_v21 }
 0x667   : > { %7483 = vst [vmem:[%s12379_s25 + $0x160] sm:$0x1] %v7432_v9  ;;  %v7384_v3 = vmax.f32 %v7282_v55, %v7333_v12  ;;  %v7130_v11 = vld [vmem:[#allocation2 + $0x180] sm:$0xff]  ;;  %v7131_v63 = vld [vmem:[#allocation2 + $0x188] sm:$0xff]  ;;  %7481 = vst [vmem:[%s12379_s25 + $0x150] sm:$0xff] %v7430_v4 }
 0x668   : > { %7482 = vst [vmem:[%s12379_s25 + $0x158] sm:$0xff] %v7431_v51  ;;  %v7232_v59 = vmax.f32 %v7130_v11, %v7048_v38  ;;  %v7233_v39 = vmax.f32 %v7131_v63, %v7049_v29  ;;  %v7438_v10 = vmax.f32 %v7234_v0, %v7387_v22 }
 0x669   : > { %v7435_v52 = vmax.f32 %v7231_v41, %v7384_v3 }
 0x66a   : > { %v7433_v49 = vmax.f32 %v7379_v13, %v7232_v59  ;;  %v7434_v5 = vmax.f32 %v7380_v19, %v7233_v39  ;;  %v7436_v56 = vmax.f32 %v7232_v59, %v7385_v44  ;;  %v7437_v50 = vmax.f32 %v7233_v39, %v7386_v31  ;;  %7489 = vst [vmem:[%s12379_s25 + $0x190] sm:$0x1] %v7438_v10 }
 0x66b   : > { %7486 = vst [vmem:[%s12379_s25 + $0x178] sm:$0x1] %v7435_v52 }
 0x66c   : > { %7484 = vst [vmem:[%s12379_s25 + $0x168] sm:$0xff] %v7433_v49  ;;  %7485 = vst [vmem:[%s12379_s25 + $0x170] sm:$0xff] %v7434_v5 }
 0x66d   : > { %7487 = vst [vmem:[%s12379_s25 + $0x180] sm:$0xff] %v7436_v56  ;;  %7488 = vst [vmem:[%s12379_s25 + $0x188] sm:$0xff] %v7437_v50 }
 0x66e PF: > { %s15_s12 = sadd.s32 1, %s11154_s12  }
 0x66f   : > { %p12_p5 = scmp.ge.s32.totalorder %s15_s12, 4  }
 0x671   :  { %14 = sbr.rel (!%p12_p5) target bundleno = 2 (0x2), region = 92 }
 0x678   :  { %7511 = vsyncpa [#allocation5], 1 }
 0x679   :  { %7513 = vsyncpa [#allocation5 + $0x1], 1 }
 0x67a   :  { %7514 = vsyncpa [#allocation7], 1 }

</bundles_post_ra>
